<compile_context>
chip_gen: v5e
topology: v5e:2x2
jax: 0.10.0
libtpu: 0.0.40
codegen_flags: <defaults>
</compile_context>

<pallas_src>
import jax
import jax.numpy as jnp
from jax.experimental import pallas as pl
from jax.experimental.pallas import tpu as pltpu


NEG_SLOPE = 0.01   # nn.LeakyReLU default negative_slope
EPS = 1e-8         # matches the 1e-08 in the torch loss


def _sigmoid(x):
    # same formula in kernel and reference so they match bit-for-bit-ish
    return 1.0 / (1.0 + jnp.exp(-x))


# ----------------------------- Pallas kernel --------------------------------
def stg_co_kernel(decay_ref, z1_ref, z2_ref, z2s_ref, w_ref, b_ref,
                  wp_ref, bp_ref, o_ref):
    """One grid step == one (row tile, time step). The output block is resident
    across the time axis and accumulates decay**(w-1) * partial_loss."""
    w = pl.program_id(1)  # time step (trailing "arbitrary" reduction axis)

    @pl.when(w == 0)
    def _():
        o_ref[...] = jnp.zeros_like(o_ref)

    def mlp(z, wa, ba, wb, bb):
        # Linear -> LeakyReLU -> Linear  (bf16 MXU inputs, f32 accumulate/epilogue)
        h = jnp.dot(z, wa, preferred_element_type=jnp.float32) + ba
        h = jnp.where(h > 0, h, NEG_SLOPE * h)
        return jnp.dot(h.astype(wb.dtype), wb,
                       preferred_element_type=jnp.float32) + bb

    h1 = mlp(z1_ref[...], w_ref[0], b_ref[0], w_ref[1], b_ref[1])
    h2 = mlp(z2_ref[...], w_ref[2], b_ref[2], w_ref[3], b_ref[3])
    # row_column_shuffle(h2): rows were pre-gathered on the host (z2s_ref),
    # the column shuffle is folded into the permuted second Linear (wp/bp).
    h2s = mlp(z2s_ref[...], w_ref[2], b_ref[2], wp_ref[...], bp_ref[...])

    pos = jnp.sum(h1 * h2, axis=-1, keepdims=True)    # (tm, 1) f32
    neg = jnp.sum(h1 * h2s, axis=-1, keepdims=True)

    sig_p = _sigmoid(pos)
    sig_n = _sigmoid(neg)
    term = -jnp.log(EPS + sig_p) - jnp.log(EPS + (1.0 - sig_n))   # (tm, 1)

    # decay**(w-1): scalar-prefetch value in SMEM; scale the per-row terms
    # (vector * scalar), reduce, and accumulate into the resident output block.
    d = decay_ref[w]
    o_ref[...] = o_ref[...] + jnp.sum(term * d)


# ------------------------------- wrapper -------------------------------------
def stg_co_loss_pallas(z1, z2, params, perm_rows, perm_cols,
                       decay, beta, *, tm=256):
    """z1, z2: [N, T, E] (nodes x n_time x emb, as consumed by the torch module).
    perm_rows: [T, N] int32 row permutations, perm_cols: [T, E] int32 column
    permutations (the torch row_column_shuffle). Returns the scalar loss."""
    N, T, E = z1.shape
    assert N % tm == 0 and tm % 8 == 0 and E % 128 == 0, \
        "pad N to a multiple of tm and E to a multiple of 128"
    nrt = N // tm
    f32, bf16 = jnp.float32, jnp.bfloat16

    # Time-major [T, N, E] so each grid step slices one (time, row-tile) block.
    z1_t = jnp.transpose(z1, (1, 0, 2)).astype(bf16)
    z2_t = jnp.transpose(z2, (1, 0, 2)).astype(bf16)
    # Row shuffle of h2 commutes with the row-wise MLP -> gather z2 rows up front.
    z2s_t = jnp.take_along_axis(z2_t, perm_rows[:, :, None], axis=1)

    # Stack the four time-invariant Linear weights (bf16 MXU inputs) / biases (f32).
    W_all = jnp.stack([params["W1a"], params["W1b"],
                       params["W2a"], params["W2b"]], axis=0).astype(bf16)
    b_all = jnp.stack([params["b1a"], params["b1b"],
                       params["b2a"], params["b2b"]], axis=0).astype(f32)[:, None, :]
    # Column shuffle of h2 == permuting the columns of fc2's second Linear.
    W2bp = jax.vmap(lambda p: params["W2b"][:, p])(perm_cols).astype(bf16)           # [T,E,E]
    b2bp = jax.vmap(lambda p: params["b2b"][p])(perm_cols).astype(f32)[:, None, :]   # [T,1,E]

    # decay**(w-1) per time step, delivered to the kernel via scalar prefetch.
    decay_w = jnp.float32(decay) ** (jnp.arange(T, dtype=f32) - 1.0)                 # [T]

    out = pl.pallas_call(
        stg_co_kernel,
        out_shape=jax.ShapeDtypeStruct((nrt, 8, 128), f32),
        grid_spec=pltpu.PrefetchScalarGridSpec(
            num_scalar_prefetch=1,   # decay_w -> SMEM, read as a scalar per step
            grid=(nrt, T),           # row tiles (parallel) x time (arbitrary, last)
            in_specs=[
                pl.BlockSpec((pl.Squeezed(), tm, E), lambda i, w, d: (w, i, 0)),   # z1[w] row tile
                pl.BlockSpec((pl.Squeezed(), tm, E), lambda i, w, d: (w, i, 0)),   # z2[w] row tile
                pl.BlockSpec((pl.Squeezed(), tm, E), lambda i, w, d: (w, i, 0)),   # row-shuffled z2[w]
                pl.BlockSpec((4, E, E), lambda i, w, d: (0, 0, 0)),                # W1a,W1b,W2a,W2b
                pl.BlockSpec((4, 1, E), lambda i, w, d: (0, 0, 0)),                # biases
                pl.BlockSpec((pl.Squeezed(), E, E), lambda i, w, d: (w, 0, 0)),    # col-permuted W2b
                pl.BlockSpec((pl.Squeezed(), 1, E), lambda i, w, d: (w, 0, 0)),    # col-permuted b2b
            ],
            out_specs=pl.BlockSpec((1, 8, 128), lambda i, w, d: (i, 0, 0)),        # resident acc over w
        ),
        compiler_params=pltpu.CompilerParams(
            dimension_semantics=("parallel", "arbitrary")),
    )(decay_w, z1_t, z2_t, z2s_t, W_all, b_all, W2bp, b2bp)

    # every lane of out[i] holds the same per-row-tile accumulated loss
    return jnp.float32(beta) * jnp.sum(out[:, 0, 0])


# ------------------------------ JAX reference ---------------------------------
def stg_co_reference(z1, z2, params, perm_rows, perm_cols, decay, beta):
    """Pure-JAX mirror of the torch forward (same bf16-matmul / f32 policy)."""
    f32, bf16 = jnp.float32, jnp.bfloat16

    def mlp(x, wa, ba, wb, bb):
        h = jnp.dot(x.astype(bf16), wa.astype(bf16), preferred_element_type=f32) + ba
        h = jnp.where(h > 0, h, NEG_SLOPE * h)
        return jnp.dot(h.astype(bf16), wb.astype(bf16), preferred_element_type=f32) + bb

    T = z1.shape[1]
    total = jnp.float32(0.0)
    for w in range(T):
        h1 = mlp(z1[:, w, :], params["W1a"], params["b1a"], params["W1b"], params["b1b"])
        h2 = mlp(z2[:, w, :], params["W2a"], params["b2a"], params["W2b"], params["b2b"])
        h2s = h2[perm_rows[w]][:, perm_cols[w]]                  # row_column_shuffle
        pos = jnp.sum(h1 * h2, axis=1)
        neg = jnp.sum(h1 * h2s, axis=1)
        sub = jnp.sum(-jnp.log(EPS + _sigmoid(pos))
                      - jnp.log(EPS + (1.0 - _sigmoid(neg))))
        total = total + sub * (decay ** (w - 1))
    return beta * total


# ---------------------------------- main ---------------------------------------
if __name__ == "__main__":
    key = jax.random.PRNGKey(0)
    ks = jax.random.split(key, 8)

    # small shapes consistent with the module: N nodes, n_time steps, emb_size E
    N, T, E = 512, 4, 128
    decay, beta = 0.9, 0.05          # opt.decay / opt.beta stand-ins
    tm = 256

    z1 = 0.5 * jax.random.normal(ks[0], (N, T, E), jnp.float32)
    z2 = 0.5 * jax.random.normal(ks[1], (N, T, E), jnp.float32)

    def linear_init(k, fan_in, fan_out):
        lim = (1.0 / fan_in) ** 0.5  # torch nn.Linear default init range
        kw, kb = jax.random.split(k)
        w = jax.random.uniform(kw, (fan_in, fan_out), jnp.float32, -lim, lim)
        b = jax.random.uniform(kb, (fan_out,), jnp.float32, -lim, lim)
        return w, b

    W1a, b1a = linear_init(ks[2], E, E)
    W1b, b1b = linear_init(ks[3], E, E)
    W2a, b2a = linear_init(ks[4], E, E)
    W2b, b2b = linear_init(ks[5], E, E)
    params = dict(W1a=W1a, b1a=b1a, W1b=W1b, b1b=b1b,
                  W2a=W2a, b2a=b2a, W2b=W2b, b2b=b2b)

    # TODO(synk): torch.randperm re-draws fresh permutations every forward; here
    # the row/column shuffles are deterministic per time step, generated outside
    # the kernel from PRNGKey(0).
    perm_rows = jnp.stack([jax.random.permutation(jax.random.fold_in(ks[6], w), N)
                           for w in range(T)]).astype(jnp.int32)
    perm_cols = jnp.stack([jax.random.permutation(jax.random.fold_in(ks[7], w), E)
                           for w in range(T)]).astype(jnp.int32)

    loss = stg_co_loss_pallas(z1, z2, params, perm_rows, perm_cols, decay, beta, tm=tm)
    jax.block_until_ready(loss)

    ref = stg_co_reference(z1, z2, params, perm_rows, perm_cols, decay, beta)
    assert jnp.allclose(loss, ref, rtol=2e-2, atol=2e-2), (float(loss), float(ref))

    print("KERNEL_OK")
</pallas_src>

<mosaic_0001>
module attributes {stable_mosaic.version = 11 : i64} {
  func.func @stg_co_kernel(%arg0: i32, %arg1: i32, %arg2: memref<4xf32, #tpu.memory_space<smem>>, %arg3: memref<1x256x128xbf16, #tpu.memory_space<vmem>>, %arg4: memref<1x256x128xbf16, #tpu.memory_space<vmem>>, %arg5: memref<1x256x128xbf16, #tpu.memory_space<vmem>>, %arg6: memref<4x128x128xbf16, #tpu.memory_space<vmem>>, %arg7: memref<4x1x128xf32, #tpu.memory_space<vmem>>, %arg8: memref<1x128x128xbf16, #tpu.memory_space<vmem>>, %arg9: memref<1x1x128xf32, #tpu.memory_space<vmem>>, %arg10: memref<1x8x128xf32, #tpu.memory_space<vmem>>) attributes {dimension_semantics = [#tpu.dimension_semantics<parallel>, #tpu.dimension_semantics<arbitrary>], iteration_bounds = array<i64: 2, 4>, scalar_prefetch = 1 : i64, scratch_operands = 0 : i64, tpu.core_type = #tpu.core_type<tc>, window_params = [{transform_indices = @transform_0, window_bounds = array<i64: 1, 256, 128>}, {transform_indices = @transform_1, window_bounds = array<i64: 1, 256, 128>}, {transform_indices = @transform_2, window_bounds = array<i64: 1, 256, 128>}, {pipeline_mode = #tpu.pipeline_mode<synchronous>, transform_indices = @transform_3, window_bounds = array<i64: 4, 128, 128>}, {pipeline_mode = #tpu.pipeline_mode<synchronous>, transform_indices = @transform_4, window_bounds = array<i64: 4, 1, 128>}, {transform_indices = @transform_5, window_bounds = array<i64: 1, 128, 128>}, {transform_indices = @transform_6, window_bounds = array<i64: 1, 1, 128>}, {transform_indices = @transform_7, window_bounds = array<i64: 1, 8, 128>}]} {
    %c0_i32 = arith.constant 0 : i32
    %0 = arith.cmpi eq, %arg1, %c0_i32 : i32
    %1 = arith.extui %0 : i1 to i32
    %c0_i32_0 = arith.constant 0 : i32
    %2 = arith.cmpi ne, %1, %c0_i32_0 : i32
    scf.if %2 {
      %cst_72 = arith.constant 0.000000e+00 : f32
      %112 = vector.broadcast %cst_72 : f32 to vector<1x8x128xf32>
      %c0_73 = arith.constant 0 : index
      %c0_74 = arith.constant 0 : index
      %c0_75 = arith.constant 0 : index
      %113 = vector.load %arg10[%c0_73, %c0_74, %c0_75] : memref<1x8x128xf32, #tpu.memory_space<vmem>>, vector<1x8x128xf32>
      tpu.vector_store %arg10[%c0_73, %c0_74, %c0_75], %112 {strides = array<i32>} : memref<1x8x128xf32, #tpu.memory_space<vmem>>, vector<1x8x128xf32>,
    } else {
    }
    %c0 = arith.constant 0 : index
    %c0_1 = arith.constant 0 : index
    %c0_2 = arith.constant 0 : index
    %3 = vector.load %arg3[%c0, %c0_1, %c0_2] : memref<1x256x128xbf16, #tpu.memory_space<vmem>>, vector<1x256x128xbf16>
    %4 = vector.shape_cast %3 : vector<1x256x128xbf16> to vector<256x128xbf16>
    %c0_3 = arith.constant 0 : index
    %c0_4 = arith.constant 0 : index
    %c0_5 = arith.constant 0 : index
    %5 = vector.load %arg6[%c0_3, %c0_4, %c0_5] : memref<4x128x128xbf16, #tpu.memory_space<vmem>>, vector<1x128x128xbf16>
    %6 = vector.shape_cast %5 : vector<1x128x128xbf16> to vector<128x128xbf16>
    %c0_6 = arith.constant 0 : index
    %c0_7 = arith.constant 0 : index
    %c0_8 = arith.constant 0 : index
    %7 = vector.load %arg7[%c0_6, %c0_7, %c0_8] : memref<4x1x128xf32, #tpu.memory_space<vmem>>, vector<1x1x128xf32>
    %8 = vector.shape_cast %7 : vector<1x1x128xf32> to vector<1x128xf32>
    %c1 = arith.constant 1 : index
    %c0_9 = arith.constant 0 : index
    %c0_10 = arith.constant 0 : index
    %9 = vector.load %arg6[%c1, %c0_9, %c0_10] : memref<4x128x128xbf16, #tpu.memory_space<vmem>>, vector<1x128x128xbf16>
    %10 = vector.shape_cast %9 : vector<1x128x128xbf16> to vector<128x128xbf16>
    %c1_11 = arith.constant 1 : index
    %c0_12 = arith.constant 0 : index
    %c0_13 = arith.constant 0 : index
    %11 = vector.load %arg7[%c1_11, %c0_12, %c0_13] : memref<4x1x128xf32, #tpu.memory_space<vmem>>, vector<1x1x128xf32>
    %12 = vector.shape_cast %11 : vector<1x1x128xf32> to vector<1x128xf32>
    %cst = arith.constant dense<0.000000e+00> : vector<256x128xf32>
    %13 = tpu.matmul %4, %6, %cst {dimension_numbers = #tpu.dot_dimension_numbers<[1], [0], [0], [1], [0, 0, 1, 1], [], []>} : vector<256x128xbf16>, vector<128x128xbf16>, vector<256x128xf32> -> vector<256x128xf32>
    %14 = vector.broadcast %8 : vector<1x128xf32> to vector<256x128xf32>
    %15 = arith.addf %13, %14 : vector<256x128xf32>
    %cst_14 = arith.constant 0.000000e+00 : f32
    %16 = vector.broadcast %cst_14 : f32 to vector<256x128xf32>
    %17 = arith.cmpf ogt, %15, %16 : vector<256x128xf32>
    %cst_15 = arith.constant 0.00999999977 : f32
    %18 = vector.broadcast %cst_15 : f32 to vector<256x128xf32>
    %19 = arith.mulf %18, %15 : vector<256x128xf32>
    %20 = arith.select %17, %15, %19 : vector<256x128xi1>, vector<256x128xf32>
    %21 = arith.truncf %20 : vector<256x128xf32> to vector<256x128xbf16>
    %cst_16 = arith.constant dense<0.000000e+00> : vector<256x128xf32>
    %22 = tpu.matmul %21, %10, %cst_16 {dimension_numbers = #tpu.dot_dimension_numbers<[1], [0], [0], [1], [0, 0, 1, 1], [], []>} : vector<256x128xbf16>, vector<128x128xbf16>, vector<256x128xf32> -> vector<256x128xf32>
    %23 = vector.broadcast %12 : vector<1x128xf32> to vector<256x128xf32>
    %24 = arith.addf %22, %23 : vector<256x128xf32>
    %c0_17 = arith.constant 0 : index
    %c0_18 = arith.constant 0 : index
    %c0_19 = arith.constant 0 : index
    %25 = vector.load %arg4[%c0_17, %c0_18, %c0_19] : memref<1x256x128xbf16, #tpu.memory_space<vmem>>, vector<1x256x128xbf16>
    %26 = vector.shape_cast %25 : vector<1x256x128xbf16> to vector<256x128xbf16>
    %c2 = arith.constant 2 : index
    %c0_20 = arith.constant 0 : index
    %c0_21 = arith.constant 0 : index
    %27 = vector.load %arg6[%c2, %c0_20, %c0_21] : memref<4x128x128xbf16, #tpu.memory_space<vmem>>, vector<1x128x128xbf16>
    %28 = vector.shape_cast %27 : vector<1x128x128xbf16> to vector<128x128xbf16>
    %c2_22 = arith.constant 2 : index
    %c0_23 = arith.constant 0 : index
    %c0_24 = arith.constant 0 : index
    %29 = vector.load %arg7[%c2_22, %c0_23, %c0_24] : memref<4x1x128xf32, #tpu.memory_space<vmem>>, vector<1x1x128xf32>
    %30 = vector.shape_cast %29 : vector<1x1x128xf32> to vector<1x128xf32>
    %c3 = arith.constant 3 : index
    %c0_25 = arith.constant 0 : index
    %c0_26 = arith.constant 0 : index
    %31 = vector.load %arg6[%c3, %c0_25, %c0_26] : memref<4x128x128xbf16, #tpu.memory_space<vmem>>, vector<1x128x128xbf16>
    %32 = vector.shape_cast %31 : vector<1x128x128xbf16> to vector<128x128xbf16>
    %c3_27 = arith.constant 3 : index
    %c0_28 = arith.constant 0 : index
    %c0_29 = arith.constant 0 : index
    %33 = vector.load %arg7[%c3_27, %c0_28, %c0_29] : memref<4x1x128xf32, #tpu.memory_space<vmem>>, vector<1x1x128xf32>
    %34 = vector.shape_cast %33 : vector<1x1x128xf32> to vector<1x128xf32>
    %cst_30 = arith.constant dense<0.000000e+00> : vector<256x128xf32>
    %35 = tpu.matmul %26, %28, %cst_30 {dimension_numbers = #tpu.dot_dimension_numbers<[1], [0], [0], [1], [0, 0, 1, 1], [], []>} : vector<256x128xbf16>, vector<128x128xbf16>, vector<256x128xf32> -> vector<256x128xf32>
    %36 = vector.broadcast %30 : vector<1x128xf32> to vector<256x128xf32>
    %37 = arith.addf %35, %36 : vector<256x128xf32>
    %cst_31 = arith.constant 0.000000e+00 : f32
    %38 = vector.broadcast %cst_31 : f32 to vector<256x128xf32>
    %39 = arith.cmpf ogt, %37, %38 : vector<256x128xf32>
    %cst_32 = arith.constant 0.00999999977 : f32
    %40 = vector.broadcast %cst_32 : f32 to vector<256x128xf32>
    %41 = arith.mulf %40, %37 : vector<256x128xf32>
    %42 = arith.select %39, %37, %41 : vector<256x128xi1>, vector<256x128xf32>
    %43 = arith.truncf %42 : vector<256x128xf32> to vector<256x128xbf16>
    %cst_33 = arith.constant dense<0.000000e+00> : vector<256x128xf32>
    %44 = tpu.matmul %43, %32, %cst_33 {dimension_numbers = #tpu.dot_dimension_numbers<[1], [0], [0], [1], [0, 0, 1, 1], [], []>} : vector<256x128xbf16>, vector<128x128xbf16>, vector<256x128xf32> -> vector<256x128xf32>
    %45 = vector.broadcast %34 : vector<1x128xf32> to vector<256x128xf32>
    %46 = arith.addf %44, %45 : vector<256x128xf32>
    %c0_34 = arith.constant 0 : index
    %c0_35 = arith.constant 0 : index
    %c0_36 = arith.constant 0 : index
    %47 = vector.load %arg5[%c0_34, %c0_35, %c0_36] : memref<1x256x128xbf16, #tpu.memory_space<vmem>>, vector<1x256x128xbf16>
    %48 = vector.shape_cast %47 : vector<1x256x128xbf16> to vector<256x128xbf16>
    %c2_37 = arith.constant 2 : index
    %c0_38 = arith.constant 0 : index
    %c0_39 = arith.constant 0 : index
    %49 = vector.load %arg6[%c2_37, %c0_38, %c0_39] : memref<4x128x128xbf16, #tpu.memory_space<vmem>>, vector<1x128x128xbf16>
    %50 = vector.shape_cast %49 : vector<1x128x128xbf16> to vector<128x128xbf16>
    %c2_40 = arith.constant 2 : index
    %c0_41 = arith.constant 0 : index
    %c0_42 = arith.constant 0 : index
    %51 = vector.load %arg7[%c2_40, %c0_41, %c0_42] : memref<4x1x128xf32, #tpu.memory_space<vmem>>, vector<1x1x128xf32>
    %52 = vector.shape_cast %51 : vector<1x1x128xf32> to vector<1x128xf32>
    %c0_43 = arith.constant 0 : index
    %c0_44 = arith.constant 0 : index
    %c0_45 = arith.constant 0 : index
    %53 = vector.load %arg8[%c0_43, %c0_44, %c0_45] : memref<1x128x128xbf16, #tpu.memory_space<vmem>>, vector<1x128x128xbf16>
    %54 = vector.shape_cast %53 : vector<1x128x128xbf16> to vector<128x128xbf16>
    %c0_46 = arith.constant 0 : index
    %c0_47 = arith.constant 0 : index
    %c0_48 = arith.constant 0 : index
    %55 = vector.load %arg9[%c0_46, %c0_47, %c0_48] : memref<1x1x128xf32, #tpu.memory_space<vmem>>, vector<1x1x128xf32>
    %56 = vector.shape_cast %55 : vector<1x1x128xf32> to vector<1x128xf32>
    %cst_49 = arith.constant dense<0.000000e+00> : vector<256x128xf32>
    %57 = tpu.matmul %48, %50, %cst_49 {dimension_numbers = #tpu.dot_dimension_numbers<[1], [0], [0], [1], [0, 0, 1, 1], [], []>} : vector<256x128xbf16>, vector<128x128xbf16>, vector<256x128xf32> -> vector<256x128xf32>
    %58 = vector.broadcast %52 : vector<1x128xf32> to vector<256x128xf32>
    %59 = arith.addf %57, %58 : vector<256x128xf32>
    %cst_50 = arith.constant 0.000000e+00 : f32
    %60 = vector.broadcast %cst_50 : f32 to vector<256x128xf32>
    %61 = arith.cmpf ogt, %59, %60 : vector<256x128xf32>
    %cst_51 = arith.constant 0.00999999977 : f32
    %62 = vector.broadcast %cst_51 : f32 to vector<256x128xf32>
    %63 = arith.mulf %62, %59 : vector<256x128xf32>
    %64 = arith.select %61, %59, %63 : vector<256x128xi1>, vector<256x128xf32>
    %65 = arith.truncf %64 : vector<256x128xf32> to vector<256x128xbf16>
    %cst_52 = arith.constant dense<0.000000e+00> : vector<256x128xf32>
    %66 = tpu.matmul %65, %54, %cst_52 {dimension_numbers = #tpu.dot_dimension_numbers<[1], [0], [0], [1], [0, 0, 1, 1], [], []>} : vector<256x128xbf16>, vector<128x128xbf16>, vector<256x128xf32> -> vector<256x128xf32>
    %67 = vector.broadcast %56 : vector<1x128xf32> to vector<256x128xf32>
    %68 = arith.addf %66, %67 : vector<256x128xf32>
    %69 = arith.mulf %24, %46 : vector<256x128xf32>
    %cst_53 = arith.constant dense<0.000000e+00> : vector<256xf32>
    %70 = vector.multi_reduction <add>, %69, %cst_53 [1] : vector<256x128xf32> to vector<256xf32>
    %71 = vector.shape_cast %70 : vector<256xf32> to vector<256x1xf32>
    %72 = arith.mulf %24, %68 : vector<256x128xf32>
    %cst_54 = arith.constant dense<0.000000e+00> : vector<256xf32>
    %73 = vector.multi_reduction <add>, %72, %cst_54 [1] : vector<256x128xf32> to vector<256xf32>
    %74 = vector.shape_cast %73 : vector<256xf32> to vector<256x1xf32>
    %cst_55 = arith.constant 0.000000e+00 : f32
    %75 = vector.broadcast %cst_55 : f32 to vector<256x1xf32>
    %76 = arith.subf %75, %71 : vector<256x1xf32>
    %77 = math.exp %76 : vector<256x1xf32>
    %cst_56 = arith.constant 1.000000e+00 : f32
    %78 = vector.broadcast %cst_56 : f32 to vector<256x1xf32>
    %79 = arith.addf %78, %77 : vector<256x1xf32>
    %cst_57 = arith.constant 1.000000e+00 : f32
    %80 = vector.broadcast %cst_57 : f32 to vector<256x1xf32>
    %81 = arith.divf %80, %79 : vector<256x1xf32>
    %cst_58 = arith.constant 0.000000e+00 : f32
    %82 = vector.broadcast %cst_58 : f32 to vector<256x1xf32>
    %83 = arith.subf %82, %74 : vector<256x1xf32>
    %84 = math.exp %83 : vector<256x1xf32>
    %cst_59 = arith.constant 1.000000e+00 : f32
    %85 = vector.broadcast %cst_59 : f32 to vector<256x1xf32>
    %86 = arith.addf %85, %84 : vector<256x1xf32>
    %cst_60 = arith.constant 1.000000e+00 : f32
    %87 = vector.broadcast %cst_60 : f32 to vector<256x1xf32>
    %88 = arith.divf %87, %86 : vector<256x1xf32>
    %cst_61 = arith.constant 9.99999993E-9 : f32
    %89 = vector.broadcast %cst_61 : f32 to vector<256x1xf32>
    %90 = arith.addf %89, %81 : vector<256x1xf32>
    %91 = math.log %90 : vector<256x1xf32>
    %cst_62 = arith.constant 0.000000e+00 : f32
    %92 = vector.broadcast %cst_62 : f32 to vector<256x1xf32>
    %93 = arith.subf %92, %91 : vector<256x1xf32>
    %cst_63 = arith.constant 1.000000e+00 : f32
    %94 = vector.broadcast %cst_63 : f32 to vector<256x1xf32>
    %95 = arith.subf %94, %88 : vector<256x1xf32>
    %cst_64 = arith.constant 9.99999993E-9 : f32
    %96 = vector.broadcast %cst_64 : f32 to vector<256x1xf32>
    %97 = arith.addf %96, %95 : vector<256x1xf32>
    %98 = math.log %97 : vector<256x1xf32>
    %99 = arith.subf %93, %98 : vector<256x1xf32>
    %100 = arith.index_cast %arg1 : i32 to index
    %101 = memref.load %arg2[%100] : memref<4xf32, #tpu.memory_space<smem>>
    %c0_65 = arith.constant 0 : index
    %c0_66 = arith.constant 0 : index
    %c0_67 = arith.constant 0 : index
    %102 = vector.load %arg10[%c0_65, %c0_66, %c0_67] : memref<1x8x128xf32, #tpu.memory_space<vmem>>, vector<1x8x128xf32>
    %103 = vector.broadcast %101 : f32 to vector<256x1xf32>
    %104 = arith.mulf %99, %103 : vector<256x1xf32>
    %105 = vector.shape_cast %104 : vector<256x1xf32> to vector<1x256x1xf32>
    %cst_68 = arith.constant dense<0.000000e+00> : vector<1xf32>
    %106 = vector.multi_reduction <add>, %105, %cst_68 [1, 2] : vector<1x256x1xf32> to vector<1xf32>
    %107 = vector.shape_cast %106 : vector<1xf32> to vector<1x1x1xf32>
    %108 = vector.extract %107[0, 0, 0] : f32 from vector<1x1x1xf32>
    %109 = vector.broadcast %108 : f32 to vector<1x8x128xf32>
    %110 = arith.addf %102, %109 : vector<1x8x128xf32>
    %c0_69 = arith.constant 0 : index
    %c0_70 = arith.constant 0 : index
    %c0_71 = arith.constant 0 : index
    %111 = vector.load %arg10[%c0_69, %c0_70, %c0_71] : memref<1x8x128xf32, #tpu.memory_space<vmem>>, vector<1x8x128xf32>
    tpu.vector_store %arg10[%c0_69, %c0_70, %c0_71], %110 {strides = array<i32>} : memref<1x8x128xf32, #tpu.memory_space<vmem>>, vector<1x8x128xf32>,
    return
  }
  func.func @transform_0(%arg0: i32, %arg1: i32, %arg2: memref<4xf32, #tpu.memory_space<smem>>) -> (i32, i32, i32) {
    %c0_i32 = arith.constant 0 : i32
    %c0_i32_0 = arith.constant 0 : i32
    return %arg1, %arg0, %c0_i32 : i32, i32, i32
  }
  func.func @transform_1(%arg0: i32, %arg1: i32, %arg2: memref<4xf32, #tpu.memory_space<smem>>) -> (i32, i32, i32) {
    %c0_i32 = arith.constant 0 : i32
    %c0_i32_0 = arith.constant 0 : i32
    return %arg1, %arg0, %c0_i32 : i32, i32, i32
  }
  func.func @transform_2(%arg0: i32, %arg1: i32, %arg2: memref<4xf32, #tpu.memory_space<smem>>) -> (i32, i32, i32) {
    %c0_i32 = arith.constant 0 : i32
    %c0_i32_0 = arith.constant 0 : i32
    return %arg1, %arg0, %c0_i32 : i32, i32, i32
  }
  func.func @transform_3(%arg0: i32, %arg1: i32, %arg2: memref<4xf32, #tpu.memory_space<smem>>) -> (i32, i32, i32) {
    %c0_i32 = arith.constant 0 : i32
    %c0_i32_0 = arith.constant 0 : i32
    %c0_i32_1 = arith.constant 0 : i32
    %c0_i32_2 = arith.constant 0 : i32
    return %c0_i32, %c0_i32_0, %c0_i32_1 : i32, i32, i32
  }
  func.func @transform_4(%arg0: i32, %arg1: i32, %arg2: memref<4xf32, #tpu.memory_space<smem>>) -> (i32, i32, i32) {
    %c0_i32 = arith.constant 0 : i32
    %c0_i32_0 = arith.constant 0 : i32
    %c0_i32_1 = arith.constant 0 : i32
    %c0_i32_2 = arith.constant 0 : i32
    return %c0_i32, %c0_i32_0, %c0_i32_1 : i32, i32, i32
  }
  func.func @transform_5(%arg0: i32, %arg1: i32, %arg2: memref<4xf32, #tpu.memory_space<smem>>) -> (i32, i32, i32) {
    %c0_i32 = arith.constant 0 : i32
    %c0_i32_0 = arith.constant 0 : i32
    %c0_i32_1 = arith.constant 0 : i32
    return %arg1, %c0_i32, %c0_i32_0 : i32, i32, i32
  }
  func.func @transform_6(%arg0: i32, %arg1: i32, %arg2: memref<4xf32, #tpu.memory_space<smem>>) -> (i32, i32, i32) {
    %c0_i32 = arith.constant 0 : i32
    %c0_i32_0 = arith.constant 0 : i32
    %c0_i32_1 = arith.constant 0 : i32
    return %arg1, %c0_i32, %c0_i32_0 : i32, i32, i32
  }
  func.func @transform_7(%arg0: i32, %arg1: i32, %arg2: memref<4xf32, #tpu.memory_space<smem>>) -> (i32, i32, i32) {
    %c0_i32 = arith.constant 0 : i32
    %c0_i32_0 = arith.constant 0 : i32
    %c0_i32_1 = arith.constant 0 : i32
    return %arg0, %c0_i32, %c0_i32_0 : i32, i32, i32
  }
}

</mosaic_0001>

<bundles_post_ra>
// kernel: tpu_custom_call.1
= control target key start
LH: loop header
LB: loop body
LE: loop exit
PB: predicated region body
PF: predicated region fallthrough
CT: control target
= control target key end

     0   :  { %s5519_s30 = smov [#allocation3]   ;;  %s7778_s0 = inlined_call_operand.hbm [shape: f32[4], index: 0, kind: input, shape index: {}]   ;;  %s7779_s1 = inlined_call_operand.hbm [shape: bf16[4,512,128], index: 1, kind: input, shape index: {}]   ;;  %s7780_s2 = inlined_call_operand.hbm [shape: bf16[4,512,128], index: 2, kind: input, shape index: {}]   ;;  %s7781_s3 = inlined_call_operand.hbm [shape: bf16[4,512,128], index: 3, kind: input, shape index: {}]   ;;  %s7782_s4 = inlined_call_operand.hbm [shape: bf16[4,128,128], index: 4, kind: input, shape index: {}]   ;;  %s7783_s5 = inlined_call_operand.vmem [shape: f32[4,1,128], index: 5, kind: input, shape index: {}]   ;;  %s7784_s6 = inlined_call_operand.hbm [shape: bf16[4,128,128], index: 6, kind: input, shape index: {}]   ;;  %s7785_s7 = inlined_call_operand.hbm [shape: f32[4,1,128], index: 7, kind: input, shape index: {}]   ;;  %s7786_s8 = inlined_call_operand.hbm [shape: f32[2,8,128], index: 8, kind: output, shape index: {}]  }
   0x1   :  { %7802 = sst [smem:[#allocation35_spill]] %s7779_s1  ;;  %s14_s29 = sshll.u32 %s7778_s0, 4  ;;  %s15_s29 = int_to_ptr.hbm [resolvable:$true] %s14_s29 }
   0x2   :  { %7803 = sst [smem:[#allocation36_spill]] %s7780_s2 }
   0x3   :  { %7804 = sst [smem:[#allocation37_spill]] %s7781_s3 }
   0x4   :  { %7805 = sst [smem:[#allocation38_spill]] %s7782_s4 }
   0x5   :  { %7806 = sst [smem:[#allocation39_spill]] %s7783_s5 }
   0x6   :  { %7807 = sst [smem:[#allocation40_spill]] %s7784_s6 }
   0x7   :  { %7808 = sst [smem:[#allocation41_spill]] %s7785_s7 }
   0x8   :  { %7809 = sst [smem:[#allocation42_spill]] %s7786_s8 }
   0x9   :  { %17 = dma.hbm_to_smem %s15_s29, 16, %s5519_s30, [#allocation2] }
   0xa   :  { %5437 = dma.done.wait [#allocation2], 16 }
   0xb   :  { %5438 = vsyncadd [#allocation2], 4294967280 }
   0xc   :  { %20 = sfence }
   0xd   :  { %21 = vsyncpa [#allocation5], 0 }
   0xe   :  { %23 = vsyncpa [#allocation5 + $0x1], 0 }
   0xf   :  { %24 = vsyncpa [#allocation8], 0 }
  0x10   :  { %26 = vsyncpa [#allocation8 + $0x1], 0 }
  0x11   :  { %27 = vsyncpa [#allocation11], 0 }
  0x12   :  { %28 = vsyncpa [#allocation6], 0 }
  0x13   :  { %30 = vsyncpa [#allocation6 + $0x1], 0  ;;  %s5572_s9 = smov 0   ;;  %s5574_s10 = smov 0  }
  0x14   :  { %s5576_s11 = smov 0   ;;  %s5578_s0 = smov 0  }
  0x15   :  { %s5580_s12 = smov 0   ;;  %s5582_s13 = smov 0  }
  0x16   :  { %s5584_s14 = smov 0   ;;  %s5586_s15 = smov 0  }
  0x17   :  { %s5588_s16 = smov 0   ;;  %s5590_s17 = smov 0  }
  0x18   :  { %s5592_s18 = smov 0   ;;  %s5594_s19 = smov 0  }
  0x19   :  { %s5596_s20 = smov 0   ;;  %s5598_s21 = smov 0  }
  0x1a LB: > { %7810 = sst [smem:[#allocation22_spill]] %s5465_s9  ;;  %s45_s22 = sadd.s32 1, %s5509_s19  ;;  %s5517_s21 = sphi %s5598_s21, %s36_s21   ;;  %s5513_s20 = sphi %s5596_s20, %s8021_s20   ;;  %s5509_s19 = sphi %s5594_s19, %s8020_s19   ;;  %s5505_s18 = sphi %s5592_s18, %s8008_s18   ;;  %s5501_s17 = sphi %s5590_s17, %s8019_s17   ;;  %s5497_s16 = sphi %s5588_s16, %s8007_s16   ;;  %s5493_s15 = sphi %s5586_s15, %s8018_s15   ;;  %s5489_s14 = sphi %s5584_s14, %s8017_s14   ;;  %s5485_s13 = sphi %s5582_s13, %s8016_s13   ;;  %s5481_s12 = sphi %s5580_s12, %s8015_s12   ;;  %s5477_s0 = sphi %s5578_s0, %s8014_s0   ;;  %s5473_s11 = sphi %s5576_s11, %s8003_s11   ;;  %s5469_s10 = sphi %s5574_s10, %s8013_s10   ;;  %s5465_s9 = sphi %s5572_s9, %s8012_s9  }
  0x1b   : > { %7811 = sst [smem:[#allocation23_spill]] %s5473_s11  ;;  %s48_s23 = sadd.s32 1, %s5513_s20 }
  0x1c   : > { %7812 = sst [smem:[#allocation24_spill]] %s5485_s13  ;;  %p46_p0 = scmp.ge.s32.totalorder %s45_s22, 4 }
  0x1d   : > { %7813 = sst [smem:[#allocation25_spill]] %s5497_s16  ;;  %s57_s24 = sadd.s32 1, %s5497_s16 }
  0x1e   : > { %7814 = sst [smem:[#allocation26_spill]] %s5501_s17  ;;  %p64_p1 = scmp.ne.s32.totalorder %s5497_s16, %s5493_s15 }
  0x1f   : > { %7815 = sst [smem:[#allocation27_spill]] %s5505_s18  ;;  %p65_p2 = scmp.eq.s32.totalorder %s5517_s21, 0 }
  0x20   : > { %7816 = sst [smem:[#allocation28_spill]] %s5513_s20  ;;  %s8023_s22 = smov (%p46_p0, %s45_s22), 0 }
  0x21   : > { %7817 = sst [smem:[#allocation29_spill]] %s8023_s22  ;;  %s8025_s23 = smov (!%p46_p0, %s48_s23), %s5513_s20 }
  0x22   : > { %s5653_s25 = ssub.s32 %s5509_s19, %s8023_s22  ;;  %p5657_p3 = por %p65_p2, %p64_p1 }
  0x23   : > { %p50_p4 = scmp.ge.s32.totalorder %s8025_s23, 2  ;;  %p70_p5 = scmp.ne.s32.totalorder %s5493_s15, %s5489_s14 }
  0x24   : > { %p179_p6 = scmp.eq.s32.totalorder %s5653_s25, 0  ;;  %s233_s27 = sadd.s32 1, %s5473_s11 }
  0x25   : > { %s8027_s23 = smov (%p50_p4, %s8025_s23), 0  ;;  %p7794_p9 = scmp.lt.s32.totalorder %s5517_s21, 8 }
  0x26   : > { %7819 = sst [smem:[#allocation30_spill]] %s8027_s23  ;;  %s53_s28 = ssub.s32 %s5513_s20, %s8027_s23 }
  0x27   : > { %s54_s29 = sor.u32 %s53_s28, %s5653_s25  ;;  %p231_p7 = scmp.eq.s32.totalorder %s53_s28, 0 }
  0x28   : > { %p55_p8 = scmp.eq.s32.totalorder %s54_s29, 0  ;;  %s287_s8 = sand.u32 1, %s5517_s21  }
  0x29   : > { %s5672_s30 = scalar_select %p231_p7, %s5473_s11, %s233_s27  }
  0x2a   : > { %s5675_s22 = scalar_select %p55_p8, %s5497_s16, %s57_s24  }
  0x2b   : > { %7820 = sst [smem:[#allocation31_spill]] %s5672_s30  ;;  %s289_s18 = sand.u32 1, %s5497_s16  }
  0x2c   : > { %7821 = sst [smem:[#allocation32_spill]] %s5675_s22  ;;  %s4116_s5 = sshll.u32 %s289_s18, 7 }
  0x2d   : > { %s4117_s17 = sshll.u32 %s5513_s20, 5  ;;  %s7793_s7 = sshll.u32 %s5509_s19, 6 }
  0x2e   : > { %p5685_p10 = pnand %p7794_p9, %p5657_p3  ;;  %s296_s28 = sadd.s32 %s7793_s7, %s4117_s17 }
  0x2f   : > { %s4119_s29 = sshll.u32 %s296_s28, 2  ;;  %s7823_s2 = sld [smem:[#allocation36_spill]] }
  0x30   : > { %s315_s16 = scalar_lea.vmem [#allocation7], %s4116_s5  ;;  %s5694_s26 = scalar_lea.sflag [#allocation8], %s287_s8 }
  0x31   : > { %s325_s18 = sshll.u32 %s315_s16, 4  ;;  %s7797_s20 = smov 64   ;;  %s326_s18 = int_to_ptr.vmem [resolvable:$true] %s325_s18 }
  0x32   : > { %s7798_s30 = smov 4   ;;  %s7824_s1 = sld [smem:[#allocation35_spill]] }
  0x33   : > { %s291_s16 = scalar_lea.vmem [#allocation4], %s4116_s5  ;;  %s5705_s7 = scalar_lea.sflag [#allocation5], %s287_s8 }
  0x34   : > { %s301_s27 = sshll.u32 %s291_s16, 4  ;;  %s7825_s3 = sld [smem:[#allocation37_spill]]  ;;  %s302_s27 = int_to_ptr.vmem [resolvable:$true] %s301_s27 }
  0x35   : > { %s322_s24 = scalar_lea.hbm %s7823_s2, %s4119_s29  ;;  %s339_s23 = scalar_lea.vmem [#allocation9], %s4116_s5 }
  0x36   : > { %s323_s22 = sshll.u32 %s322_s24, 4  ;;  %s5723_s8 = sadd.s32 4294967295, %s5517_s21   ;;  %s324_s22 = int_to_ptr.hbm [resolvable:$true] %s323_s22 }
  0x37   : > { %4631 = dma.hbm_to_vmem [thread:$0]  (!%p5685_p10), %s324_s22, 2048, %s326_s18, %s5694_s26, %s7797_s20, %s7797_s20, %s7798_s30  }
  0x38   : > { %s298_s28 = scalar_lea.hbm %s7824_s1, %s4119_s29  ;;  %p71_p11 = scmp.eq.s32.totalorder %s5723_s8, 0 }
  0x39   : > { %s299_s24 = sshll.u32 %s298_s28, 4  ;;  %s349_s28 = sshll.u32 %s339_s23, 4  ;;  %s300_s24 = int_to_ptr.hbm [resolvable:$true] %s299_s24  ;;  %s350_s28 = int_to_ptr.vmem [resolvable:$true] %s349_s28 }
  0x3a   : > { %4628 = dma.hbm_to_vmem [thread:$0]  (!%p5685_p10), %s300_s24, 2048, %s302_s27, %s5705_s7, %s7797_s20, %s7797_s20, %s7798_s30  }
  0x3b   : > { %s346_s17 = scalar_lea.hbm %s7825_s3, %s4119_s29  ;;  %s4112_s27 = sadd.s32 4294967294, %s5517_s21  }
  0x3c   : > { %s347_s16 = sshll.u32 %s346_s17, 4  ;;  %p194_p12 = scmp.ne.s32.totalorder %s5481_s12, %s5477_s0  ;;  %s348_s16 = int_to_ptr.hbm [resolvable:$true] %s347_s16 }
  0x3d   : > { %4634 = dma.hbm_to_vmem [thread:$0]  (!%p5685_p10), %s348_s16, 2048, %s350_s28, %s5694_s26, %s7797_s20, %s7797_s20, %s7798_s30  }
  0x3e   : > { %p243_p13 = scmp.ne.s32.totalorder %s5473_s11, %s5469_s10  ;;  %p5736_p0 = por %p71_p11, %p70_p5 }
  0x3f   : > { %p244_p1 = scmp.eq.s32.totalorder %s5723_s8, 7  ;;  %p5743_p3 = por %p194_p12, %p71_p11 }
  0x40   : > { %p249_p4 = scmp.ne.s32.totalorder %s5469_s10, %s5465_s9  ;;  %p250_p5 = scmp.eq.s32.totalorder %s4112_s27, 7 }
  0x41   : > { %p5749_p7 = por %p244_p1, %p243_p13  ;;  %p4113_p8 = scmp.ge.s32.totalorder %s5517_s21, 1 }
  0x42   : > { %p257_p10 = scmp.lt.s32.totalorder %s5517_s21, 9  ;;  %p5755_p9 = por %p250_p5, %p249_p4 }
  0x43   : > { %s7832_s4 = sld [smem:[#allocation38_spill]]  ;;  %s5522_s17 = smov [#allocation10]  }
  0x44   : > { %s7829_s14 = scalar_select %p5755_p9, 1, 0 }
  0x45   : > { %p5759_p12 = pnand %p4113_p8, %p257_p10  ;;  %s270_s23 = sshll.u32 %s5522_s17, 4  ;;  %s271_s23 = int_to_ptr.vmem [resolvable:$true] %s270_s23 }
  0x46   : > { %7830 = sst [smem:[#allocation33_spill]] %s7829_s14  ;;  %s181_s28 = sadd.s32 1, %s5485_s13 }
  0x47   : > { %p4621_p13 = pneg %p5759_p12  ;;  %p188_p4 = scmp.ne.s32.totalorder %s5485_s13, %s5481_s12 }
  0x48   : > { %s361_s16 = sand.u32 1, %s5485_s13   ;;  %s7834_s22 = sshll.u32 %s5509_s19, 6 }
  0x49   : > { %s268_s18 = sshll.u32 %s7832_s4, 4  ;;  %p4622_p1 = pnand %p4621_p13, %p71_p11  ;;  %s269_s18 = int_to_ptr.hbm [resolvable:$true] %s268_s18 }
  0x4a   : > { %s5780_s27 = scalar_select %p179_p6, %s5485_s13, %s181_s28  }
  0x4b   : > { %4624 = dma.hbm_to_vmem [thread:$0]  (!%p4622_p1), %s269_s18, 4096, %s271_s23, [#allocation11], %s7797_s20, %s7797_s20, %s7798_s30  }
  0x4c   : > { %7833 = sst [smem:[#allocation34_spill]] %s5780_s27  ;;  %p190_p5 = por %p188_p4, %p65_p2 }
  0x4d   : > { %s4128_s24 = sshll.u32 %s361_s16, 6  ;;  %s7835_s2 = sld [smem:[#allocation40_spill]] }
  0x4e   : > { %s363_s11 = scalar_lea.vmem [#allocation12], %s4128_s24  ;;  %p7836_p8 = scmp.lt.s32.totalorder %s5517_s21, 8 }
  0x4f   : > { %s371_s14 = sshll.u32 %s363_s11, 4  ;;  %s7837_s23 = sld [smem:[#allocation41_spill]]  ;;  %s372_s14 = int_to_ptr.vmem [resolvable:$true] %s371_s14 }
  0x50   : > { %p4635_p10 = pnand %p7836_p8, %p190_p5  ;;  %s384_s20 = scalar_lea.vmem [#allocation13], %s361_s16 }
  0x51   : > { %s391_s30 = sshll.u32 %s384_s20, 4  ;;  %s7838_s13 = smov 4   ;;  %s392_s30 = int_to_ptr.vmem [resolvable:$true] %s391_s30 }
  0x52   : > { %s7839_s9 = smov 64   ;;  %s402_s1 = sand.u32 (!%p5759_p12), 1, %s5723_s8  }
  0x53   : > { %s368_s3 = scalar_lea.hbm %s7835_s2, %s7834_s22  ;;  %s404_s2 = sand.u32 (!%p5759_p12), 1, %s5493_s15  }
  0x54   : > { %s369_s4 = sshll.u32 %s368_s3, 4  ;;  %400 = sbr.rel (%p5759_p12) target bundleno = 1261 (0x4ed), region = 48  ;;  %s370_s4 = int_to_ptr.hbm [resolvable:$true] %s369_s4 }
  0x55   : > { %s387_s28 = scalar_lea.hbm %s7837_s23, %s5509_s19  ;;  %s4132_s3 = sshll.u32 (!%p5759_p12), %s404_s2, 7 }
  0x56   : > { %s389_s27 = sshll.u32 %s387_s28, 4  ;;  %s403_s11 = scalar_lea.sflag (!%p5759_p12), [#allocation5], %s402_s1  ;;  %s390_s27 = int_to_ptr.hbm [resolvable:$true] %s389_s27 }
  0x57   : > { %4637 = dma.hbm_to_vmem [thread:$0]  (!%p4635_p10), %s370_s4, 1024, %s372_s14, %s5705_s7, %s7839_s9, %s7839_s9, %s7838_s13  }
  0x58   : > { %4640 = dma.hbm_to_vmem [thread:$0]  (!%p4635_p10), %s390_s27, 16, %s392_s30, %s5694_s26  }
  0x59   : > { %s5804_s16 = scalar_lea.vmem [#allocation4], %s4132_s3 }
  0x5a   : > { %5440 = dma.done.wait (%p5736_p0), %s403_s11, 2048  }
  0x5b   : > { %5442 = vsyncadd (%p5736_p0), %s403_s11, 4294965248  ;;  %s413_s4 = scalar_lea.sflag [#allocation8], %s402_s1  ;;  %s5810_s7 = scalar_lea.vmem [#allocation7], %s4132_s3 }
  0x5c   : > { %5444 = dma.done.wait (%p5736_p0), %s413_s4, 4096  }
  0x5d   : > { %5446 = vsyncadd (%p5736_p0), %s413_s4, 4294963200  ;;  %s5816_s9 = scalar_lea.vmem [#allocation9], %s4132_s3 }
  0x5e   : > { %5448 = dma.done.wait (%p71_p11), [#allocation11], 4096  }
  0x5f   : > { %5450 = vsyncadd (%p71_p11), [#allocation11], 4294963200  ;;  %s439_s13 = sand.u32 1, %s5481_s12  }
  0x60   : > { %s4136_s20 = sshll.u32 %s439_s13, 6 }
  0x61   : > { %s5823_s30 = scalar_lea.vmem [#allocation12], %s4136_s20 }
  0x62   : > { %5452 = dma.done.wait (%p5743_p3), %s403_s11, 1024  }
  0x63   : > { %5454 = vsyncadd (%p5743_p3), %s403_s11, 4294966272  ;;  %s5829_s26 = scalar_lea.vmem [#allocation13], %s439_s13 }
  0x64   : > { %5456 = dma.done.wait (%p5743_p3), %s413_s4, 16  }
  0x65   : > { %5458 = vsyncadd (%p5743_p3), %s413_s4, 4294967280  ;;  %s498_s8 = sand.u32 1, %s5469_s10   ;;  %s7840_s29 = sld [smem:[#allocation26_spill]] }
  0x66   : > { %s4137_s5 = sshll.u32 %s498_s8, 3 }
  0x67   : > { %s5838_s14 = scalar_lea.vmem [#allocation14], %s4137_s5 }
  0x6b   : > { %p4138_p2 = scmp.ne.s32.totalorder %s7840_s29, 0 }
  0x6d   : > { %507 = sbr.rel (%p4138_p2) target bundleno = 116 (0x74), region = 76 }
  0x72   : > { %v5523_v0 = vmov 0.0  }
  0x73   : > { %508 = vst [vmem:[%s5838_s14] sm:$0xff] %v5523_v0 }
  0x74 PF: > { %v4522_v1 = vld [vmem:[#allocation10 + $0x38] sm:$0xff]  ;;  %v4521_v2 = vld [vmem:[#allocation10 + $0x30] sm:$0xff]  ;;  %v4520_v3 = vld [vmem:[#allocation10 + $0x28] sm:$0xff]  ;;  %s7841_s24 = sld [smem:[#allocation39_spill]]  ;;  %s3929_s22 = sshll.u32 %s5838_s14, 4  ;;  %s3930_s22 = int_to_ptr.vmem [resolvable:$true] %s3929_s22 }
  0x75   : > { %724 = vmatpush.bf16.msra.mxu0 %v4522_v1  ;;  %4587 = vmatpush.bf16.msra.mxu2 %v4522_v1  ;;  %v4519_v4 = vld [vmem:[#allocation10 + $0x20] sm:$0xff]  ;;  %v4518_v5 = vld [vmem:[#allocation10 + $0x18] sm:$0xff]  ;;  %v4517_v6 = vld [vmem:[#allocation10 + $0x10] sm:$0xff]  ;;  %s7842_s3 = sld [smem:[#allocation26_spill]]  ;;  %s3917_s25 = scalar_lea.sflag [#allocation6], %s498_s8 }
  0x76   : > { %v4516_v7 = vld [vmem:[#allocation10 + $0x8] sm:$0xff]  ;;  %v4515_v8 = vld [vmem:[#allocation10] sm:$0xff]  ;;  %v4554_v9 = vld [vmem:[#allocation10 + $0xb8] sm:$0xff]  ;;  %s7998_s6 = sld [smem:[#allocation42_spill]] }
  0x77   : > { %v4499_v10 = vld [vmem:[%s5804_s16] sm:$0xff]  ;;  %v4553_v12 = vld [vmem:[#allocation10 + $0xb0] sm:$0xff]  ;;  %v4552_v13 = vld [vmem:[#allocation10 + $0xa8] sm:$0xff] }
  0x78   : > { %v4507_v11 = vld [vmem:[%s5804_s16 + $0x40] sm:$0xff]  ;;  %v4500_v14 = vld [vmem:[%s5804_s16 + $0x8] sm:$0xff]  ;;  %v4501_v17 = vld [vmem:[%s5804_s16 + $0x10] sm:$0xff] }
  0x79   : > { %725 = vmatpush.bf16.msra.mxu0 %v4521_v2  ;;  %4588 = vmatpush.bf16.msra.mxu2 %v4521_v2  ;;  %v4508_v15 = vld [vmem:[%s5804_s16 + $0x48] sm:$0xff]  ;;  %v4551_v16 = vld [vmem:[#allocation10 + $0xa0] sm:$0xff]  ;;  %v4509_v18 = vld [vmem:[%s5804_s16 + $0x50] sm:$0xff] }
  0x7a   : > { %v4550_v19 = vld [vmem:[#allocation10 + $0x98] sm:$0xff]  ;;  %v4549_v22 = vld [vmem:[#allocation10 + $0x90] sm:$0xff]  ;;  %v4503_v23 = vld [vmem:[%s5804_s16 + $0x20] sm:$0xff] }
  0x7b   : > { %v4502_v20 = vld [vmem:[%s5804_s16 + $0x18] sm:$0xff]  ;;  %v4511_v24 = vld [vmem:[%s5804_s16 + $0x60] sm:$0xff]  ;;  %v4548_v25 = vld [vmem:[#allocation10 + $0x88] sm:$0xff]  ;;  %s6199_s11 = sld [smem:[#allocation3 + %s7842_s3]] }
  0x7c   : > { %v4510_v21 = vld [vmem:[%s5804_s16 + $0x58] sm:$0xff]  ;;  %v4504_v27 = vld [vmem:[%s5804_s16 + $0x28] sm:$0xff]  ;;  %v4547_v29 = vld [vmem:[#allocation10 + $0x80] sm:$0xff]  ;;  %s5373_s3 = scalar_lea.hbm %s7998_s6, 16 }
  0x7d   : > { %726 = vmatpush.bf16.msra.mxu0 %v4520_v3  ;;  %4589 = vmatpush.bf16.msra.mxu2 %v4520_v3  ;;  %v4530_v26 = vld [vmem:[#allocation10 + $0x78] sm:$0xff]  ;;  %v4512_v28 = vld [vmem:[%s5804_s16 + $0x68] sm:$0xff]  ;;  %v4529_v30 = vld [vmem:[#allocation10 + $0x70] sm:$0xff] }
  0x7e   : > { %976 = vmatpush.bf16.msra.mxu1 %v4530_v26  ;;  %4595 = vmatpush.bf16.msra.mxu3 %v4530_v26  ;;  %v4528_v31 = vld [vmem:[#allocation10 + $0x68] sm:$0xff]  ;;  %v4527_v32 = vld [vmem:[#allocation10 + $0x60] sm:$0xff]  ;;  %v4505_v33 = vld [vmem:[%s5804_s16 + $0x30] sm:$0xff] }
  0x7f   : > { %v4513_v34 = vld [vmem:[%s5804_s16 + $0x70] sm:$0xff]  ;;  %v4526_v35 = vld [vmem:[#allocation10 + $0x58] sm:$0xff]  ;;  %v4524_v37 = vld [vmem:[#allocation10 + $0x48] sm:$0xff] }
  0x80   : > { %v4525_v36 = vld [vmem:[#allocation10 + $0x50] sm:$0xff]  ;;  %v4523_v38 = vld [vmem:[#allocation10 + $0x40] sm:$0xff]  ;;  %v4506_v39 = vld [vmem:[%s5804_s16 + $0x38] sm:$0xff] }
  0x81   : > { %727 = vmatpush.bf16.msra.mxu0 %v4519_v4  ;;  %4590 = vmatpush.bf16.msra.mxu2 %v4519_v4  ;;  %v4514_v40 = vld [vmem:[%s5804_s16 + $0x78] sm:$0xff]  ;;  %v4531_v43 = vld [vmem:[%s5810_s7] sm:$0xff]  ;;  %v4561_v52 = vld [vmem:[#allocation10 + $0xf0] sm:$0xff] }
  0x82   : > { %977 = vmatpush.bf16.msra.mxu1 %v4529_v30  ;;  %4596 = vmatpush.bf16.msra.mxu3 %v4529_v30  ;;  %v4562_v41 = vld [vmem:[#allocation10 + $0xf8] sm:$0xff]  ;;  %v4563_v44 = vld [vmem:[%s5816_s9] sm:$0xff]  ;;  %v4585_v56 = vld [vmem:[%s5823_s30 + $0x30] sm:$0xff] }
  0x83   : > { %v4586_v42 = vld [vmem:[%s5823_s30 + $0x38] sm:$0xff]  ;;  %v5864_v46 = vld [vmem:[%s7841_s24] ss:$0 sm:$0xff]  ;;  %v4532_v62 = vld [vmem:[%s5810_s7 + $0x8] sm:$0xff] }
  0x84   : > { %v4564_v63 = vld [vmem:[%s5816_s9 + $0x8] sm:$0xff] }
  0x85   : > { %728 = vmatpush.bf16.msra.mxu0 %v4518_v5  ;;  %4591 = vmatpush.bf16.msra.mxu2 %v4518_v5 }
  0x86   : > { %978 = vmatpush.bf16.msra.mxu1 %v4528_v31  ;;  %4597 = vmatpush.bf16.msra.mxu3 %v4528_v31 }
  0x89   : > { %729 = vmatpush.bf16.msra.mxu0 %v4517_v6  ;;  %4592 = vmatpush.bf16.msra.mxu2 %v4517_v6 }
  0x8a   : > { %979 = vmatpush.bf16.msra.mxu1 %v4527_v32  ;;  %4598 = vmatpush.bf16.msra.mxu3 %v4527_v32  ;;  %v4559_v32 = vld [vmem:[#allocation10 + $0xe0] sm:$0xff] }
  0x8d   : > { %730 = vmatpush.bf16.msra.mxu0 %v4516_v7  ;;  %4593 = vmatpush.bf16.msra.mxu2 %v4516_v7 }
  0x8e   : > { %980 = vmatpush.bf16.msra.mxu1 %v4526_v35  ;;  %4599 = vmatpush.bf16.msra.mxu3 %v4526_v35 }
  0x91   : > { %731 = vmatpush.bf16.msra.mxu0 %v4515_v8  ;;  %4594 = vmatpush.bf16.msra.mxu2 %v4515_v8 }
  0x92   : > { %981 = vmatpush.bf16.msra.mxu1 %v4525_v36  ;;  %4600 = vmatpush.bf16.msra.mxu3 %v4525_v36  ;;  %v4583_v36 = vld [vmem:[%s5823_s30 + $0x20] sm:$0xff] }
  0x94   : > { %732 = vmatmul.bf16.vlgmr.msra.gmra.mxu0 %v4499_v10  ;;  %772 = vmatmul.bf16.vlgmr.msra.gmra.mxu2 %v4507_v11  ;;  %v4560_v10 = vld [vmem:[#allocation10 + $0xe8] sm:$0xff] }
  0x95   : > { %1282 = vmatpush.bf16.msrb.mxu2 %v4554_v9  ;;  %1768 = vmatpush.bf16.msrb.mxu0 %v4554_v9 }
  0x96   : > { %982 = vmatpush.bf16.msra.mxu1 %v4524_v37  ;;  %4601 = vmatpush.bf16.msra.mxu3 %v4524_v37 }
  0x99   : > { %1283 = vmatpush.bf16.msrb.mxu2 %v4553_v12  ;;  %1769 = vmatpush.bf16.msrb.mxu0 %v4553_v12 }
  0x9a   : > { %983 = vmatpush.bf16.msra.mxu1 %v4523_v38  ;;  %4602 = vmatpush.bf16.msra.mxu3 %v4523_v38 }
  0x9d   : > { %1284 = vmatpush.bf16.msrb.mxu2 %v4552_v13  ;;  %1770 = vmatpush.bf16.msrb.mxu0 %v4552_v13 }
  0x9e   : > { %1534 = vmatpush.bf16.msrb.mxu3 %v4562_v41  ;;  %2020 = vmatpush.bf16.msrb.mxu1 %v4586_v42  ;;  %v4534_v42 = vld [vmem:[%s5810_s7 + $0x18] sm:$0xff] }
  0xa1   : > { %1285 = vmatpush.bf16.msrb.mxu2 %v4551_v16  ;;  %1771 = vmatpush.bf16.msrb.mxu0 %v4551_v16 }
  0xa2   : > { %1535 = vmatpush.bf16.msrb.mxu3 %v4561_v52  ;;  %2021 = vmatpush.bf16.msrb.mxu1 %v4585_v56 }
  0xa4   : > { %737 = vmatmul.bf16.gmra.mxu0 %v4500_v14  ;;  %777 = vmatmul.bf16.gmra.mxu2 %v4508_v15  ;;  %v4584_v14 = vld [vmem:[%s5823_s30 + $0x28] sm:$0xff] }
  0xa5   : > { %1286 = vmatpush.bf16.msrb.mxu2 %v4550_v19  ;;  %1772 = vmatpush.bf16.msrb.mxu0 %v4550_v19 }
  0xa6   : > { %1536 = vmatpush.bf16.msrb.mxu3 %v4560_v10  ;;  %2022 = vmatpush.bf16.msrb.mxu1 %v4584_v14 }
  0xa9   : > { %1287 = vmatpush.bf16.msrb.mxu2 %v4549_v22  ;;  %1773 = vmatpush.bf16.msrb.mxu0 %v4549_v22 }
  0xaa   : > { %1537 = vmatpush.bf16.msrb.mxu3 %v4559_v32  ;;  %2023 = vmatpush.bf16.msrb.mxu1 %v4583_v36 }
  0xad   : > { %1288 = vmatpush.bf16.msrb.mxu2 %v4548_v25  ;;  %1774 = vmatpush.bf16.msrb.mxu0 %v4548_v25 }
  0xb1   : > { %1289 = vmatpush.bf16.msrb.mxu2 %v4547_v29  ;;  %1775 = vmatpush.bf16.msrb.mxu0 %v4547_v29 }
  0xb4   : > { %742 = vmatmul.bf16.gmra.mxu0 %v4501_v17  ;;  %782 = vmatmul.bf16.gmra.mxu2 %v4509_v18 }
  0xc4   : > { %747 = vmatmul.bf16.gmra.mxu0 %v4502_v20  ;;  %787 = vmatmul.bf16.gmra.mxu2 %v4510_v21  ;;  %v4533_v20 = vld [vmem:[%s5810_s7 + $0x10] sm:$0xff] }
  0xc5   : > { %v4565_v21 = vld [vmem:[%s5816_s9 + $0x10] sm:$0xff] }
  0xd4   : > { %752 = vmatmul.bf16.gmra.mxu0 %v4503_v23  ;;  %792 = vmatmul.bf16.gmra.mxu2 %v4511_v24 }
  0xe4   : > { %757 = vmatmul.bf16.gmra.mxu0 %v4504_v27  ;;  %797 = vmatmul.bf16.gmra.mxu2 %v4512_v28 }
  0xf4   : > { %762 = vmatmul.bf16.gmra.mxu0 %v4505_v33  ;;  %802 = vmatmul.bf16.gmra.mxu2 %v4513_v34 }
 0x104   : > { %767 = vmatmul.bf16.gmra.mxu0 %v4506_v39  ;;  %807 = vmatmul.bf16.gmra.mxu2 %v4514_v40 }
 0x111   : > { %v733_v45 = vpop.f32.mrf.mxu0 }
 0x112   : > { %v734_v47 = vadd.f32 %v5864_v46, %v733_v45 }
 0x114   : > { %1290 = vmatmul.bf16.vlgmr.msrb.gmra.mxu2 %v4531_v43  ;;  %1776 = vmatmul.bf16.vlgmr.msrb.gmra.mxu0 %v4563_v44  ;;  %v845_v49 = vmul.f32 0.01, %v734_v47  ;;  %vm813_vm0 = vcmp.gt.f32.partialorder %v734_v47, 0.0  ;;  %v4566_v43 = vld [vmem:[%s5816_s9 + $0x18] sm:$0xff] }
 0x116   : > { %v877_v55 = vsel %vm813_vm0, %v734_v47, %v845_v49 }
 0x117   : > { %v773_v48 = vpop.f32.mrf.mxu2 }
 0x118   : > { %v774_v53 = vadd.f32 %v5864_v46, %v773_v48 }
 0x119   : > { %v735_v50 = vpop.f32.mrf.mxu0 }
 0x11a   : > { %v736_v51 = vadd.f32 %v5864_v46, %v735_v50  ;;  %v861_v60 = vmul.f32 0.01, %v774_v53  ;;  %vm829_vm2 = vcmp.gt.f32.partialorder %v774_v53, 0.0 }
 0x11c   : > { %v846_v54 = vmul.f32 0.01, %v736_v51  ;;  %vm814_vm1 = vcmp.gt.f32.partialorder %v736_v51, 0.0  ;;  %v893_v3 = vsel %vm829_vm2, %v774_v53, %v861_v60 }
 0x11e   : > { %v878_v57 = vsel %vm814_vm1, %v736_v51, %v846_v54 }
 0x11f   : > { %v775_v58 = vpop.f32.mrf.mxu2  ;;  %v909_v59 = vpack.c.bf16 %v878_v57, %v877_v55  ;;  %v4558_v55 = vld [vmem:[#allocation10 + $0xd8] sm:$0xff] }
 0x120   : > { %v776_v61 = vadd.f32 %v5864_v46, %v775_v58  ;;  %1538 = vmatpush.bf16.msrb.mxu3 %v4558_v55 }
 0x121   : > { %v738_v0 = vpop.f32.mrf.mxu0  ;;  %984 = vmatmul.bf16.vlgmr.msra.gmra.mxu1 %v909_v59  ;;  %v4582_v59 = vld [vmem:[%s5823_s30 + $0x18] sm:$0xff] }
 0x122   : > { %v862_v1 = vmul.f32 0.01, %v776_v61  ;;  %vm830_vm3 = vcmp.gt.f32.partialorder %v776_v61, 0.0  ;;  %v739_v2 = vadd.f32 %v5864_v46, %v738_v0  ;;  %2024 = vmatpush.bf16.msrb.mxu1 %v4582_v59 }
 0x124   : > { %1295 = vmatmul.bf16.gmra.mxu2 %v4532_v62  ;;  %1781 = vmatmul.bf16.gmra.mxu0 %v4564_v63  ;;  %v894_v4 = vsel %vm830_vm3, %v776_v61, %v862_v1  ;;  %v847_v7 = vmul.f32 0.01, %v739_v2  ;;  %vm815_vm4 = vcmp.gt.f32.partialorder %v739_v2, 0.0  ;;  %v4535_v1 = vld [vmem:[%s5810_s7 + $0x20] sm:$0xff] }
 0x125   : > { %v917_v5 = vpack.c.bf16 %v894_v4, %v893_v3 }
 0x126   : > { %v879_v13 = vsel %vm815_vm4, %v739_v2, %v847_v7  ;;  %v4567_v2 = vld [vmem:[%s5816_s9 + $0x20] sm:$0xff] }
 0x127   : > { %v778_v6 = vpop.f32.mrf.mxu2  ;;  %1024 = vmatmul.bf16.vlgmr.msra.gmra.mxu3 %v917_v5 }
 0x128   : > { %v779_v11 = vadd.f32 %v5864_v46, %v778_v6 }
 0x129   : > { %v740_v8 = vpop.f32.mrf.mxu0 }
 0x12a   : > { %v741_v9 = vadd.f32 %v5864_v46, %v740_v8  ;;  %v863_v18 = vmul.f32 0.01, %v779_v11  ;;  %vm831_vm6 = vcmp.gt.f32.partialorder %v779_v11, 0.0 }
 0x12c   : > { %v848_v12 = vmul.f32 0.01, %v741_v9  ;;  %vm816_vm5 = vcmp.gt.f32.partialorder %v741_v9, 0.0  ;;  %v895_v25 = vsel %vm831_vm6, %v779_v11, %v863_v18 }
 0x12e   : > { %v880_v15 = vsel %vm816_vm5, %v741_v9, %v848_v12 }
 0x12f   : > { %v780_v16 = vpop.f32.mrf.mxu2  ;;  %v910_v17 = vpack.c.bf16 %v880_v15, %v879_v13  ;;  %v4557_v13 = vld [vmem:[#allocation10 + $0xd0] sm:$0xff] }
 0x130   : > { %v781_v19 = vadd.f32 %v5864_v46, %v780_v16  ;;  %1539 = vmatpush.bf16.msrb.mxu3 %v4557_v13 }
 0x131   : > { %v743_v22 = vpop.f32.mrf.mxu0  ;;  %989 = vmatmul.bf16.gmra.mxu1 %v910_v17  ;;  %v4581_v17 = vld [vmem:[%s5823_s30 + $0x10] sm:$0xff] }
 0x132   : > { %v864_v23 = vmul.f32 0.01, %v781_v19  ;;  %vm832_vm7 = vcmp.gt.f32.partialorder %v781_v19, 0.0  ;;  %v744_v24 = vadd.f32 %v5864_v46, %v743_v22  ;;  %2025 = vmatpush.bf16.msrb.mxu1 %v4581_v17 }
 0x134   : > { %1300 = vmatmul.bf16.gmra.mxu2 %v4533_v20  ;;  %1786 = vmatmul.bf16.gmra.mxu0 %v4565_v21  ;;  %v896_v26 = vsel %vm832_vm7, %v781_v19, %v864_v23  ;;  %v849_v29 = vmul.f32 0.01, %v744_v24  ;;  %vm817_vm8 = vcmp.gt.f32.partialorder %v744_v24, 0.0  ;;  %v4536_v23 = vld [vmem:[%s5810_s7 + $0x28] sm:$0xff] }
 0x135   : > { %v918_v27 = vpack.c.bf16 %v896_v26, %v895_v25 }
 0x136   : > { %v881_v35 = vsel %vm817_vm8, %v744_v24, %v849_v29  ;;  %v4568_v24 = vld [vmem:[%s5816_s9 + $0x28] sm:$0xff] }
 0x137   : > { %v783_v28 = vpop.f32.mrf.mxu2  ;;  %1029 = vmatmul.bf16.gmra.mxu3 %v918_v27 }
 0x138   : > { %v784_v33 = vadd.f32 %v5864_v46, %v783_v28 }
 0x139   : > { %v745_v30 = vpop.f32.mrf.mxu0 }
 0x13a   : > { %v746_v31 = vadd.f32 %v5864_v46, %v745_v30  ;;  %v865_v40 = vmul.f32 0.01, %v784_v33  ;;  %vm833_vm10 = vcmp.gt.f32.partialorder %v784_v33, 0.0 }
 0x13c   : > { %v850_v34 = vmul.f32 0.01, %v746_v31  ;;  %vm818_vm9 = vcmp.gt.f32.partialorder %v746_v31, 0.0  ;;  %v897_v48 = vsel %vm833_vm10, %v784_v33, %v865_v40 }
 0x13e   : > { %v882_v37 = vsel %vm818_vm9, %v746_v31, %v850_v34 }
 0x13f   : > { %v785_v38 = vpop.f32.mrf.mxu2  ;;  %v911_v39 = vpack.c.bf16 %v882_v37, %v881_v35  ;;  %v4556_v35 = vld [vmem:[#allocation10 + $0xc8] sm:$0xff] }
 0x140   : > { %v786_v41 = vadd.f32 %v5864_v46, %v785_v38  ;;  %1540 = vmatpush.bf16.msrb.mxu3 %v4556_v35 }
 0x141   : > { %v748_v44 = vpop.f32.mrf.mxu0  ;;  %994 = vmatmul.bf16.gmra.mxu1 %v911_v39  ;;  %v4580_v39 = vld [vmem:[%s5823_s30 + $0x8] sm:$0xff] }
 0x142   : > { %v866_v45 = vmul.f32 0.01, %v786_v41  ;;  %vm834_vm11 = vcmp.gt.f32.partialorder %v786_v41, 0.0  ;;  %v749_v47 = vadd.f32 %v5864_v46, %v748_v44  ;;  %2026 = vmatpush.bf16.msrb.mxu1 %v4580_v39 }
 0x144   : > { %1305 = vmatmul.bf16.gmra.mxu2 %v4534_v42  ;;  %1791 = vmatmul.bf16.gmra.mxu0 %v4566_v43  ;;  %v898_v49 = vsel %vm834_vm11, %v786_v41, %v866_v45  ;;  %v851_v52 = vmul.f32 0.01, %v749_v47  ;;  %vm819_vm12 = vcmp.gt.f32.partialorder %v749_v47, 0.0  ;;  %v4537_v45 = vld [vmem:[%s5810_s7 + $0x30] sm:$0xff] }
 0x145   : > { %v919_v50 = vpack.c.bf16 %v898_v49, %v897_v48 }
 0x146   : > { %v883_v58 = vsel %vm819_vm12, %v749_v47, %v851_v52  ;;  %v4569_v47 = vld [vmem:[%s5816_s9 + $0x30] sm:$0xff] }
 0x147   : > { %v788_v51 = vpop.f32.mrf.mxu2  ;;  %1034 = vmatmul.bf16.gmra.mxu3 %v919_v50 }
 0x148   : > { %v789_v56 = vadd.f32 %v5864_v46, %v788_v51 }
 0x149   : > { %v750_v53 = vpop.f32.mrf.mxu0 }
 0x14a   : > { %v751_v54 = vadd.f32 %v5864_v46, %v750_v53  ;;  %v867_v63 = vmul.f32 0.01, %v789_v56  ;;  %vm835_vm14 = vcmp.gt.f32.partialorder %v789_v56, 0.0 }
 0x14c   : > { %v852_v57 = vmul.f32 0.01, %v751_v54  ;;  %vm820_vm13 = vcmp.gt.f32.partialorder %v751_v54, 0.0  ;;  %v899_v6 = vsel %vm835_vm14, %v789_v56, %v867_v63 }
 0x14e   : > { %v884_v60 = vsel %vm820_vm13, %v751_v54, %v852_v57 }
 0x14f   : > { %v790_v61 = vpop.f32.mrf.mxu2  ;;  %v912_v62 = vpack.c.bf16 %v884_v60, %v883_v58  ;;  %v4555_v58 = vld [vmem:[#allocation10 + $0xc0] sm:$0xff] }
 0x150   : > { %v791_v0 = vadd.f32 %v5864_v46, %v790_v61  ;;  %1541 = vmatpush.bf16.msrb.mxu3 %v4555_v58 }
 0x151   : > { %v753_v3 = vpop.f32.mrf.mxu0  ;;  %999 = vmatmul.bf16.gmra.mxu1 %v912_v62  ;;  %v4579_v62 = vld [vmem:[%s5823_s30] sm:$0xff]  ;;  %s7995_s30 = sld [smem:[#allocation27_spill]] }
 0x152   : > { %v868_v4 = vmul.f32 0.01, %v791_v0  ;;  %vm836_vm15 = vcmp.gt.f32.partialorder %v791_v0, 0.0  ;;  %v754_v5 = vadd.f32 %v5864_v46, %v753_v3  ;;  %2027 = vmatpush.bf16.msrb.mxu1 %v4579_v62 }
 0x154   : > { %1310 = vmatmul.bf16.gmra.mxu2 %v4535_v1  ;;  %1796 = vmatmul.bf16.gmra.mxu0 %v4567_v2  ;;  %v900_v7 = vsel %vm836_vm15, %v791_v0, %v868_v4  ;;  %v853_v10 = vmul.f32 0.01, %v754_v5  ;;  %vm821_vm0 = vcmp.gt.f32.partialorder %v754_v5, 0.0  ;;  %v4538_v4 = vld [vmem:[%s5810_s7 + $0x38] sm:$0xff] }
 0x155   : > { %v920_v8 = vpack.c.bf16 %v900_v7, %v899_v6 }
 0x156   : > { %v885_v16 = vsel %vm821_vm0, %v754_v5, %v853_v10  ;;  %v4570_v5 = vld [vmem:[%s5816_s9 + $0x38] sm:$0xff] }
 0x157   : > { %v793_v9 = vpop.f32.mrf.mxu2  ;;  %1039 = vmatmul.bf16.gmra.mxu3 %v920_v8 }
 0x158   : > { %v794_v14 = vadd.f32 %v5864_v46, %v793_v9 }
 0x159   : > { %v755_v11 = vpop.f32.mrf.mxu0 }
 0x15a   : > { %v756_v12 = vadd.f32 %v5864_v46, %v755_v11  ;;  %v869_v21 = vmul.f32 0.01, %v794_v14  ;;  %vm837_vm2 = vcmp.gt.f32.partialorder %v794_v14, 0.0 }
 0x15c   : > { %v854_v15 = vmul.f32 0.01, %v756_v12  ;;  %vm822_vm1 = vcmp.gt.f32.partialorder %v756_v12, 0.0  ;;  %v901_v28 = vsel %vm837_vm2, %v794_v14, %v869_v21 }
 0x15e   : > { %v886_v18 = vsel %vm822_vm1, %v756_v12, %v854_v15 }
 0x15f   : > { %v795_v19 = vpop.f32.mrf.mxu2  ;;  %v913_v20 = vpack.c.bf16 %v886_v18, %v885_v16 }
 0x160   : > { %v796_v22 = vadd.f32 %v5864_v46, %v795_v19 }
 0x161   : > { %v758_v25 = vpop.f32.mrf.mxu0  ;;  %1004 = vmatmul.bf16.gmra.mxu1 %v913_v20 }
 0x162   : > { %v870_v26 = vmul.f32 0.01, %v796_v22  ;;  %vm838_vm3 = vcmp.gt.f32.partialorder %v796_v22, 0.0  ;;  %v759_v27 = vadd.f32 %v5864_v46, %v758_v25  ;;  %v4571_v25 = vld [vmem:[%s5816_s9 + $0x40] sm:$0xff] }
 0x164   : > { %1315 = vmatmul.bf16.gmra.mxu2 %v4536_v23  ;;  %1801 = vmatmul.bf16.gmra.mxu0 %v4568_v24  ;;  %v902_v29 = vsel %vm838_vm3, %v796_v22, %v870_v26  ;;  %v855_v32 = vmul.f32 0.01, %v759_v27  ;;  %vm823_vm4 = vcmp.gt.f32.partialorder %v759_v27, 0.0  ;;  %v4539_v24 = vld [vmem:[%s5810_s7 + $0x40] sm:$0xff] }
 0x165   : > { %v921_v30 = vpack.c.bf16 %v902_v29, %v901_v28  ;;  %v5924_v28 = vld [vmem:[%s7841_s24 + $0x2] ss:$0 sm:$0xff] }
 0x166   : > { %v887_v38 = vsel %vm823_vm4, %v759_v27, %v855_v32 }
 0x167   : > { %v798_v31 = vpop.f32.mrf.mxu2  ;;  %1044 = vmatmul.bf16.gmra.mxu3 %v921_v30 }
 0x168   : > { %v799_v36 = vadd.f32 %v5864_v46, %v798_v31 }
 0x169   : > { %v760_v33 = vpop.f32.mrf.mxu0 }
 0x16a   : > { %v761_v34 = vadd.f32 %v5864_v46, %v760_v33  ;;  %v871_v43 = vmul.f32 0.01, %v799_v36  ;;  %vm839_vm6 = vcmp.gt.f32.partialorder %v799_v36, 0.0 }
 0x16c   : > { %v856_v37 = vmul.f32 0.01, %v761_v34  ;;  %vm824_vm5 = vcmp.gt.f32.partialorder %v761_v34, 0.0  ;;  %v903_v51 = vsel %vm839_vm6, %v799_v36, %v871_v43 }
 0x16e   : > { %v888_v40 = vsel %vm824_vm5, %v761_v34, %v856_v37 }
 0x16f   : > { %v800_v41 = vpop.f32.mrf.mxu2  ;;  %v914_v42 = vpack.c.bf16 %v888_v40, %v887_v38 }
 0x170   : > { %v801_v44 = vadd.f32 %v5864_v46, %v800_v41 }
 0x171   : > { %v763_v48 = vpop.f32.mrf.mxu0  ;;  %1009 = vmatmul.bf16.gmra.mxu1 %v914_v42 }
 0x172   : > { %v872_v49 = vmul.f32 0.01, %v801_v44  ;;  %vm840_vm7 = vcmp.gt.f32.partialorder %v801_v44, 0.0  ;;  %v764_v50 = vadd.f32 %v5864_v46, %v763_v48 }
 0x174   : > { %1320 = vmatmul.bf16.gmra.mxu2 %v4537_v45  ;;  %1806 = vmatmul.bf16.gmra.mxu0 %v4569_v47  ;;  %v904_v52 = vsel %vm840_vm7, %v801_v44, %v872_v49  ;;  %v857_v55 = vmul.f32 0.01, %v764_v50  ;;  %vm825_vm8 = vcmp.gt.f32.partialorder %v764_v50, 0.0  ;;  %v4540_v45 = vld [vmem:[%s5810_s7 + $0x48] sm:$0xff] }
 0x175   : > { %v922_v53 = vpack.c.bf16 %v904_v52, %v903_v51  ;;  %v4572_v47 = vld [vmem:[%s5816_s9 + $0x48] sm:$0xff] }
 0x176   : > { %v889_v61 = vsel %vm825_vm8, %v764_v50, %v857_v55 }
 0x177   : > { %v803_v54 = vpop.f32.mrf.mxu2  ;;  %1049 = vmatmul.bf16.gmra.mxu3 %v922_v53 }
 0x178   : > { %v804_v59 = vadd.f32 %v5864_v46, %v803_v54 }
 0x179   : > { %v765_v56 = vpop.f32.mrf.mxu0 }
 0x17a   : > { %v766_v57 = vadd.f32 %v5864_v46, %v765_v56  ;;  %v873_v2 = vmul.f32 0.01, %v804_v59  ;;  %vm841_vm10 = vcmp.gt.f32.partialorder %v804_v59, 0.0 }
 0x17c   : > { %v858_v60 = vmul.f32 0.01, %v766_v57  ;;  %vm826_vm9 = vcmp.gt.f32.partialorder %v766_v57, 0.0  ;;  %v905_v9 = vsel %vm841_vm10, %v804_v59, %v873_v2 }
 0x17e   : > { %v890_v63 = vsel %vm826_vm9, %v766_v57, %v858_v60 }
 0x17f   : > { %v805_v0 = vpop.f32.mrf.mxu2  ;;  %v915_v1 = vpack.c.bf16 %v890_v63, %v889_v61 }
 0x180   : > { %v806_v3 = vadd.f32 %v5864_v46, %v805_v0 }
 0x181   : > { %v768_v6 = vpop.f32.mrf.mxu0  ;;  %1014 = vmatmul.bf16.gmra.mxu1 %v915_v1 }
 0x182   : > { %v874_v7 = vmul.f32 0.01, %v806_v3  ;;  %vm842_vm11 = vcmp.gt.f32.partialorder %v806_v3, 0.0  ;;  %v769_v8 = vadd.f32 %v5864_v46, %v768_v6  ;;  %v4573_v6 = vld [vmem:[%s5816_s9 + $0x50] sm:$0xff] }
 0x184   : > { %1325 = vmatmul.bf16.gmra.mxu2 %v4538_v4  ;;  %1811 = vmatmul.bf16.gmra.mxu0 %v4570_v5  ;;  %v906_v10 = vsel %vm842_vm11, %v806_v3, %v874_v7  ;;  %v859_v13 = vmul.f32 0.01, %v769_v8  ;;  %vm827_vm12 = vcmp.gt.f32.partialorder %v769_v8, 0.0  ;;  %v4541_v5 = vld [vmem:[%s5810_s7 + $0x50] sm:$0xff] }
 0x185   : > { %v923_v11 = vpack.c.bf16 %v906_v10, %v905_v9 }
 0x186   : > { %v891_v18 = vsel %vm827_vm12, %v769_v8, %v859_v13 }
 0x187   : > { %v808_v12 = vpop.f32.mrf.mxu2  ;;  %1054 = vmatmul.bf16.gmra.mxu3 %v923_v11 }
 0x188   : > { %v809_v16 = vadd.f32 %v5864_v46, %v808_v12 }
 0x189   : > { %v770_v14 = vpop.f32.mrf.mxu0 }
 0x18a   : > { %v771_v15 = vadd.f32 %v5864_v46, %v770_v14  ;;  %v875_v22 = vmul.f32 0.01, %v809_v16  ;;  %vm843_vm14 = vcmp.gt.f32.partialorder %v809_v16, 0.0 }
 0x18c   : > { %v860_v17 = vmul.f32 0.01, %v771_v15  ;;  %vm828_vm13 = vcmp.gt.f32.partialorder %v771_v15, 0.0  ;;  %v907_v30 = vsel %vm843_vm14, %v809_v16, %v875_v22 }
 0x18e   : > { %v892_v19 = vsel %vm828_vm13, %v771_v15, %v860_v17 }
 0x18f   : > { %v810_v20 = vpop.f32.mrf.mxu2  ;;  %v916_v21 = vpack.c.bf16 %v892_v19, %v891_v18 }
 0x190   : > { %v811_v23 = vadd.f32 %v5864_v46, %v810_v20 }
 0x191   : > { %1019 = vmatmul.bf16.gmra.mxu1 %v916_v21  ;;  %v1777_v26 = vpop.f32.mrf.mxu0 }
 0x192   : > { %v876_v27 = vmul.f32 0.01, %v811_v23  ;;  %vm844_vm15 = vcmp.gt.f32.partialorder %v811_v23, 0.0  ;;  %v1778_v29 = vadd.f32 %v5924_v28, %v1777_v26 }
 0x194   : > { %1330 = vmatmul.bf16.gmra.mxu2 %v4539_v24  ;;  %1816 = vmatmul.bf16.gmra.mxu0 %v4571_v25  ;;  %v908_v31 = vsel %vm844_vm15, %v811_v23, %v876_v27  ;;  %v1889_v33 = vmul.f32 0.01, %v1778_v29  ;;  %vm1857_vm0 = vcmp.gt.f32.partialorder %v1778_v29, 0.0 }
 0x195   : > { %v924_v32 = vpack.c.bf16 %v908_v31, %v907_v30  ;;  %v4542_v30 = vld [vmem:[%s5810_s7 + $0x58] sm:$0xff] }
 0x196   : > { %v1921_v38 = vsel %vm1857_vm0, %v1778_v29, %v1889_v33  ;;  %v4574_v31 = vld [vmem:[%s5816_s9 + $0x58] sm:$0xff] }
 0x197   : > { %1059 = vmatmul.bf16.gmra.mxu3 %v924_v32  ;;  %v1291_v46 = vpop.f32.mrf.mxu2 }
 0x198   : > { %v1292_v36 = vadd.f32 %v5924_v28, %v1291_v46 }
 0x199   : > { %v1779_v34 = vpop.f32.mrf.mxu0 }
 0x19a   : > { %v1780_v35 = vadd.f32 %v5924_v28, %v1779_v34  ;;  %v1403_v43 = vmul.f32 0.01, %v1292_v36  ;;  %vm1371_vm2 = vcmp.gt.f32.partialorder %v1292_v36, 0.0 }
 0x19c   : > { %vm1858_vm1 = vcmp.gt.f32.partialorder %v1780_v35, 0.0  ;;  %v1890_v37 = vmul.f32 0.01, %v1780_v35  ;;  %v1435_v51 = vsel %vm1371_vm2, %v1292_v36, %v1403_v43 }
 0x19e   : > { %v5929_v39 = vpop.f32.mrf.mxu1  ;;  %v1922_v40 = vsel %vm1858_vm1, %v1780_v35, %v1890_v37 }
 0x19f   : > { %v1293_v41 = vpop.f32.mrf.mxu2  ;;  %v1953_v42 = vpack.c.bf16 %v1922_v40, %v1921_v38 }
 0x1a0   : > { %v1294_v44 = vadd.f32 %v5924_v28, %v1293_v41 }
 0x1a1   : > { %v1782_v48 = vpop.f32.mrf.mxu0  ;;  %2028 = vmatmul.bf16.vlgmr.msrb.gmra.mxu1 %v1953_v42 }
 0x1a2   : > { %vm1372_vm3 = vcmp.gt.f32.partialorder %v1294_v44, 0.0  ;;  %v1404_v49 = vmul.f32 0.01, %v1294_v44  ;;  %v1783_v50 = vadd.f32 %v5924_v28, %v1782_v48 }
 0x1a4   : > { %1335 = vmatmul.bf16.gmra.mxu2 %v4540_v45  ;;  %1821 = vmatmul.bf16.gmra.mxu0 %v4572_v47  ;;  %v1436_v52 = vsel %vm1372_vm3, %v1294_v44, %v1404_v49  ;;  %v1891_v56 = vmul.f32 0.01, %v1783_v50  ;;  %vm1859_vm4 = vcmp.gt.f32.partialorder %v1783_v50, 0.0 }
 0x1a5   : > { %v1467_v53 = vpack.c.bf16 %v1436_v52, %v1435_v51 }
 0x1a6   : > { %v5935_v54 = vpop.f32.mrf.mxu1  ;;  %v1923_v62 = vsel %vm1859_vm4, %v1783_v50, %v1891_v56  ;;  %v4543_v56 = vld [vmem:[%s5810_s7 + $0x60] sm:$0xff] }
 0x1a7   : > { %v1296_v55 = vpop.f32.mrf.mxu2  ;;  %1542 = vmatmul.bf16.vlgmr.msrb.gmra.mxu3 %v1467_v53 }
 0x1a8   : > { %v1297_v60 = vadd.f32 %v5924_v28, %v1296_v55 }
 0x1a9   : > { %v1784_v57 = vpop.f32.mrf.mxu0 }
 0x1aa   : > { %v1785_v58 = vadd.f32 %v5924_v28, %v1784_v57  ;;  %v5938_v59 = vpop.f32.mrf.mxu3  ;;  %v1405_v3 = vmul.f32 0.01, %v1297_v60  ;;  %vm1373_vm6 = vcmp.gt.f32.partialorder %v1297_v60, 0.0  ;;  %v4575_v57 = vld [vmem:[%s5816_s9 + $0x60] sm:$0xff] }
 0x1ac   : > { %v1892_v61 = vmul.f32 0.01, %v1785_v58  ;;  %vm1860_vm5 = vcmp.gt.f32.partialorder %v1785_v58, 0.0  ;;  %v1437_v11 = vsel %vm1373_vm6, %v1297_v60, %v1405_v3 }
 0x1ae   : > { %v5941_v63 = vpop.f32.mrf.mxu1  ;;  %v1924_v0 = vsel %vm1860_vm5, %v1785_v58, %v1892_v61 }
 0x1af   : > { %v1298_v1 = vpop.f32.mrf.mxu2  ;;  %v1954_v2 = vpack.c.bf16 %v1924_v0, %v1923_v62 }
 0x1b0   : > { %v1299_v4 = vadd.f32 %v5924_v28, %v1298_v1 }
 0x1b1   : > { %v1787_v7 = vpop.f32.mrf.mxu0  ;;  %2033 = vmatmul.bf16.gmra.mxu1 %v1954_v2 }
 0x1b2   : > { %v1406_v8 = vmul.f32 0.01, %v1299_v4  ;;  %v5946_v9 = vpop.f32.mrf.mxu3  ;;  %vm1374_vm7 = vcmp.gt.f32.partialorder %v1299_v4, 0.0  ;;  %v1788_v10 = vadd.f32 %v5924_v28, %v1787_v7 }
 0x1b4   : > { %1340 = vmatmul.bf16.gmra.mxu2 %v4541_v5  ;;  %1826 = vmatmul.bf16.gmra.mxu0 %v4573_v6  ;;  %v1438_v12 = vsel %vm1374_vm7, %v1299_v4, %v1406_v8  ;;  %v1893_v16 = vmul.f32 0.01, %v1788_v10  ;;  %vm1861_vm8 = vcmp.gt.f32.partialorder %v1788_v10, 0.0 }
 0x1b5   : > { %v1468_v13 = vpack.c.bf16 %v1438_v12, %v1437_v11 }
 0x1b6   : > { %v5949_v14 = vpop.f32.mrf.mxu1  ;;  %v1925_v22 = vsel %vm1861_vm8, %v1788_v10, %v1893_v16 }
 0x1b7   : > { %v1301_v15 = vpop.f32.mrf.mxu2  ;;  %1547 = vmatmul.bf16.gmra.mxu3 %v1468_v13 }
 0x1b8   : > { %v1302_v20 = vadd.f32 %v5924_v28, %v1301_v15 }
 0x1b9   : > { %v1789_v17 = vpop.f32.mrf.mxu0 }
 0x1ba   : > { %v1790_v18 = vadd.f32 %v5924_v28, %v1789_v17  ;;  %v5952_v19 = vpop.f32.mrf.mxu3  ;;  %v1407_v27 = vmul.f32 0.01, %v1302_v20  ;;  %vm1375_vm10 = vcmp.gt.f32.partialorder %v1302_v20, 0.0 }
 0x1bc   : > { %v1894_v21 = vmul.f32 0.01, %v1790_v18  ;;  %vm1862_vm9 = vcmp.gt.f32.partialorder %v1790_v18, 0.0  ;;  %v1439_v35 = vsel %vm1375_vm10, %v1302_v20, %v1407_v27 }
 0x1be   : > { %v5955_v23 = vpop.f32.mrf.mxu1  ;;  %v1926_v24 = vsel %vm1862_vm9, %v1790_v18, %v1894_v21  ;;  %v4544_v21 = vld [vmem:[%s5810_s7 + $0x68] sm:$0xff] }
 0x1bf   : > { %v1303_v25 = vpop.f32.mrf.mxu2  ;;  %v1955_v26 = vpack.c.bf16 %v1926_v24, %v1925_v22  ;;  %v4576_v22 = vld [vmem:[%s5816_s9 + $0x68] sm:$0xff] }
 0x1c0   : > { %v1304_v29 = vadd.f32 %v5924_v28, %v1303_v25 }
 0x1c1   : > { %v1792_v32 = vpop.f32.mrf.mxu0  ;;  %2038 = vmatmul.bf16.gmra.mxu1 %v1955_v26 }
 0x1c2   : > { %v1408_v46 = vmul.f32 0.01, %v1304_v29  ;;  %v5960_v33 = vpop.f32.mrf.mxu3  ;;  %vm1376_vm11 = vcmp.gt.f32.partialorder %v1304_v29, 0.0  ;;  %v1793_v34 = vadd.f32 %v5924_v28, %v1792_v32 }
 0x1c4   : > { %1345 = vmatmul.bf16.gmra.mxu2 %v4542_v30  ;;  %1831 = vmatmul.bf16.gmra.mxu0 %v4574_v31  ;;  %v1440_v36 = vsel %vm1376_vm11, %v1304_v29, %v1408_v46  ;;  %v1895_v41 = vmul.f32 0.01, %v1793_v34  ;;  %vm1863_vm12 = vcmp.gt.f32.partialorder %v1793_v34, 0.0 }
 0x1c5   : > { %v1469_v37 = vpack.c.bf16 %v1440_v36, %v1439_v35 }
 0x1c6   : > { %v5963_v38 = vpop.f32.mrf.mxu1  ;;  %v1927_v48 = vsel %vm1863_vm12, %v1793_v34, %v1895_v41 }
 0x1c7   : > { %v1306_v40 = vpop.f32.mrf.mxu2  ;;  %1552 = vmatmul.bf16.gmra.mxu3 %v1469_v37 }
 0x1c8   : > { %v1307_v45 = vadd.f32 %v5924_v28, %v1306_v40 }
 0x1c9   : > { %v1794_v42 = vpop.f32.mrf.mxu0 }
 0x1ca   : > { %v1795_v43 = vadd.f32 %v5924_v28, %v1794_v42  ;;  %v5966_v44 = vpop.f32.mrf.mxu3  ;;  %v1409_v53 = vmul.f32 0.01, %v1307_v45  ;;  %vm1377_vm14 = vcmp.gt.f32.partialorder %v1307_v45, 0.0 }
 0x1cc   : > { %v1896_v47 = vmul.f32 0.01, %v1795_v43  ;;  %vm1864_vm13 = vcmp.gt.f32.partialorder %v1795_v43, 0.0  ;;  %v1441_v0 = vsel %vm1377_vm14, %v1307_v45, %v1409_v53  ;;  %v4577_v53 = vld [vmem:[%s5816_s9 + $0x70] sm:$0xff] }
 0x1ce   : > { %v5969_v49 = vpop.f32.mrf.mxu1  ;;  %v1928_v50 = vsel %vm1864_vm13, %v1795_v43, %v1896_v47 }
 0x1cf   : > { %v1308_v51 = vpop.f32.mrf.mxu2  ;;  %v1956_v52 = vpack.c.bf16 %v1928_v50, %v1927_v48 }
 0x1d0   : > { %v1309_v55 = vadd.f32 %v5924_v28, %v1308_v51 }
 0x1d1   : > { %v1797_v58 = vpop.f32.mrf.mxu0  ;;  %2043 = vmatmul.bf16.gmra.mxu1 %v1956_v52  ;;  %v4545_v52 = vld [vmem:[%s5810_s7 + $0x70] sm:$0xff] }
 0x1d2   : > { %v1410_v60 = vmul.f32 0.01, %v1309_v55  ;;  %v5974_v61 = vpop.f32.mrf.mxu3  ;;  %vm1378_vm15 = vcmp.gt.f32.partialorder %v1309_v55, 0.0  ;;  %v1798_v62 = vadd.f32 %v5924_v28, %v1797_v58 }
 0x1d4   : > { %1350 = vmatmul.bf16.gmra.mxu2 %v4543_v56  ;;  %1836 = vmatmul.bf16.gmra.mxu0 %v4575_v57  ;;  %v1442_v1 = vsel %vm1378_vm15, %v1309_v55, %v1410_v60  ;;  %v1897_v5 = vmul.f32 0.01, %v1798_v62  ;;  %vm1865_vm0 = vcmp.gt.f32.partialorder %v1798_v62, 0.0 }
 0x1d5   : > { %v1470_v2 = vpack.c.bf16 %v1442_v1, %v1441_v0 }
 0x1d6   : > { %v5977_v3 = vpop.f32.mrf.mxu1  ;;  %v1929_v12 = vsel %vm1865_vm0, %v1798_v62, %v1897_v5 }
 0x1d7   : > { %v1311_v4 = vpop.f32.mrf.mxu2  ;;  %1557 = vmatmul.bf16.gmra.mxu3 %v1470_v2 }
 0x1d8   : > { %v1312_v10 = vadd.f32 %v5924_v28, %v1311_v4 }
 0x1d9   : > { %v1799_v6 = vpop.f32.mrf.mxu0 }
 0x1da   : > { %v1800_v7 = vadd.f32 %v5924_v28, %v1799_v6  ;;  %v5980_v8 = vpop.f32.mrf.mxu3  ;;  %v1411_v18 = vmul.f32 0.01, %v1312_v10  ;;  %vm1379_vm2 = vcmp.gt.f32.partialorder %v1312_v10, 0.0 }
 0x1dc   : > { %vm1866_vm1 = vcmp.gt.f32.partialorder %v1800_v7, 0.0  ;;  %v1898_v11 = vmul.f32 0.01, %v1800_v7  ;;  %v1443_v29 = vsel %vm1379_vm2, %v1312_v10, %v1411_v18 }
 0x1de   : > { %v5983_v13 = vpop.f32.mrf.mxu1  ;;  %v1930_v15 = vsel %vm1866_vm1, %v1800_v7, %v1898_v11 }
 0x1df   : > { %v1313_v16 = vpop.f32.mrf.mxu2  ;;  %v1957_v17 = vpack.c.bf16 %v1930_v15, %v1929_v12 }
 0x1e0   : > { %v1314_v20 = vadd.f32 %v5924_v28, %v1313_v16 }
 0x1e1   : > { %v1802_v24 = vpop.f32.mrf.mxu0  ;;  %2048 = vmatmul.bf16.gmra.mxu1 %v1957_v17 }
 0x1e2   : > { %vm1380_vm3 = vcmp.gt.f32.partialorder %v1314_v20, 0.0  ;;  %v1412_v25 = vmul.f32 0.01, %v1314_v20  ;;  %v5988_v26 = vpop.f32.mrf.mxu3  ;;  %v1803_v27 = vadd.f32 %v5924_v28, %v1802_v24  ;;  %v4578_v24 = vld [vmem:[%s5816_s9 + $0x78] sm:$0xff] }
 0x1e4   : > { %1355 = vmatmul.bf16.gmra.mxu2 %v4544_v21  ;;  %1841 = vmatmul.bf16.gmra.mxu0 %v4576_v22  ;;  %v1444_v30 = vsel %vm1380_vm3, %v1314_v20, %v1412_v25  ;;  %v1899_v34 = vmul.f32 0.01, %v1803_v27  ;;  %vm1867_vm4 = vcmp.gt.f32.partialorder %v1803_v27, 0.0  ;;  %v4546_v22 = vld [vmem:[%s5810_s7 + $0x78] sm:$0xff] }
 0x1e5   : > { %v1471_v31 = vpack.c.bf16 %v1444_v30, %v1443_v29 }
 0x1e6   : > { %v5991_v32 = vpop.f32.mrf.mxu1  ;;  %v1931_v42 = vsel %vm1867_vm4, %v1803_v27, %v1899_v34 }
 0x1e7   : > { %v1316_v46 = vpop.f32.mrf.mxu2  ;;  %1562 = vmatmul.bf16.gmra.mxu3 %v1471_v31 }
 0x1e8   : > { %v1317_v40 = vadd.f32 %v5924_v28, %v1316_v46 }
 0x1e9   : > { %v1804_v35 = vpop.f32.mrf.mxu0 }
 0x1ea   : > { %v1805_v36 = vadd.f32 %v5924_v28, %v1804_v35  ;;  %v5994_v37 = vpop.f32.mrf.mxu3  ;;  %v1413_v50 = vmul.f32 0.01, %v1317_v40  ;;  %vm1381_vm6 = vcmp.gt.f32.partialorder %v1317_v40, 0.0 }
 0x1ec   : > { %vm1868_vm5 = vcmp.gt.f32.partialorder %v1805_v36, 0.0  ;;  %v1900_v41 = vmul.f32 0.01, %v1805_v36  ;;  %v1445_v60 = vsel %vm1381_vm6, %v1317_v40, %v1413_v50 }
 0x1ee   : > { %v5997_v43 = vpop.f32.mrf.mxu1  ;;  %v1932_v45 = vsel %vm1868_vm5, %v1805_v36, %v1900_v41 }
 0x1ef   : > { %v1318_v47 = vpop.f32.mrf.mxu2  ;;  %v1958_v48 = vpack.c.bf16 %v1932_v45, %v1931_v42 }
 0x1f0   : > { %v1319_v51 = vadd.f32 %v5924_v28, %v1318_v47 }
 0x1f1   : > { %v1807_v55 = vpop.f32.mrf.mxu0  ;;  %2053 = vmatmul.bf16.gmra.mxu1 %v1958_v48 }
 0x1f2   : > { %vm1382_vm7 = vcmp.gt.f32.partialorder %v1319_v51, 0.0  ;;  %v1414_v56 = vmul.f32 0.01, %v1319_v51  ;;  %v6002_v57 = vpop.f32.mrf.mxu3  ;;  %v1808_v58 = vadd.f32 %v5924_v28, %v1807_v55 }
 0x1f4   : > { %1360 = vmatmul.bf16.gmra.mxu2 %v4545_v52  ;;  %1846 = vmatmul.bf16.gmra.mxu0 %v4577_v53  ;;  %v1446_v62 = vsel %vm1382_vm7, %v1319_v51, %v1414_v56  ;;  %v1901_v4 = vmul.f32 0.01, %v1808_v58  ;;  %vm1869_vm8 = vcmp.gt.f32.partialorder %v1808_v58, 0.0 }
 0x1f5   : > { %v1472_v0 = vpack.c.bf16 %v1446_v62, %v1445_v60 }
 0x1f6   : > { %v6005_v1 = vpop.f32.mrf.mxu1  ;;  %v1933_v12 = vsel %vm1869_vm8, %v1808_v58, %v1901_v4 }
 0x1f7   : > { %v1321_v2 = vpop.f32.mrf.mxu2  ;;  %1567 = vmatmul.bf16.gmra.mxu3 %v1472_v0 }
 0x1f8   : > { %v1322_v10 = vadd.f32 %v5924_v28, %v1321_v2 }
 0x1f9   : > { %v1809_v5 = vpop.f32.mrf.mxu0 }
 0x1fa   : > { %v1810_v6 = vadd.f32 %v5924_v28, %v1809_v5  ;;  %v6008_v7 = vpop.f32.mrf.mxu3  ;;  %v1415_v20 = vmul.f32 0.01, %v1322_v10  ;;  %vm1383_vm10 = vcmp.gt.f32.partialorder %v1322_v10, 0.0 }
 0x1fc   : > { %vm1870_vm9 = vcmp.gt.f32.partialorder %v1810_v6, 0.0  ;;  %v1902_v11 = vmul.f32 0.01, %v1810_v6  ;;  %v1447_v31 = vsel %vm1383_vm10, %v1322_v10, %v1415_v20  ;;  %v6039_v20 = vld [vmem:[%s7841_s24 + $0x1] ss:$0 sm:$0xff] }
 0x1fe   : > { %v6011_v15 = vpop.f32.mrf.mxu1  ;;  %v1934_v16 = vsel %vm1870_vm9, %v1810_v6, %v1902_v11 }
 0x1ff   : > { %v1323_v17 = vpop.f32.mrf.mxu2  ;;  %v1959_v18 = vpack.c.bf16 %v1934_v16, %v1933_v12 }
 0x200   : > { %v1324_v21 = vadd.f32 %v5924_v28, %v1323_v17 }
 0x201   : > { %v1812_v25 = vpop.f32.mrf.mxu0  ;;  %2058 = vmatmul.bf16.gmra.mxu1 %v1959_v18 }
 0x202   : > { %vm1384_vm11 = vcmp.gt.f32.partialorder %v1324_v21, 0.0  ;;  %v1416_v27 = vmul.f32 0.01, %v1324_v21  ;;  %v6016_v29 = vpop.f32.mrf.mxu3  ;;  %v1813_v30 = vadd.f32 %v5924_v28, %v1812_v25 }
 0x204   : > { %1365 = vmatmul.bf16.gmra.mxu2 %v4546_v22  ;;  %1851 = vmatmul.bf16.gmra.mxu0 %v4578_v24  ;;  %v1448_v46 = vsel %vm1384_vm11, %v1324_v21, %v1416_v27  ;;  %v1903_v40 = vmul.f32 0.01, %v1813_v30  ;;  %vm1871_vm12 = vcmp.gt.f32.partialorder %v1813_v30, 0.0  ;;  %v6042_v21 = vld [vmem:[%s5829_s26] ss:$0 sm:$0xff] }
 0x205   : > { %v1473_v34 = vpack.c.bf16 %v1448_v46, %v1447_v31  ;;  %v986_v31 = vadd.f32 %v6039_v20, %v5929_v39 }
 0x206   : > { %v6019_v35 = vpop.f32.mrf.mxu1  ;;  %v1935_v50 = vsel %vm1871_vm12, %v1813_v30, %v1903_v40 }
 0x207   : > { %v1326_v36 = vpop.f32.mrf.mxu2  ;;  %1572 = vmatmul.bf16.gmra.mxu3 %v1473_v34 }
 0x208   : > { %v1327_v47 = vadd.f32 %v5924_v28, %v1326_v36 }
 0x209   : > { %v1814_v41 = vpop.f32.mrf.mxu0 }
 0x20a   : > { %v1815_v42 = vadd.f32 %v5924_v28, %v1814_v41  ;;  %v6022_v45 = vpop.f32.mrf.mxu3  ;;  %v1417_v56 = vmul.f32 0.01, %v1327_v47  ;;  %vm1385_vm14 = vcmp.gt.f32.partialorder %v1327_v47, 0.0 }
 0x20c   : > { %vm1872_vm13 = vcmp.gt.f32.partialorder %v1815_v42, 0.0  ;;  %v1904_v48 = vmul.f32 0.01, %v1815_v42  ;;  %v1449_v4 = vsel %vm1385_vm14, %v1327_v47, %v1417_v56 }
 0x20e   : > { %v6025_v51 = vpop.f32.mrf.mxu1  ;;  %v1936_v52 = vsel %vm1872_vm13, %v1815_v42, %v1904_v48 }
 0x20f   : > { %v1328_v53 = vpop.f32.mrf.mxu2  ;;  %v1960_v55 = vpack.c.bf16 %v1936_v52, %v1935_v50 }
 0x210   : > { %v1329_v58 = vadd.f32 %v5924_v28, %v1328_v53 }
 0x211   : > { %v1817_v60 = vpop.f32.mrf.mxu0  ;;  %2063 = vmatmul.bf16.gmra.mxu1 %v1960_v55 }
 0x212   : > { %vm1386_vm15 = vcmp.gt.f32.partialorder %v1329_v58, 0.0  ;;  %v1418_v62 = vmul.f32 0.01, %v1329_v58  ;;  %v6028_v0 = vpop.f32.mrf.mxu3  ;;  %v1818_v2 = vadd.f32 %v5924_v28, %v1817_v60 }
 0x214   : > { %v1450_v5 = vsel %vm1386_vm15, %v1329_v58, %v1418_v62  ;;  %v1905_v12 = vmul.f32 0.01, %v1818_v2  ;;  %vm1873_vm0 = vcmp.gt.f32.partialorder %v1818_v2, 0.0  ;;  %v988_v58 = vadd.f32 %v6039_v20, %v5935_v54 }
 0x215   : > { %v1474_v6 = vpack.c.bf16 %v1450_v5, %v1449_v4 }
 0x216   : > { %v6031_v10 = vpop.f32.mrf.mxu1  ;;  %v1937_v25 = vsel %vm1873_vm0, %v1818_v2, %v1905_v12  ;;  %v6058_v2 = vld [vmem:[%s7841_s24 + $0x3] ss:$0 sm:$0xff] }
 0x217   : > { %v1331_v11 = vpop.f32.mrf.mxu2  ;;  %1577 = vmatmul.bf16.gmra.mxu3 %v1474_v6 }
 0x218   : > { %v1332_v22 = vadd.f32 %v5924_v28, %v1331_v11 }
 0x219   : > { %v1819_v16 = vpop.f32.mrf.mxu0 }
 0x21a   : > { %v1820_v17 = vadd.f32 %v5924_v28, %v1819_v16  ;;  %v6034_v18 = vpop.f32.mrf.mxu3  ;;  %v1419_v40 = vmul.f32 0.01, %v1332_v22  ;;  %vm1387_vm2 = vcmp.gt.f32.partialorder %v1332_v22, 0.0 }
 0x21c   : > { %vm1874_vm1 = vcmp.gt.f32.partialorder %v1820_v17, 0.0  ;;  %v1906_v24 = vmul.f32 0.01, %v1820_v17  ;;  %v1451_v53 = vsel %vm1387_vm2, %v1332_v22, %v1419_v40 }
 0x21e   : > { %v2029_v27 = vpop.f32.mrf.mxu1  ;;  %v1938_v30 = vsel %vm1874_vm1, %v1820_v17, %v1906_v24 }
 0x21f   : > { %v2030_v46 = vadd.f32 %v6042_v21, %v2029_v27  ;;  %v1333_v34 = vpop.f32.mrf.mxu2  ;;  %v1961_v36 = vpack.c.bf16 %v1938_v30, %v1937_v25  ;;  %v991_v30 = vadd.f32 %v6039_v20, %v5941_v63 }
 0x220   : > { %v1334_v41 = vadd.f32 %v5924_v28, %v1333_v34 }
 0x221   : > { %v1822_v42 = vpop.f32.mrf.mxu0  ;;  %2068 = vmatmul.bf16.gmra.mxu1 %v1961_v36  ;;  %v2205_v47 = vmul.f32 %v2030_v46, %v986_v31 }
 0x222   : > { %vm1388_vm3 = vcmp.gt.f32.partialorder %v1334_v41, 0.0  ;;  %v1420_v48 = vmul.f32 0.01, %v1334_v41  ;;  %v6049_v50 = vpop.f32.mrf.mxu3  ;;  %v1823_v52 = vadd.f32 %v5924_v28, %v1822_v42 }
 0x223   : > { %2237 = vadd.xlane.f32.xlu1 %v2205_v47 }
 0x224   : > { %v1452_v39 = vsel %vm1388_vm3, %v1334_v41, %v1420_v48  ;;  %v1907_v4 = vmul.f32 0.01, %v1823_v52  ;;  %vm1875_vm4 = vcmp.gt.f32.partialorder %v1823_v52, 0.0 }
 0x225   : > { %v1475_v55 = vpack.c.bf16 %v1452_v39, %v1451_v53 }
 0x226   : > { %v2031_v56 = vpop.f32.mrf.mxu1  ;;  %v1939_v22 = vsel %vm1875_vm4, %v1823_v52, %v1907_v4 }
 0x227   : > { %v2032_v60 = vadd.f32 %v6042_v21, %v2031_v56  ;;  %v1336_v62 = vpop.f32.mrf.mxu2  ;;  %1582 = vmatmul.bf16.gmra.mxu3 %v1475_v55 }
 0x228   : > { %v1337_v54 = vadd.f32 %v5924_v28, %v1336_v62  ;;  %v993_v62 = vadd.f32 %v6039_v20, %v5949_v14 }
 0x229   : > { %v1824_v5 = vpop.f32.mrf.mxu0  ;;  %v2206_v6 = vmul.f32 %v2032_v60, %v988_v58 }
 0x22a   : > { %v1825_v11 = vadd.f32 %v5924_v28, %v1824_v5  ;;  %v1543_v12 = vpop.f32.mrf.mxu3  ;;  %v1421_v40 = vmul.f32 0.01, %v1337_v54  ;;  %vm1389_vm6 = vcmp.gt.f32.partialorder %v1337_v54, 0.0 }
 0x22b   : > { %v1544_v16 = vadd.f32 %v6058_v2, %v1543_v12  ;;  %2239 = vadd.xlane.f32.xlu1 %v2206_v6 }
 0x22c   : > { %vm1876_vm5 = vcmp.gt.f32.partialorder %v1825_v11, 0.0  ;;  %v1908_v17 = vmul.f32 0.01, %v1825_v11  ;;  %v1453_v53 = vsel %vm1389_vm6, %v1337_v54, %v1421_v40 }
 0x22d   : > { %v2109_v24 = vmul.f32 %v1544_v16, %v986_v31 }
 0x22e   : > { %v2034_v25 = vpop.f32.mrf.mxu1  ;;  %v1940_v27 = vsel %vm1876_vm5, %v1825_v11, %v1908_v17 }
 0x22f   : > { %v2035_v46 = vadd.f32 %v6042_v21, %v2034_v25  ;;  %v1338_v34 = vpop.f32.mrf.mxu2  ;;  %2141 = vadd.xlane.f32.xlu0 %v2109_v24  ;;  %v1962_v36 = vpack.c.bf16 %v1940_v27, %v1939_v22 }
 0x230   : > { %v1339_v41 = vadd.f32 %v5924_v28, %v1338_v34 }
 0x231   : > { %v1827_v42 = vpop.f32.mrf.mxu0  ;;  %2073 = vmatmul.bf16.gmra.mxu1 %v1962_v36  ;;  %v2207_v47 = vmul.f32 %v2035_v46, %v991_v30  ;;  %v996_v46 = vadd.f32 %v6039_v20, %v5955_v23 }
 0x232   : > { %vm1390_vm7 = vcmp.gt.f32.partialorder %v1339_v41, 0.0  ;;  %v1422_v48 = vmul.f32 0.01, %v1339_v41  ;;  %v1545_v31 = vpop.f32.mrf.mxu3  ;;  %v1828_v63 = vadd.f32 %v5924_v28, %v1827_v42 }
 0x233   : > { %v1546_v52 = vadd.f32 %v6058_v2, %v1545_v31  ;;  %2241 = vadd.xlane.f32.xlu2 %v2207_v47 }
 0x234   : > { %v1454_v39 = vsel %vm1390_vm7, %v1339_v41, %v1422_v48  ;;  %v1909_v6 = vmul.f32 0.01, %v1828_v63  ;;  %vm1877_vm8 = vcmp.gt.f32.partialorder %v1828_v63, 0.0 }
 0x235   : > { %v1476_v55 = vpack.c.bf16 %v1454_v39, %v1453_v53  ;;  %v2110_v56 = vmul.f32 %v1546_v52, %v988_v58 }
 0x236   : > { %v2036_v60 = vpop.f32.mrf.mxu1  ;;  %v1941_v14 = vsel %vm1877_vm8, %v1828_v63, %v1909_v6 }
 0x237   : > { %v2037_v4 = vadd.f32 %v6042_v21, %v2036_v60  ;;  %v1341_v5 = vpop.f32.mrf.mxu2  ;;  %1587 = vmatmul.bf16.gmra.mxu3 %v1476_v55  ;;  %2143 = vadd.xlane.f32.xlu0 %v2110_v56  ;;  %v998_v56 = vadd.f32 %v6039_v20, %v5963_v38 }
 0x238   : > { %v1342_v58 = vadd.f32 %v5924_v28, %v1341_v5 }
 0x239   : > { %v1829_v11 = vpop.f32.mrf.mxu0  ;;  %v2208_v12 = vmul.f32 %v2037_v4, %v993_v62 }
 0x23a   : > { %v1830_v16 = vadd.f32 %v5924_v28, %v1829_v11  ;;  %v1548_v17 = vpop.f32.mrf.mxu3  ;;  %v1423_v41 = vmul.f32 0.01, %v1342_v58  ;;  %vm1391_vm10 = vcmp.gt.f32.partialorder %v1342_v58, 0.0 }
 0x23b   : > { %v1549_v54 = vadd.f32 %v6058_v2, %v1548_v17  ;;  %2243 = vadd.xlane.f32.xlu1 %v2208_v12 }
 0x23c   : > { %vm1878_vm9 = vcmp.gt.f32.partialorder %v1830_v16, 0.0  ;;  %v1910_v22 = vmul.f32 0.01, %v1830_v16  ;;  %v1455_v63 = vsel %vm1391_vm10, %v1342_v58, %v1423_v41 }
 0x23d   : > { %v2111_v24 = vmul.f32 %v1549_v54, %v991_v30 }
 0x23e   : > { %v2039_v25 = vpop.f32.mrf.mxu1  ;;  %v1942_v27 = vsel %vm1878_vm9, %v1830_v16, %v1910_v22 }
 0x23f   : > { %v2040_v34 = vadd.f32 %v6042_v21, %v2039_v25  ;;  %v1343_v36 = vpop.f32.mrf.mxu2  ;;  %2145 = vadd.xlane.f32.xlu2 %v2111_v24  ;;  %v1963_v40 = vpack.c.bf16 %v1942_v27, %v1941_v14  ;;  %v1001_v25 = vadd.f32 %v6039_v20, %v5969_v49 }
 0x240   : > { %v1344_v42 = vadd.f32 %v5924_v28, %v1343_v36 }
 0x241   : > { %v1832_v47 = vpop.f32.mrf.mxu0  ;;  %2078 = vmatmul.bf16.gmra.mxu1 %v1963_v40  ;;  %v2209_v48 = vmul.f32 %v2040_v34, %v996_v46 }
 0x242   : > { %vm1392_vm11 = vcmp.gt.f32.partialorder %v1344_v42, 0.0  ;;  %v1424_v31 = vmul.f32 0.01, %v1344_v42  ;;  %v1550_v30 = vpop.f32.mrf.mxu3  ;;  %v1833_v52 = vadd.f32 %v5924_v28, %v1832_v47 }
 0x243   : > { %2245 = vadd.xlane.f32.xlu0 %v2209_v48  ;;  %v1551_v53 = vadd.f32 %v6058_v2, %v1550_v30 }
 0x244   : > { %v1456_v23 = vsel %vm1392_vm11, %v1344_v42, %v1424_v31  ;;  %v1911_v5 = vmul.f32 0.01, %v1833_v52  ;;  %vm1879_vm12 = vcmp.gt.f32.partialorder %v1833_v52, 0.0 }
 0x245   : > { %v1477_v39 = vpack.c.bf16 %v1456_v23, %v1455_v63  ;;  %v2112_v12 = vmul.f32 %v1551_v53, %v993_v62 }
 0x246   : > { %v2041_v55 = vpop.f32.mrf.mxu1  ;;  %v1943_v22 = vsel %vm1879_vm12, %v1833_v52, %v1911_v5 }
 0x247   : > { %v2042_v60 = vadd.f32 %v6042_v21, %v2041_v55  ;;  %v1346_v4 = vpop.f32.mrf.mxu2  ;;  %1592 = vmatmul.bf16.gmra.mxu3 %v1477_v39  ;;  %v1003_v39 = vadd.f32 %v6039_v20, %v5977_v3 }
 0x248   : > { %v1347_v54 = vadd.f32 %v5924_v28, %v1346_v4 }
 0x249   : > { %v1834_v6 = vpop.f32.mrf.mxu0  ;;  %v2210_v11 = vmul.f32 %v2042_v60, %v998_v56 }
 0x24a   : > { %v1835_v16 = vadd.f32 %v5924_v28, %v1834_v6  ;;  %v1553_v17 = vpop.f32.mrf.mxu3  ;;  %v1425_v36 = vmul.f32 0.01, %v1347_v54  ;;  %vm1393_vm14 = vcmp.gt.f32.partialorder %v1347_v54, 0.0 }
 0x24b   : > { %2247 = vadd.xlane.f32.xlu2 %v2210_v11  ;;  %2147 = vadd.xlane.f32.xlu0 %v2112_v12  ;;  %v1554_v38 = vadd.f32 %v6058_v2, %v1553_v17 }
 0x24c   : > { %vm1880_vm13 = vcmp.gt.f32.partialorder %v1835_v16, 0.0  ;;  %v1912_v58 = vmul.f32 0.01, %v1835_v16  ;;  %v1457_v49 = vsel %vm1393_vm14, %v1347_v54, %v1425_v36 }
 0x24d   : > { %v2113_v42 = vmul.f32 %v1554_v38, %v996_v46  ;;  %v1006_v38 = vadd.f32 %v6039_v20, %v5983_v13 }
 0x24e   : > { %v2044_v14 = vpop.f32.mrf.mxu1  ;;  %v1944_v24 = vsel %vm1880_vm13, %v1835_v16, %v1912_v58 }
 0x24f   : > { %v2045_v27 = vadd.f32 %v6042_v21, %v2044_v14  ;;  %v1348_v62 = vpop.f32.mrf.mxu2  ;;  %v1964_v34 = vpack.c.bf16 %v1944_v24, %v1943_v22 }
 0x250   : > { %v1349_v40 = vadd.f32 %v5924_v28, %v1348_v62 }
 0x251   : > { %v1837_v41 = vpop.f32.mrf.mxu0  ;;  %2083 = vmatmul.bf16.gmra.mxu1 %v1964_v34  ;;  %v2211_v47 = vmul.f32 %v2045_v27, %v1001_v25 }
 0x252   : > { %vm1394_vm15 = vcmp.gt.f32.partialorder %v1349_v40, 0.0  ;;  %v1426_v48 = vmul.f32 0.01, %v1349_v40  ;;  %v1555_v31 = vpop.f32.mrf.mxu3  ;;  %v1838_v30 = vadd.f32 %v5924_v28, %v1837_v41 }
 0x253   : > { %2149 = vadd.xlane.f32.xlu2 %v2113_v42  ;;  %2249 = vadd.xlane.f32.xlu1 %v2211_v47  ;;  %v1556_v63 = vadd.f32 %v6058_v2, %v1555_v31 }
 0x254   : > { %v1458_v52 = vsel %vm1394_vm15, %v1349_v40, %v1426_v48  ;;  %v1913_v60 = vmul.f32 0.01, %v1838_v30  ;;  %vm1881_vm0 = vcmp.gt.f32.partialorder %v1838_v30, 0.0 }
 0x255   : > { %v1478_v23 = vpack.c.bf16 %v1458_v52, %v1457_v49  ;;  %v2114_v5 = vmul.f32 %v1556_v63, %v998_v56  ;;  %v1008_v52 = vadd.f32 %v6039_v20, %v5991_v32 }
 0x256   : > { %v2046_v53 = vpop.f32.mrf.mxu1  ;;  %v1945_v54 = vsel %vm1881_vm0, %v1838_v30, %v1913_v60 }
 0x257   : > { %v2047_v55 = vadd.f32 %v6042_v21, %v2046_v53  ;;  %v1351_v46 = vpop.f32.mrf.mxu2  ;;  %1597 = vmatmul.bf16.gmra.mxu3 %v1478_v23 }
 0x258   : > { %v1352_v16 = vadd.f32 %v5924_v28, %v1351_v46 }
 0x259   : > { %v1839_v4 = vpop.f32.mrf.mxu0  ;;  %v2212_v6 = vmul.f32 %v2047_v55, %v1003_v39 }
 0x25a   : > { %v1840_v11 = vadd.f32 %v5924_v28, %v1839_v4  ;;  %v1558_v12 = vpop.f32.mrf.mxu3  ;;  %v1427_v27 = vmul.f32 0.01, %v1352_v16  ;;  %vm1395_vm2 = vcmp.gt.f32.partialorder %v1352_v16, 0.0 }
 0x25b   : > { %2151 = vadd.xlane.f32.xlu1 %v2114_v5  ;;  %2251 = vadd.xlane.f32.xlu0 %v2212_v6  ;;  %v1559_v3 = vadd.f32 %v6058_v2, %v1558_v12 }
 0x25c   : > { %vm1882_vm1 = vcmp.gt.f32.partialorder %v1840_v11, 0.0  ;;  %v1914_v17 = vmul.f32 0.01, %v1840_v11  ;;  %v1459_v13 = vsel %vm1395_vm2, %v1352_v16, %v1427_v27 }
 0x25d   : > { %v2115_v40 = vmul.f32 %v1559_v3, %v1001_v25 }
 0x25e   : > { %v2049_v58 = vpop.f32.mrf.mxu1  ;;  %v1946_v22 = vsel %vm1882_vm1, %v1840_v11, %v1914_v17  ;;  %v1011_v17 = vadd.f32 %v6039_v20, %v5997_v43 }
 0x25f   : > { %v2050_v56 = vadd.f32 %v6042_v21, %v2049_v58  ;;  %v1353_v14 = vpop.f32.mrf.mxu2  ;;  %v1965_v24 = vpack.c.bf16 %v1946_v22, %v1945_v54 }
 0x260   : > { %v1354_v62 = vadd.f32 %v5924_v28, %v1353_v14 }
 0x261   : > { %v1842_v34 = vpop.f32.mrf.mxu0  ;;  %2088 = vmatmul.bf16.gmra.mxu1 %v1965_v24  ;;  %v2213_v36 = vmul.f32 %v2050_v56, %v1006_v38 }
 0x262   : > { %vm1396_vm3 = vcmp.gt.f32.partialorder %v1354_v62, 0.0  ;;  %v1428_v41 = vmul.f32 0.01, %v1354_v62  ;;  %v1560_v42 = vpop.f32.mrf.mxu3  ;;  %v1843_v47 = vadd.f32 %v5924_v28, %v1842_v34 }
 0x263   : > { %2253 = vadd.xlane.f32.xlu2 %v2213_v36  ;;  %2153 = vadd.xlane.f32.xlu0 %v2115_v40  ;;  %v1561_v31 = vadd.f32 %v6058_v2, %v1560_v42 }
 0x264   : > { %v1460_v48 = vsel %vm1396_vm3, %v1354_v62, %v1428_v41  ;;  %v1915_v25 = vmul.f32 0.01, %v1843_v47  ;;  %vm1883_vm4 = vcmp.gt.f32.partialorder %v1843_v47, 0.0 }
 0x265   : > { %v1479_v30 = vpack.c.bf16 %v1460_v48, %v1459_v13  ;;  %v2116_v55 = vmul.f32 %v1561_v31, %v1003_v39 }
 0x266   : > { %v2051_v49 = vpop.f32.mrf.mxu1  ;;  %v1947_v11 = vsel %vm1883_vm4, %v1843_v47, %v1915_v25  ;;  %v1013_v47 = vadd.f32 %v6039_v20, %v6005_v1  ;;  %v5155_v25 = vld [vmem:[%s7841_s24 + $0x2] ss:$0 sm:$0xff] }
 0x267   : > { %v2052_v63 = vadd.f32 %v6042_v21, %v2051_v49  ;;  %v1356_v23 = vpop.f32.mrf.mxu2  ;;  %1602 = vmatmul.bf16.gmra.mxu3 %v1479_v30 }
 0x268   : > { %v1357_v5 = vadd.f32 %v5924_v28, %v1356_v23 }
 0x269   : > { %v1844_v53 = vpop.f32.mrf.mxu0  ;;  %v2214_v46 = vmul.f32 %v2052_v63, %v1008_v52 }
 0x26a   : > { %v1845_v60 = vadd.f32 %v5924_v28, %v1844_v53  ;;  %v1563_v4 = vpop.f32.mrf.mxu3  ;;  %v1429_v58 = vmul.f32 0.01, %v1357_v5  ;;  %vm1397_vm6 = vcmp.gt.f32.partialorder %v1357_v5, 0.0 }
 0x26b   : > { %2155 = vadd.xlane.f32.xlu2 %v2116_v55  ;;  %2255 = vadd.xlane.f32.xlu1 %v2214_v46  ;;  %v1564_v32 = vadd.f32 %v6058_v2, %v1563_v4 }
 0x26c   : > { %vm1884_vm5 = vcmp.gt.f32.partialorder %v1845_v60, 0.0  ;;  %v1916_v6 = vmul.f32 0.01, %v1845_v60  ;;  %v1461_v43 = vsel %vm1397_vm6, %v1357_v5, %v1429_v58 }
 0x26d   : > { %v2117_v14 = vmul.f32 %v1564_v32, %v1006_v38 }
 0x26e   : > { %v2054_v12 = vpop.f32.mrf.mxu1  ;;  %v1948_v16 = vsel %vm1884_vm5, %v1845_v60, %v1916_v6 }
 0x26f   : > { %v2055_v39 = vadd.f32 %v6042_v21, %v2054_v12  ;;  %v1358_v54 = vpop.f32.mrf.mxu2  ;;  %v1966_v3 = vpack.c.bf16 %v1948_v16, %v1947_v11 }
 0x270   : > { %v1359_v22 = vadd.f32 %v5924_v28, %v1358_v54 }
 0x271   : > { %v1847_v56 = vpop.f32.mrf.mxu0  ;;  %2093 = vmatmul.bf16.gmra.mxu1 %v1966_v3  ;;  %v2215_v24 = vmul.f32 %v2055_v39, %v1011_v17 }
 0x272   : > { %vm1398_vm7 = vcmp.gt.f32.partialorder %v1359_v22, 0.0  ;;  %v1430_v27 = vmul.f32 0.01, %v1359_v22  ;;  %v1565_v62 = vpop.f32.mrf.mxu3  ;;  %v1848_v34 = vadd.f32 %v5924_v28, %v1847_v56 }
 0x273   : > { %2157 = vadd.xlane.f32.xlu1 %v2117_v14  ;;  %2257 = vadd.xlane.f32.xlu0 %v2215_v24  ;;  %v1566_v40 = vadd.f32 %v6058_v2, %v1565_v62 }
 0x274   : > { %v1462_v36 = vsel %vm1398_vm7, %v1359_v22, %v1430_v27  ;;  %v1917_v48 = vmul.f32 0.01, %v1848_v34  ;;  %vm1885_vm8 = vcmp.gt.f32.partialorder %v1848_v34, 0.0  ;;  %v1018_v27 = vadd.f32 %v6039_v20, %v6019_v35 }
 0x275   : > { %v1480_v41 = vpack.c.bf16 %v1462_v36, %v1461_v43  ;;  %v2118_v49 = vmul.f32 %v1566_v40, %v1008_v52  ;;  %v1016_v52 = vadd.f32 %v6039_v20, %v6011_v15 }
 0x276   : > { %v2056_v42 = vpop.f32.mrf.mxu1  ;;  %v1949_v55 = vsel %vm1885_vm8, %v1848_v34, %v1917_v48 }
 0x277   : > { %v2057_v13 = vadd.f32 %v6042_v21, %v2056_v42  ;;  %v1361_v38 = vpop.f32.mrf.mxu2  ;;  %1607 = vmatmul.bf16.gmra.mxu3 %v1480_v41 }
 0x278   : > { %v1362_v53 = vadd.f32 %v5155_v25, %v1361_v38 }
 0x279   : > { %v1849_v31 = vpop.f32.mrf.mxu0  ;;  %v2216_v30 = vmul.f32 %v2057_v13, %v1013_v47 }
 0x27a   : > { %v1850_v63 = vadd.f32 %v5924_v28, %v1849_v31  ;;  %v1568_v23 = vpop.f32.mrf.mxu3  ;;  %v1431_v11 = vmul.f32 0.01, %v1362_v53  ;;  %vm1399_vm10 = vcmp.gt.f32.partialorder %v1362_v53, 0.0 }
 0x27b   : > { %2259 = vadd.xlane.f32.xlu2 %v2216_v30  ;;  %2159 = vadd.xlane.f32.xlu0 %v2118_v49  ;;  %v1569_v46 = vadd.f32 %v6058_v2, %v1568_v23  ;;  %v1021_v49 = vadd.f32 %v6039_v20, %v6025_v51 }
 0x27c   : > { %vm1886_vm9 = vcmp.gt.f32.partialorder %v1850_v63, 0.0  ;;  %v1918_v1 = vmul.f32 0.01, %v1850_v63  ;;  %v1463_v22 = vsel %vm1399_vm10, %v1362_v53, %v1431_v11 }
 0x27d   : > { %v2119_v16 = vmul.f32 %v1569_v46, %v1011_v17 }
 0x27e   : > { %v2059_v60 = vpop.f32.mrf.mxu1  ;;  %v1950_v4 = vsel %vm1886_vm9, %v1850_v63, %v1918_v1 }
 0x27f   : > { %v2060_v28 = vadd.f32 %v6042_v21, %v2059_v60  ;;  %v1363_v5 = vpop.f32.mrf.mxu2  ;;  %v1967_v6 = vpack.c.bf16 %v1950_v4, %v1949_v55 }
 0x280   : > { %v1364_v32 = vadd.f32 %v5155_v25, %v1363_v5 }
 0x281   : > { %v1852_v12 = vpop.f32.mrf.mxu0  ;;  %2098 = vmatmul.bf16.gmra.mxu1 %v1967_v6  ;;  %v2217_v39 = vmul.f32 %v2060_v28, %v1016_v52 }
 0x282   : > { %vm1400_vm11 = vcmp.gt.f32.partialorder %v1364_v32, 0.0  ;;  %v1432_v54 = vmul.f32 0.01, %v1364_v32  ;;  %v1570_v3 = vpop.f32.mrf.mxu3  ;;  %v1853_v58 = vadd.f32 %v5155_v25, %v1852_v12  ;;  %v1023_v12 = vadd.f32 %v6039_v20, %v6031_v10 }
 0x283   : > { %2161 = vadd.xlane.f32.xlu2 %v2119_v16  ;;  %2261 = vadd.xlane.f32.xlu1 %v2217_v39  ;;  %v1571_v15 = vadd.f32 %v6058_v2, %v1570_v3 }
 0x284   : > { %v1464_v56 = vsel %vm1400_vm11, %v1364_v32, %v1432_v54  ;;  %v1919_v17 = vmul.f32 0.01, %v1853_v58  ;;  %vm1887_vm12 = vcmp.gt.f32.partialorder %v1853_v58, 0.0 }
 0x285   : > { %v1481_v14 = vpack.c.bf16 %v1464_v56, %v1463_v22  ;;  %v2120_v36 = vmul.f32 %v1571_v15, %v1013_v47  ;;  %v6143_v15 = vadd.f32 %v6039_v20, %v5938_v59 }
 0x286   : > { %v2061_v24 = vpop.f32.mrf.mxu1  ;;  %v1951_v48 = vsel %vm1887_vm12, %v1853_v58, %v1919_v17 }
 0x287   : > { %v2062_v62 = vadd.f32 %v6042_v21, %v2061_v24  ;;  %v1366_v34 = vpop.f32.mrf.mxu2  ;;  %1612 = vmatmul.bf16.gmra.mxu3 %v1481_v14 }
 0x288   : > { %v1367_v13 = vadd.f32 %v5155_v25, %v1366_v34 }
 0x289   : > { %v1854_v43 = vpop.f32.mrf.mxu0  ;;  %v2218_v40 = vmul.f32 %v2062_v62, %v1018_v27 }
 0x28a   : > { %v1855_v41 = vadd.f32 %v5155_v25, %v1854_v43  ;;  %v1573_v42 = vpop.f32.mrf.mxu3  ;;  %v1433_v53 = vmul.f32 0.01, %v1367_v13  ;;  %vm1401_vm14 = vcmp.gt.f32.partialorder %v1367_v13, 0.0 }
 0x28b   : > { %2163 = vadd.xlane.f32.xlu1 %v2120_v36  ;;  %2263 = vadd.xlane.f32.xlu0 %v2218_v40  ;;  %v1574_v31 = vadd.f32 %v6058_v2, %v1573_v42 }
 0x28c   : > { %vm1888_vm13 = vcmp.gt.f32.partialorder %v1855_v41, 0.0  ;;  %v1920_v38 = vmul.f32 0.01, %v1855_v41  ;;  %v1465_v28 = vsel %vm1401_vm14, %v1367_v13, %v1433_v53  ;;  %v6163_v53 = vadd.f32 %v6039_v20, %v5960_v33 }
 0x28d   : > { %v2121_v46 = vmul.f32 %v1574_v31, %v1016_v52 }
 0x28e   : > { %v2064_v35 = vpop.f32.mrf.mxu1  ;;  %v1952_v30 = vsel %vm1888_vm13, %v1855_v41, %v1920_v38  ;;  %v6153_v38 = vadd.f32 %v6039_v20, %v5946_v9  ;;  %v6167_v9 = vadd.f32 %v6039_v20, %v5966_v44  ;;  %v6182_v44 = vadd.f32 %v6039_v20, %v5988_v26 }
 0x28f   : > { %v2065_v63 = vadd.f32 %v6042_v21, %v2064_v35  ;;  %v1368_v23 = vpop.f32.mrf.mxu2  ;;  %v1968_v47 = vpack.c.bf16 %v1952_v30, %v1951_v48 }
 0x290   : > { %v1369_v1 = vadd.f32 %v5155_v25, %v1368_v23 }
 0x291   : > { %2103 = vmatmul.bf16.gmra.mxu1 %v1968_v47  ;;  %v2219_v55 = vmul.f32 %v2065_v63, %v1021_v49  ;;  %v6159_v47 = vadd.f32 %v6039_v20, %v5952_v19  ;;  %v6177_v19 = vadd.f32 %v6039_v20, %v5980_v8  ;;  %v6192_v8 = vadd.f32 %v6039_v20, %v6002_v57 }
 0x292   : > { %vm1402_vm15 = vcmp.gt.f32.partialorder %v1369_v1, 0.0  ;;  %v1434_v60 = vmul.f32 0.01, %v1369_v1  ;;  %v1575_v4 = vpop.f32.mrf.mxu3 }
 0x293   : > { %2265 = vadd.xlane.f32.xlu2 %v2219_v55  ;;  %2165 = vadd.xlane.f32.xlu0 %v2121_v46  ;;  %v1576_v6 = vadd.f32 %v6058_v2, %v1575_v4  ;;  %v6186_v4 = vadd.f32 %v6039_v20, %v5994_v37 }
 0x294   : > { %v1466_v5 = vsel %vm1402_vm15, %v1369_v1, %v1434_v60  ;;  %v6173_v60 = vadd.f32 %v6039_v20, %v5974_v61 }
 0x295   : > { %v1482_v51 = vpack.c.bf16 %v1466_v5, %v1465_v28  ;;  %v2122_v39 = vmul.f32 %v1576_v6, %v1018_v27  ;;  %v6196_v5 = vadd.f32 %v6039_v20, %v6008_v7  ;;  %v6208_v7 = vadd.f32 %v6039_v20, %v6016_v29 }
 0x296   : > { %v2066_v11 = vpop.f32.mrf.mxu1  ;;  %v2238_v32 = vpop.xlane.xlu1 %2237 }
 0x297   : > { %v2067_v25 = vadd.f32 %v6042_v21, %v2066_v11  ;;  %v2909_v16 = vsub.f32 0.0, %v2238_v32  ;;  %1617 = vmatmul.bf16.gmra.mxu3 %v1482_v51 }
 0x299   : > { %v2941_v52 = vmul.f32 1.442695, %v2909_v16  ;;  %v2220_v54 = vmul.f32 %v2067_v25, %v1023_v12 }
 0x29a   : > { %v1578_v3 = vpop.f32.mrf.mxu3 }
 0x29b   : > { %4771 = vpow2.f32 %v2941_v52  ;;  %2167 = vadd.xlane.f32.xlu2 %v2122_v39  ;;  %2267 = vadd.xlane.f32.xlu1 %v2220_v54  ;;  %v1579_v58 = vadd.f32 %v6058_v2, %v1578_v3 }
 0x29d   : > { %v2123_v34 = vmul.f32 %v1579_v58, %v1021_v49 }
 0x29e   : > { %v2069_v22 = vpop.f32.mrf.mxu1  ;;  %v2240_v56 = vpop.xlane.xlu1 %2239 }
 0x29f   : > { %v2070_v10 = vadd.f32 %v6042_v21, %v2069_v22  ;;  %v2910_v14 = vsub.f32 0.0, %v2240_v56 }
 0x2a1   : > { %v4772_v24 = vpop.eup %4771  ;;  %v2943_v62 = vmul.f32 1.442695, %v2910_v14  ;;  %v2221_v27 = vmul.f32 %v2070_v10, %v6143_v15 }
 0x2a2   : > { %v6147_v17 = vadd.f32 1.0, %v4772_v24  ;;  %v1580_v43 = vpop.f32.mrf.mxu3  ;;  %v2142_v36 = vpop.xlane.xlu0 %2141 }
 0x2a3   : > { %4773 = vpow2.f32 %v2943_v62  ;;  %v2301_v40 = vsub.f32 0.0, %v2142_v36  ;;  %2169 = vadd.xlane.f32.xlu1 %v2123_v34  ;;  %2269 = vadd.xlane.f32.xlu0 %v2221_v27  ;;  %v1581_v59 = vadd.f32 %v6058_v2, %v1580_v43  ;;  %v6225_v36 = vadd.f32 %v6039_v20, %v6022_v45 }
 0x2a4   : > { %4775 = vrcp.f32 %v6147_v17  ;;  %v3046_v37 = vand.u32 2147483647, %v6147_v17  ;;  %v3048_v51 = vand.u32 2147483648, %v6147_v17  ;;  %vm3042_vm1 = vweird.f32 %v6147_v17 }
 0x2a5   : > { %v2333_v41 = vmul.f32 1.442695, %v2301_v40  ;;  %v2124_v63 = vmul.f32 %v1581_v59, %v1023_v12 }
 0x2a6   : > { %v2071_v42 = vpop.f32.mrf.mxu1  ;;  %v2242_v13 = vpop.xlane.xlu2 %2241  ;;  %v3049_v10 = vor.u32 1.1754944e-38, %v3048_v51  ;;  %vm3047_vm3 = vcmp.eq.f32.partialorder %v3046_v37, 8.507059e+37 }
 0x2a7   : > { %4777 = vpow2.f32 %v2333_v41  ;;  %v2072_v48 = vadd.f32 %v6042_v21, %v2071_v42  ;;  %v2911_v31 = vsub.f32 0.0, %v2242_v13  ;;  %v6228_v41 = vstv %s6199_s11 }
 0x2a9   : > { %v4774_v35 = vpop.eup %4773  ;;  %v2945_v30 = vmul.f32 1.442695, %v2911_v31  ;;  %v2222_v49 = vmul.f32 %v2072_v48, %v6153_v38 }
 0x2aa   : > { %v4776_v23 = vpop.eup %4775  ;;  %v6169_v1 = vadd.f32 1.0, %v4774_v35  ;;  %v1583_v55 = vpop.f32.mrf.mxu3 }
 0x2ab   : > { %v2144_v46 = vpop.xlane.xlu0 %2143  ;;  %v3038_v33 = vmul.f32 %v4776_v23, %v6147_v17  ;;  %4779 = vpow2.f32 %v2945_v30  ;;  %2271 = vadd.xlane.f32.xlu2 %v2222_v49  ;;  %2171 = vadd.xlane.f32.xlu0 %v2124_v63  ;;  %v1584_v61 = vadd.f32 %v6058_v2, %v1583_v55  ;;  %vm3043_vm0 = vweird.f32 %v4776_v23 }
 0x2ac   : > { %4781 = vrcp.f32 %v6169_v1  ;;  %v2302_v26 = vsub.f32 0.0, %v2144_v46  ;;  %vm3044_vm2 = vmor %vm3042_vm1, %vm3043_vm0  ;;  %v3061_v14 = vand.u32 2147483647, %v6169_v1  ;;  %v3063_v29 = vand.u32 2147483648, %v6169_v1 }
 0x2ad   : > { %v4778_v28 = vpop.eup %4777  ;;  %v3039_v6 = vsub.f32 1.0, %v3038_v33  ;;  %v2125_v39 = vmul.f32 %v1584_v61, %v6143_v15  ;;  %vm3057_vm4 = vweird.f32 %v6169_v1 }
 0x2ae   : > { %v6203_v11 = vadd.f32 1.0, %v4778_v28  ;;  %v2074_v32 = vpop.f32.mrf.mxu1  ;;  %v2244_v12 = vpop.xlane.xlu1 %2243  ;;  %v2335_v57 = vmul.f32 1.442695, %v2302_v26  ;;  %vm6231_vm5 = vcmp.eq.f32.partialorder %v3061_v14, 8.507059e+37  ;;  %v3064_v48 = vor.u32 1.1754944e-38, %v3063_v29 }
 0x2af   : > { %v3040_v25 = vmul.f32 %v4776_v23, %v3039_v6  ;;  %v2075_v16 = vadd.f32 %v6042_v21, %v2074_v32  ;;  %v2912_v52 = vsub.f32 0.0, %v2244_v12 }
 0x2b0   : > { %4783 = vrcp.f32 %v6203_v11  ;;  %v2438_v17 = vand.u32 2147483647, %v6203_v11  ;;  %v2440_v43 = vand.u32 2147483648, %v6203_v11  ;;  %vm2434_vm7 = vweird.f32 %v6203_v11 }
 0x2b1   : > { %v4780_v54 = vpop.eup %4779  ;;  %v3041_v3 = vadd.f32 %v4776_v23, %v3040_v25  ;;  %4785 = vpow2.f32 %v2335_v57  ;;  %v2947_v58 = vmul.f32 1.442695, %v2912_v52  ;;  %v2223_v22 = vmul.f32 %v2075_v16, %v6159_v47 }
 0x2b2   : > { %v4782_v56 = vpop.eup %4781  ;;  %v6217_v24 = vadd.f32 1.0, %v4780_v54  ;;  %v2146_v34 = vpop.xlane.xlu2 %2145  ;;  %vm6237_vm8 = vcmp.eq.f32.partialorder %v2438_v17, 8.507059e+37  ;;  %v2441_v63 = vor.u32 1.1754944e-38, %v2440_v43 }
 0x2b3   : > { %v3045_v62 = vsel %vm3044_vm2, %v4776_v23, %v3041_v3  ;;  %v3053_v15 = vmul.f32 %v4782_v56, %v6169_v1  ;;  %4787 = vpow2.f32 %v2947_v58  ;;  %2173 = vadd.xlane.f32.xlu2 %v2125_v39  ;;  %2273 = vadd.xlane.f32.xlu1 %v2223_v22  ;;  %v2303_v31 = vsub.f32 0.0, %v2146_v34  ;;  %v1585_v28 = vpop.f32.mrf.mxu3 }
 0x2b4   : > { %v3050_v27 = vsel %vm3047_vm3, %v3049_v10, %v3045_v62  ;;  %4789 = vrcp.f32 %v6217_v24  ;;  %vm3058_vm6 = vweird.f32 %v4782_v56  ;;  %vm3072_vm9 = vweird.f32 %v6217_v24 }
 0x2b5   : > { %v3645_v40 = vsub.f32 1.0, %v3050_v27  ;;  %v3054_v59 = vsub.f32 1.0, %v3053_v15  ;;  %v2337_v6 = vmul.f32 1.442695, %v2303_v31  ;;  %vm3059_vm10 = vmor %vm3057_vm4, %vm3058_vm6  ;;  %v3076_v37 = vand.u32 2147483647, %v6217_v24 }
 0x2b6   : > { %v4784_v42 = vpop.eup %4783  ;;  %v2246_v55 = vpop.xlane.xlu0 %2245  ;;  %v3078_v51 = vand.u32 2147483648, %v6217_v24  ;;  %v1586_v1 = vadd.f32 %v6058_v2, %v1585_v28 }
 0x2b7   : > { %v4786_v35 = vpop.eup %4785  ;;  %v3055_v30 = vmul.f32 %v4782_v56, %v3054_v59  ;;  %v2430_v49 = vmul.f32 %v4784_v42, %v6203_v11  ;;  %v3677_v45 = vadd.f32 1e-08, %v3645_v40  ;;  %vm2435_vm11 = vweird.f32 %v4784_v42  ;;  %v2076_v57 = vpop.f32.mrf.mxu1 }
 0x2b8   : > { %v6241_v23 = vadd.f32 1.0, %v4786_v35  ;;  %v2913_v16 = vsub.f32 0.0, %v2246_v55  ;;  %vm2436_vm12 = vmor %vm2434_vm7, %vm2435_vm11  ;;  %vm6259_vm13 = vcmp.eq.f32.partialorder %v3076_v37, 8.507059e+37  ;;  %v2077_v10 = vadd.f32 %v6042_v21, %v2076_v57 }
 0x2b9   : > { %v4788_v46 = vpop.eup %4787  ;;  %v3056_v33 = vadd.f32 %v4782_v56, %v3055_v30  ;;  %v2431_v61 = vsub.f32 1.0, %v2430_v49  ;;  %v3079_v27 = vor.u32 1.1754944e-38, %v3078_v51  ;;  %v2126_v35 = vmul.f32 %v1586_v1, %v6153_v38 }
 0x2ba   : > { %v4790_v26 = vpop.eup %4789  ;;  %4791 = vrcp.f32 %v6241_v23  ;;  %v6253_v39 = vadd.f32 1.0, %v4788_v46  ;;  %v2949_v62 = vmul.f32 1.442695, %v2913_v16  ;;  %vm2449_vm15 = vweird.f32 %v6241_v23 }
 0x2bb   : > { %v3060_v32 = vsel %vm3059_vm10, %v4782_v56, %v3056_v33  ;;  %v2432_v12 = vmul.f32 %v4784_v42, %v2431_v61  ;;  %v3068_v25 = vmul.f32 %v4790_v26, %v6217_v24  ;;  %4793 = vlog2.f32 %v3677_v45  ;;  %2175 = vadd.xlane.f32.xlu1 %v2126_v35  ;;  %v1588_v28 = vpop.f32.mrf.mxu3 }
 0x2bc   : > { %v3065_v52 = vsel %vm6231_vm5, %v3064_v48, %v3060_v32  ;;  %4795 = vpow2.f32 %v2337_v6  ;;  %v2453_v56 = vand.u32 2147483647, %v6241_v23  ;;  %vm3073_vm14 = vweird.f32 %v4790_v26 }
 0x2bd   : > { %v3646_v54 = vsub.f32 1.0, %v3065_v52  ;;  %v2433_v3 = vadd.f32 %v4784_v42, %v2432_v12  ;;  %v3069_v58 = vsub.f32 1.0, %v3068_v25  ;;  %4797 = vrcp.f32 %v6253_v39  ;;  %vm6273_vm0 = vmor %vm3072_vm9, %vm3073_vm14 }
 0x2be   : > { %v2455_v59 = vand.u32 2147483648, %v6241_v23  ;;  %v2248_v13 = vpop.xlane.xlu2 %2247  ;;  %vm6277_vm1 = vcmp.eq.f32.partialorder %v2453_v56, 8.507059e+37  ;;  %v3091_v31 = vand.u32 2147483647, %v6253_v39  ;;  %4799 = vpow2.f32 %v2949_v62  ;;  %v2148_v6 = vpop.xlane.xlu0 %2147 }
 0x2bf   : > { %v2437_v14 = vsel %vm2436_vm12, %v4784_v42, %v2433_v3  ;;  %v3070_v29 = vmul.f32 %v4790_v26, %v3069_v58  ;;  %v3678_v34 = vadd.f32 1e-08, %v3646_v54  ;;  %v2224_v24 = vmul.f32 %v2077_v10, %v6163_v53  ;;  %v2079_v54 = vpop.f32.mrf.mxu1 }
 0x2c0   : > { %v4792_v15 = vpop.eup %4791  ;;  %v2442_v11 = vsel %vm6237_vm8, %v2441_v63, %v2437_v14  ;;  %v3093_v63 = vand.u32 2147483648, %v6253_v39  ;;  %v2914_v46 = vsub.f32 0.0, %v2248_v13  ;;  %v2456_v37 = vor.u32 1.1754944e-38, %v2455_v59 }
 0x2c1   : > { %v3517_v17 = vadd.f32 1e-08, %v2442_v11  ;;  %v3071_v43 = vadd.f32 %v4790_v26, %v3070_v29  ;;  %v2445_v40 = vmul.f32 %v4792_v15, %v6241_v23  ;;  %v4794_v21 = vpop.eup %4793  ;;  %vm2450_vm2 = vweird.f32 %v4792_v15  ;;  %2275 = vadd.xlane.f32.xlu0 %v2224_v24 }
 0x2c2   : > { %v4796_v30 = vpop.eup %4795  ;;  %vm3087_vm3 = vweird.f32 %v6253_v39  ;;  %vm6294_vm4 = vcmp.eq.f32.partialorder %v3091_v31, 8.507059e+37  ;;  %v2951_v25 = vmul.f32 1.442695, %v2914_v46  ;;  %vm2451_vm5 = vmor %vm2449_vm15, %vm2450_vm2  ;;  %v3094_v52 = vor.u32 1.1754944e-38, %v3093_v63 }
 0x2c3   : > { %4801 = vlog2.f32 %v3517_v17  ;;  %v3075_v49 = vsel %vm6273_vm0, %v4790_v26, %v3071_v43  ;;  %v2446_v45 = vsub.f32 1.0, %v2445_v40  ;;  %v4798_v20 = vpop.eup %4797  ;;  %v6287_v55 = vadd.f32 1.0, %v4796_v30  ;;  %v1590_v46 = vpop.f32.mrf.mxu3 }
 0x2c4   : > { %4803 = vlog2.f32 %v3678_v34  ;;  %v3080_v33 = vsel %vm6259_vm13, %v3079_v27, %v3075_v49  ;;  %v3083_v61 = vmul.f32 %v4798_v20, %v6253_v39  ;;  %v3710_v26 = vmul.f32 0.6931472, %v4794_v21  ;;  %v4800_v57 = vpop.eup %4799 }
 0x2c5   : > { %v2447_v38 = vmul.f32 %v4792_v15, %v2446_v45  ;;  %4805 = vrcp.f32 %v6287_v55  ;;  %v3647_v16 = vsub.f32 1.0, %v3080_v33  ;;  %v1589_v1 = vadd.f32 %v6058_v2, %v1588_v28  ;;  %v6308_v2 = vld [vmem:[%s5829_s26] ss:$0 sm:$0xff] }
 0x2c6   : > { %v3084_v32 = vsub.f32 1.0, %v3083_v61  ;;  %v2304_v3 = vsub.f32 0.0, %v2148_v6  ;;  %vm3088_vm6 = vweird.f32 %v4798_v20  ;;  %v6302_v10 = vadd.f32 1.0, %v4800_v57  ;;  %v2150_v39 = vpop.xlane.xlu2 %2149 }
 0x2c7   : > { %v2448_v51 = vadd.f32 %v4792_v15, %v2447_v38  ;;  %4807 = vpow2.f32 %v2951_v25  ;;  %v2080_v27 = vadd.f32 %v6308_v2, %v2079_v54  ;;  %v3679_v43 = vadd.f32 1e-08, %v3647_v16  ;;  %vm3089_vm7 = vmor %vm3087_vm3, %vm3088_vm6  ;;  %v2250_v38 = vpop.xlane.xlu1 %2249 }
 0x2c8   : > { %v3085_v56 = vmul.f32 %v4798_v20, %v3084_v32  ;;  %v2339_v23 = vmul.f32 1.442695, %v2304_v3  ;;  %4809 = vrcp.f32 %v6302_v10  ;;  %v2468_v40 = vand.u32 2147483647, %v6287_v55 }
 0x2c9   : > { %v4802_v58 = vpop.eup %4801  ;;  %v2452_v22 = vsel %vm2451_vm5, %v4792_v15, %v2448_v51  ;;  %vm2464_vm8 = vweird.f32 %v6287_v55  ;;  %vm7801_vm9 = vcmask 7168   ;;  %v2470_v48 = vand.u32 2147483648, %v6287_v55 }
 0x2ca   : > { %v4804_v14 = vpop.eup %4803  ;;  %v3550_v29 = vmul.f32 0.6931472, %v4802_v58  ;;  %v2457_v62 = vsel %vm6277_vm1, %v2456_v37, %v2452_v22  ;;  %v3086_v11 = vadd.f32 %v4798_v20, %v3085_v56  ;;  %4811 = vpow2.f32 %v2339_v23 }
 0x2cb   : > { %v3518_v34 = vadd.f32 1e-08, %v2457_v62  ;;  %v4806_v15 = vpop.eup %4805  ;;  %v3106_v31 = vand.u32 2147483647, %v6302_v10  ;;  %v3712_v35 = vmul.f32 0.6931472, %v4804_v14  ;;  %v2225_v45 = vmul.f32 %v2080_v27, %v6167_v9  ;;  %v2081_v14 = vpop.f32.mrf.mxu1 }
 0x2cc   : > { %v3613_v17 = vsub.f32 0.0, %v3550_v29  ;;  %v3090_v59 = vsel %vm3089_vm7, %v4798_v20, %v3086_v11  ;;  %v2460_v13 = vmul.f32 %v4806_v15, %v6287_v55  ;;  %v3108_v49 = vand.u32 2147483648, %v6302_v10 }
 0x2cd   : > { %4813 = vlog2.f32 %v3518_v34  ;;  %v3095_v42 = vsel %vm6294_vm4, %v3094_v52, %v3090_v59  ;;  %v4808_v24 = vpop.eup %4807  ;;  %vm6323_vm10 = vcmp.eq.f32.partialorder %v2468_v40, 8.507059e+37  ;;  %v2127_v33 = vmul.f32 %v1589_v1, %v6159_v47  ;;  %2277 = vadd.xlane.f32.xlu2 %v2225_v45  ;;  %v6340_v52 = vld [vmem:[%s7841_s24 + $0x3] ss:$0 sm:$0xff] }
 0x2ce   : > { %v3773_v21 = vsub.f32 %v3613_v17, %v3710_v26  ;;  %v2461_v30 = vsub.f32 1.0, %v2460_v13  ;;  %4815 = vlog2.f32 %v3679_v43  ;;  %v3648_v20 = vsub.f32 1.0, %v3095_v42  ;;  %v4810_v61 = vpop.eup %4809 }
 0x2cf   : > { %vm2465_vm11 = vweird.f32 %v4806_v15  ;;  %v6328_v6 = vadd.f32 1.0, %v4808_v24  ;;  %v2305_v26 = vsub.f32 0.0, %v2150_v39  ;;  %v2471_v51 = vor.u32 1.1754944e-38, %v2470_v48  ;;  %2177 = vadd.xlane.f32.xlu0 %v2127_v33 }
 0x2d0   : > { %v2462_v28 = vmul.f32 %v4806_v15, %v2461_v30  ;;  %v4812_v37 = vpop.eup %4811  ;;  %v3098_v32 = vmul.f32 %v4810_v61, %v6302_v10  ;;  %vm3102_vm12 = vweird.f32 %v6302_v10  ;;  %vm6332_vm13 = vcmp.eq.f32.partialorder %v3106_v31, 8.507059e+37  ;;  %vm2466_vm14 = vmor %vm2464_vm8, %vm2465_vm11  ;;  %v2152_v30 = vpop.xlane.xlu1 %2151 }
 0x2d1   : > { %v3808_v25 = vmul.f32 %v6228_v41, %v3773_v21  ;;  %v3109_v16 = vor.u32 1.1754944e-38, %v3108_v49  ;;  %v1591_v1 = vadd.f32 %v6340_v52, %v1590_v46  ;;  %v3680_v3 = vadd.f32 1e-08, %v3648_v20  ;;  %v2252_v20 = vpop.xlane.xlu0 %2251 }
 0x2d2   : > { %v2463_v57 = vadd.f32 %v4806_v15, %v2462_v28  ;;  %v3099_v58 = vsub.f32 1.0, %v3098_v32  ;;  %4817 = vrcp.f32 %v6328_v6  ;;  %v6347_v56 = vadd.f32 1.0, %v4812_v37 }
 0x2d3   : > { %v4814_v47 = vpop.eup %4813  ;;  %v2341_v29 = vmul.f32 1.442695, %v2305_v26  ;;  %v2915_v62 = vsub.f32 0.0, %v2250_v38  ;;  %vm3103_vm15 = vweird.f32 %v4810_v61  ;;  %v3121_v55 = vand.u32 2147483647, %v6328_v6 }
 0x2d4   : > { %v3552_v54 = vmul.f32 0.6931472, %v4814_v47  ;;  %v2467_v22 = vsel %vm2466_vm14, %v4806_v15, %v2463_v57  ;;  %v4816_v23 = vpop.eup %4815  ;;  %v3100_v27 = vmul.f32 %v4810_v61, %v3099_v58  ;;  %v3123_v43 = vand.u32 2147483648, %v6328_v6  ;;  %vm3104_vm0 = vmor %vm3102_vm12, %vm3103_vm15 }
 0x2d5   : > { %v2472_v11 = vsel %vm6323_vm10, %v2471_v51, %v2467_v22  ;;  %4819 = vrcp.f32 %v6347_v56  ;;  %v2082_v59 = vadd.f32 %v6308_v2, %v2081_v14  ;;  %v3841_v13 = vsel %vm7801_vm9, %v3808_v25, 0.0 }
 0x2d6   : > { %v3614_v34 = vsub.f32 0.0, %v3552_v54  ;;  %v3519_v17 = vadd.f32 1e-08, %v2472_v11  ;;  %v3101_v40 = vadd.f32 %v4810_v61, %v3100_v27  ;;  %4821 = vpow2.f32 %v2341_v29  ;;  %v2084_v27 = vpop.f32.mrf.mxu1 }
 0x2d7   : > { %v3714_v21 = vmul.f32 0.6931472, %v4816_v23  ;;  %v2953_v42 = vmul.f32 1.442695, %v2915_v62  ;;  %vm3117_vm1 = vweird.f32 %v6328_v6  ;;  %vm6363_vm2 = vcmp.eq.f32.partialorder %v3121_v55, 8.507059e+37 }
 0x2d8   : > { %v3774_v15 = vsub.f32 %v3614_v34, %v3712_v35  ;;  %4823 = vlog2.f32 %v3519_v17  ;;  %v4818_v48 = vpop.eup %4817  ;;  %v3105_v39 = vsel %vm3104_vm0, %v4810_v61, %v3101_v40  ;;  %v1593_v35 = vpop.f32.mrf.mxu3  ;;  %v3124_v10 = vor.u32 1.1754944e-38, %v3123_v43 }
 0x2d9   : > { %4825 = vlog2.f32 %v3680_v3  ;;  %v3110_v49 = vsel %vm6332_vm13, %v3109_v16, %v3105_v39  ;;  %v3113_v45 = vmul.f32 %v4818_v48, %v6328_v6  ;;  %v2128_v33 = vmul.f32 %v1591_v1, %v6163_v53 }
 0x2da   : > { %v3809_v31 = vmul.f32 %v6228_v41, %v3774_v15  ;;  %4827 = vpow2.f32 %v2953_v42  ;;  %v3649_v46 = vsub.f32 1.0, %v3110_v49  ;;  %v2226_v38 = vmul.f32 %v2082_v59, %v6173_v60 }
 0x2db   : > { %v4820_v61 = vpop.eup %4819  ;;  %v3114_v26 = vsub.f32 1.0, %v3113_v45  ;;  %vm2479_vm3 = vweird.f32 %v6347_v56  ;;  %v2306_v37 = vsub.f32 0.0, %v2152_v30  ;;  %v2483_v47 = vand.u32 2147483647, %v6347_v56  ;;  %2179 = vadd.xlane.f32.xlu2 %v2128_v33  ;;  %v2254_v33 = vpop.xlane.xlu2 %2253 }
 0x2dc   : > { %v3842_v63 = vsel %vm7801_vm9, %v3809_v31, 0.0  ;;  %v4822_v51 = vpop.eup %4821  ;;  %v3681_v32 = vadd.f32 1e-08, %v3649_v46  ;;  %v2475_v12 = vmul.f32 %v4820_v61, %v6347_v56  ;;  %2279 = vadd.xlane.f32.xlu1 %v2226_v38  ;;  %v2916_v25 = vsub.f32 0.0, %v2252_v20  ;;  %v2154_v38 = vpop.xlane.xlu0 %2153 }
 0x2dd   : > { %v6370_v28 = vadd.f32 %v3842_v63, %v3841_v13  ;;  %v3115_v53 = vmul.f32 %v4818_v48, %v3114_v26  ;;  %vm3118_vm4 = vweird.f32 %v4818_v48  ;;  %v6375_v16 = vadd.f32 1.0, %v4822_v51 }
 0x2de   : > { %v4824_v57 = vpop.eup %4823  ;;  %v2343_v1 = vmul.f32 1.442695, %v2306_v37  ;;  %4829 = vlog2.f32 %v3681_v32  ;;  %v2476_v58 = vsub.f32 1.0, %v2475_v12  ;;  %v1594_v22 = vadd.f32 %v6340_v52, %v1593_v35  ;;  %vm3119_vm6 = vmor %vm3117_vm1, %vm3118_vm4 }
 0x2df   : > { %v4826_v54 = vpop.eup %4825  ;;  %v3554_v3 = vmul.f32 0.6931472, %v4824_v57  ;;  %v3116_v29 = vadd.f32 %v4818_v48, %v3115_v53  ;;  %vm2480_vm5 = vweird.f32 %v4820_v61  ;;  %v2485_v62 = vand.u32 2147483648, %v6347_v56 }
 0x2e0   : > { %v4828_v14 = vpop.eup %4827  ;;  %4831 = vrcp.f32 %v6375_v16  ;;  %v2477_v34 = vmul.f32 %v4820_v61, %v2476_v58  ;;  %v2955_v17 = vmul.f32 1.442695, %v2916_v25  ;;  %vm6384_vm7 = vcmp.eq.f32.partialorder %v2483_v47, 8.507059e+37  ;;  %v1595_v6 = vpop.f32.mrf.mxu3  ;;  %vm2481_vm8 = vmor %vm2479_vm3, %vm2480_vm5 }
 0x2e1   : > { %v3615_v23 = vsub.f32 0.0, %v3554_v3  ;;  %v6382_v11 = vadd.f32 1.0, %v4828_v14  ;;  %v3120_v55 = vsel %vm3119_vm6, %v4818_v48, %v3116_v29  ;;  %v2498_v15 = vand.u32 2147483647, %v6375_v16 }
 0x2e2   : > { %4833 = vpow2.f32 %v2343_v1  ;;  %v3125_v59 = vsel %vm6363_vm2, %v3124_v10, %v3120_v55  ;;  %v2478_v13 = vadd.f32 %v4820_v61, %v2477_v34  ;;  %v2129_v42 = vmul.f32 %v1594_v22, %v6167_v9  ;;  %v2086_v22 = vpop.f32.mrf.mxu1 }
 0x2e3   : > { %v3775_v40 = vsub.f32 %v3615_v23, %v3714_v21  ;;  %v3650_v31 = vsub.f32 1.0, %v3125_v59  ;;  %v2486_v48 = vor.u32 1.1754944e-38, %v2485_v62  ;;  %4835 = vrcp.f32 %v6382_v11 }
 0x2e4   : > { %v2085_v39 = vadd.f32 %v6308_v2, %v2084_v27  ;;  %v4830_v35 = vpop.eup %4829  ;;  %v2482_v30 = vsel %vm2481_vm8, %v4820_v61, %v2478_v13  ;;  %v2500_v49 = vand.u32 2147483648, %v6375_v16  ;;  %4837 = vpow2.f32 %v2955_v17  ;;  %2181 = vadd.xlane.f32.xlu1 %v2129_v42 }
 0x2e5   : > { %v3810_v21 = vmul.f32 %v6228_v41, %v3775_v40  ;;  %v6399_v9 = vmul.f32 0.6931472, %v4826_v54  ;;  %v2487_v56 = vsel %vm6384_vm7, %v2486_v48, %v2482_v30  ;;  %vm2494_vm10 = vweird.f32 %v6375_v16 }
 0x2e6   : > { %v4832_v45 = vpop.eup %4831  ;;  %v1596_v24 = vadd.f32 %v6340_v52, %v1595_v6  ;;  %v3520_v20 = vadd.f32 1e-08, %v2487_v56  ;;  %vm6407_vm11 = vcmp.eq.f32.partialorder %v2498_v15, 8.507059e+37  ;;  %v3682_v37 = vadd.f32 1e-08, %v3650_v31 }
 0x2e7   : > { %v3844_v10 = vsel %vm7801_vm9, %v3810_v21, 0.0  ;;  %v2490_v63 = vmul.f32 %v4832_v45, %v6375_v16  ;;  %v3136_v51 = vand.u32 2147483647, %v6382_v11  ;;  %v2227_v32 = vmul.f32 %v2085_v39, %v6177_v19 }
 0x2e8   : > { %v4834_v61 = vpop.eup %4833  ;;  %v6412_v26 = vadd.f32 %v3844_v10, %v6370_v28  ;;  %4839 = vlog2.f32 %v3520_v20  ;;  %v2501_v47 = vor.u32 1.1754944e-38, %v2500_v49  ;;  %vm3132_vm12 = vweird.f32 %v6382_v11  ;;  %v1598_v40 = vpop.f32.mrf.mxu3 }
 0x2e9   : > { %v2491_v12 = vsub.f32 1.0, %v2490_v63  ;;  %v6416_v25 = vadd.f32 1.0, %v4834_v61  ;;  %v4836_v57 = vpop.eup %4835  ;;  %v3138_v53 = vand.u32 2147483648, %v6382_v11  ;;  %2281 = vadd.xlane.f32.xlu0 %v2227_v32  ;;  %v2917_v1 = vsub.f32 0.0, %v2254_v33  ;;  %v2156_v49 = vpop.xlane.xlu2 %2155 }
 0x2ea   : > { %v2307_v54 = vsub.f32 0.0, %v2154_v38  ;;  %v4838_v28 = vpop.eup %4837  ;;  %vm2495_vm13 = vweird.f32 %v4832_v45  ;;  %v3128_v58 = vmul.f32 %v4836_v57, %v6382_v11  ;;  %v6422_v14 = vmul.f32 0.6931472, %v4830_v35 }
 0x2eb   : > { %v2492_v3 = vmul.f32 %v4832_v45, %v2491_v12  ;;  %4841 = vrcp.f32 %v6416_v25  ;;  %vm6424_vm14 = vcmp.eq.f32.partialorder %v3136_v51, 8.507059e+37  ;;  %v6428_v62 = vadd.f32 1.0, %v4838_v28  ;;  %vm2496_vm15 = vmor %vm2494_vm10, %vm2495_vm13 }
 0x2ec   : > { %4843 = vlog2.f32 %v3682_v37  ;;  %v3129_v34 = vsub.f32 1.0, %v3128_v58  ;;  %v2957_v27 = vmul.f32 1.442695, %v2917_v1  ;;  %v2345_v17 = vmul.f32 1.442695, %v2307_v54  ;;  %v2256_v37 = vpop.xlane.xlu1 %2255 }
 0x2ed   : > { %v2493_v23 = vadd.f32 %v4832_v45, %v2492_v3  ;;  %v3139_v55 = vor.u32 1.1754944e-38, %v3138_v53  ;;  %v2513_v43 = vand.u32 2147483647, %v6416_v25  ;;  %4845 = vrcp.f32 %v6428_v62 }
 0x2ee   : > { %v2087_v15 = vadd.f32 %v6308_v2, %v2086_v22  ;;  %v4840_v59 = vpop.eup %4839  ;;  %v3130_v6 = vmul.f32 %v4836_v57, %v3129_v34  ;;  %vm3133_vm0 = vweird.f32 %v4836_v57  ;;  %v2515_v42 = vand.u32 2147483648, %v6416_v25 }
 0x2ef   : > { %v2497_v13 = vsel %vm2496_vm15, %v4832_v45, %v2493_v23  ;;  %v3556_v31 = vmul.f32 0.6931472, %v4840_v59  ;;  %4847 = vpow2.f32 %v2957_v27  ;;  %v2130_v16 = vmul.f32 %v1596_v24, %v6173_v60  ;;  %vm3134_vm1 = vmor %vm3132_vm12, %vm3133_vm0 }
 0x2f0   : > { %v2502_v48 = vsel %vm6407_vm11, %v2501_v47, %v2497_v13  ;;  %v3131_v21 = vadd.f32 %v4836_v57, %v3130_v6  ;;  %4849 = vpow2.f32 %v2345_v17  ;;  %v6440_v30 = vadd.f32 %v6340_v52, %v1598_v40 }
 0x2f1   : > { %v4842_v39 = vpop.eup %4841  ;;  %v3521_v35 = vadd.f32 1e-08, %v2502_v48  ;;  %v3616_v56 = vsub.f32 0.0, %v3556_v31  ;;  %vm2509_vm2 = vweird.f32 %v6416_v25  ;;  %vm6446_vm3 = vcmp.eq.f32.partialorder %v2513_v43, 8.507059e+37  ;;  %2183 = vadd.xlane.f32.xlu0 %v2130_v16  ;;  %v2089_v43 = vpop.f32.mrf.mxu1 }
 0x2f2   : > { %v4844_v45 = vpop.eup %4843  ;;  %v2505_v10 = vmul.f32 %v4842_v39, %v6416_v25  ;;  %v3135_v60 = vsel %vm3134_vm1, %v4836_v57, %v3131_v21  ;;  %v2516_v24 = vor.u32 1.1754944e-38, %v2515_v42  ;;  %v2228_v63 = vmul.f32 %v2087_v15, %v6182_v44 }
 0x2f3   : > { %4851 = vlog2.f32 %v3521_v35  ;;  %v4846_v46 = vpop.eup %4845  ;;  %v3776_v33 = vsub.f32 %v3616_v56, %v6399_v9  ;;  %v3140_v11 = vsel %vm6424_vm14, %v3139_v55, %v3135_v60  ;;  %v2308_v61 = vsub.f32 0.0, %v2156_v49 }
 0x2f4   : > { %v2506_v38 = vsub.f32 1.0, %v2505_v10  ;;  %v3651_v51 = vsub.f32 1.0, %v3140_v11  ;;  %v3143_v32 = vmul.f32 %v4846_v46, %v6428_v62  ;;  %vm3147_vm4 = vweird.f32 %v6428_v62  ;;  %2283 = vadd.xlane.f32.xlu2 %v2228_v63 }
 0x2f5   : > { %v3151_v12 = vand.u32 2147483647, %v6428_v62  ;;  %v4848_v47 = vpop.eup %4847  ;;  %v3811_v57 = vmul.f32 %v6228_v41, %v3776_v33  ;;  %vm2510_vm5 = vweird.f32 %v4842_v39  ;;  %v2347_v9 = vmul.f32 1.442695, %v2308_v61 }
 0x2f6   : > { %v2507_v53 = vmul.f32 %v4842_v39, %v2506_v38  ;;  %v4850_v1 = vpop.eup %4849  ;;  %v3144_v54 = vsub.f32 1.0, %v3143_v32  ;;  %v3153_v28 = vand.u32 2147483648, %v6428_v62  ;;  %v6459_v3 = vadd.f32 1.0, %v4848_v47  ;;  %vm2511_vm6 = vmor %vm2509_vm2, %vm2510_vm5 }
 0x2f7   : > { %v2918_v58 = vsub.f32 0.0, %v2256_v37  ;;  %v3846_v22 = vsel %vm7801_vm9, %v3811_v57, 0.0  ;;  %v6462_v23 = vadd.f32 1.0, %v4850_v1  ;;  %4853 = vpow2.f32 %v2347_v9 }
 0x2f8   : > { %v2508_v29 = vadd.f32 %v4842_v39, %v2507_v53  ;;  %v3847_v27 = vadd.f32 %v3846_v22, %v6412_v26  ;;  %v3683_v17 = vadd.f32 1e-08, %v3651_v51  ;;  %v3145_v55 = vmul.f32 %v4846_v46, %v3144_v54  ;;  %v2258_v51 = vpop.xlane.xlu0 %2257 }
 0x2f9   : > { %v4852_v34 = vpop.eup %4851  ;;  %vm3148_vm7 = vweird.f32 %v4846_v46  ;;  %v6467_v15 = vmul.f32 0.6931472, %v4844_v45  ;;  %4855 = vrcp.f32 %v6459_v3  ;;  %v3154_v42 = vor.u32 1.1754944e-38, %v3153_v28  ;;  %v1600_v45 = vpop.f32.mrf.mxu3 }
 0x2fa   : > { %v3558_v40 = vmul.f32 0.6931472, %v4852_v34  ;;  %v2512_v59 = vsel %vm2511_vm6, %v4842_v39, %v2508_v29  ;;  %v3146_v6 = vadd.f32 %v4846_v46, %v3145_v55  ;;  %4857 = vrcp.f32 %v6462_v23  ;;  %vm3149_vm8 = vmor %vm3147_vm4, %vm3148_vm7  ;;  %v2091_v9 = vpop.f32.mrf.mxu1 }
 0x2fb   : > { %v2517_v13 = vsel %vm6446_vm3, %v2516_v24, %v2512_v59  ;;  %v2090_v25 = vadd.f32 %v6308_v2, %v2089_v43  ;;  %v2959_v48 = vmul.f32 1.442695, %v2918_v58  ;;  %4859 = vlog2.f32 %v3683_v17 }
 0x2fc   : > { %v3617_v26 = vsub.f32 0.0, %v3558_v40  ;;  %v3522_v31 = vadd.f32 1e-08, %v2517_v13  ;;  %v3150_v16 = vsel %vm3149_vm8, %v4846_v46, %v3146_v6  ;;  %vm3152_vm10 = vcmp.eq.f32.partialorder %v3151_v12, 8.507059e+37 }
 0x2fd   : > { %v3166_v39 = vand.u32 2147483647, %v6459_v3  ;;  %v4854_v35 = vpop.eup %4853  ;;  %v3155_v49 = vsel %vm3152_vm10, %v3154_v42, %v3150_v16  ;;  %v2131_v56 = vmul.f32 %v6440_v30, %v6177_v19  ;;  %v3168_v62 = vand.u32 2147483648, %v6459_v3  ;;  %v2158_v30 = vpop.xlane.xlu1 %2157 }
 0x2fe   : > { %v3777_v21 = vsub.f32 %v3617_v26, %v6422_v14  ;;  %4861 = vlog2.f32 %v3522_v31  ;;  %v3652_v10 = vsub.f32 1.0, %v3155_v49  ;;  %v2528_v20 = vand.u32 2147483647, %v6462_v23 }
 0x2ff   : > { %v6482_v60 = vadd.f32 1.0, %v4854_v35  ;;  %v4856_v24 = vpop.eup %4855  ;;  %v2530_v46 = vand.u32 2147483648, %v6462_v23  ;;  %4863 = vpow2.f32 %v2959_v48  ;;  %2185 = vadd.xlane.f32.xlu2 %v2131_v56  ;;  %v2229_v14 = vmul.f32 %v2090_v25, %v6186_v4 }
 0x300   : > { %v3812_v63 = vmul.f32 %v6228_v41, %v3777_v21  ;;  %v4858_v33 = vpop.eup %4857  ;;  %v3158_v11 = vmul.f32 %v4856_v24, %v6459_v3  ;;  %vm3162_vm11 = vweird.f32 %v6459_v3  ;;  %v1601_v19 = vadd.f32 %v6340_v52, %v1600_v45 }
 0x301   : > { %4865 = vrcp.f32 %v6482_v60  ;;  %vm6492_vm12 = vcmp.eq.f32.partialorder %v3166_v39, 8.507059e+37  ;;  %v2520_v37 = vmul.f32 %v4858_v33, %v6462_v23  ;;  %vm2524_vm13 = vweird.f32 %v6462_v23  ;;  %2285 = vadd.xlane.f32.xlu1 %v2229_v14  ;;  %v4860_v32 = vpop.eup %4859 }
 0x302   : > { %v3848_v38 = vsel %vm7801_vm9, %v3812_v63, 0.0  ;;  %v3684_v47 = vadd.f32 1e-08, %v3652_v10  ;;  %v3159_v57 = vsub.f32 1.0, %v3158_v11  ;;  %v3169_v53 = vor.u32 1.1754944e-38, %v3168_v62  ;;  %v1603_v10 = vpop.f32.mrf.mxu3  ;;  %v2260_v11 = vpop.xlane.xlu2 %2259 }
 0x303   : > { %v3849_v12 = vadd.f32 %v3848_v38, %v3847_v27  ;;  %v2521_v54 = vsub.f32 1.0, %v2520_v37  ;;  %vm6498_vm14 = vcmp.eq.f32.partialorder %v2528_v20, 8.507059e+37  ;;  %v2531_v58 = vor.u32 1.1754944e-38, %v2530_v46 }
 0x304   : > { %v4862_v1 = vpop.eup %4861  ;;  %v2309_v22 = vsub.f32 0.0, %v2158_v30  ;;  %v3160_v34 = vmul.f32 %v4856_v24, %v3159_v57  ;;  %vm3163_vm15 = vweird.f32 %v4856_v24  ;;  %v2919_v17 = vsub.f32 0.0, %v2258_v51 }
 0x305   : > { %v3560_v29 = vmul.f32 0.6931472, %v4862_v1  ;;  %v4864_v55 = vpop.eup %4863  ;;  %v6502_v43 = vmul.f32 0.6931472, %v4860_v32  ;;  %v2522_v27 = vmul.f32 %v4858_v33, %v2521_v54  ;;  %vm2525_vm0 = vweird.f32 %v4858_v33  ;;  %vm3164_vm1 = vmor %vm3162_vm11, %vm3163_vm15 }
 0x306   : > { %v2349_v40 = vmul.f32 1.442695, %v2309_v22  ;;  %4867 = vlog2.f32 %v3684_v47  ;;  %v3161_v6 = vadd.f32 %v4856_v24, %v3160_v34  ;;  %v6504_v42 = vadd.f32 1.0, %v4864_v55  ;;  %vm2526_vm2 = vmor %vm2524_vm13, %vm2525_vm0 }
 0x307   : > { %v4866_v59 = vpop.eup %4865  ;;  %v3618_v13 = vsub.f32 0.0, %v3560_v29  ;;  %v2523_v26 = vadd.f32 %v4858_v33, %v2522_v27  ;;  %v2961_v25 = vmul.f32 1.442695, %v2919_v17  ;;  %v2543_v39 = vand.u32 2147483647, %v6482_v60 }
 0x308   : > { %v2535_v31 = vmul.f32 %v4866_v59, %v6482_v60  ;;  %4869 = vpow2.f32 %v2349_v40  ;;  %v3165_v16 = vsel %vm3164_vm1, %v4856_v24, %v3161_v6  ;;  %v2545_v49 = vand.u32 2147483648, %v6482_v60 }
 0x309   : > { %v3778_v48 = vsub.f32 %v3618_v13, %v6467_v15  ;;  %4871 = vrcp.f32 %v6504_v42  ;;  %v3170_v35 = vsel %vm6492_vm12, %v3169_v53, %v3165_v16  ;;  %v2527_v3 = vsel %vm2526_vm2, %v4858_v33, %v2523_v26  ;;  %v2094_v33 = vpop.f32.mrf.mxu1 }
 0x30a   : > { %v2536_v21 = vsub.f32 1.0, %v2535_v31  ;;  %v3653_v56 = vsub.f32 1.0, %v3170_v35  ;;  %v2532_v15 = vsel %vm6498_vm14, %v2531_v58, %v2527_v3  ;;  %v2092_v23 = vadd.f32 %v6308_v2, %v2091_v9  ;;  %v2160_v9 = vpop.xlane.xlu0 %2159 }
 0x30b   : > { %v3813_v45 = vmul.f32 %v6228_v41, %v3778_v48  ;;  %v3523_v62 = vadd.f32 1e-08, %v2532_v15  ;;  %vm2540_vm3 = vweird.f32 %v4866_v59  ;;  %4873 = vpow2.f32 %v2961_v25  ;;  %v1605_v25 = vpop.f32.mrf.mxu3 }
 0x30c   : > { %v2537_v20 = vmul.f32 %v4866_v59, %v2536_v21  ;;  %v4868_v24 = vpop.eup %4867  ;;  %vm2539_vm4 = vweird.f32 %v6482_v60  ;;  %vm6523_vm5 = vcmp.eq.f32.partialorder %v2543_v39, 8.507059e+37  ;;  %v2132_v14 = vmul.f32 %v1601_v19, %v6182_v44 }
 0x30d   : > { %v3850_v63 = vsel %vm7801_vm9, %v3813_v45, 0.0  ;;  %4875 = vlog2.f32 %v3523_v62  ;;  %v2546_v37 = vor.u32 1.1754944e-38, %v2545_v49  ;;  %v3685_v32 = vadd.f32 1e-08, %v3653_v56  ;;  %vm2541_vm6 = vmor %vm2539_vm4, %vm2540_vm3  ;;  %v2162_v45 = vpop.xlane.xlu2 %2161 }
 0x30e   : > { %v4870_v30 = vpop.eup %4869  ;;  %v6528_v38 = vadd.f32 %v3850_v63, %v3849_v12  ;;  %v2538_v61 = vadd.f32 %v4866_v59, %v2537_v20  ;;  %v1604_v60 = vadd.f32 %v6340_v52, %v1603_v10  ;;  %2187 = vadd.xlane.f32.xlu1 %v2132_v14  ;;  %v2230_v57 = vmul.f32 %v2092_v23, %v6192_v8 }
 0x30f   : > { %v4872_v51 = vpop.eup %4871  ;;  %v6531_v47 = vadd.f32 1.0, %v4870_v30  ;;  %v2095_v12 = vadd.f32 %v6308_v2, %v2094_v33  ;;  %v2920_v53 = vsub.f32 0.0, %v2260_v11  ;;  %vm3177_vm7 = vweird.f32 %v6504_v42  ;;  %v2262_v33 = vpop.xlane.xlu1 %2261 }
 0x310   : > { %v2542_v44 = vsel %vm2541_vm6, %v4866_v59, %v2538_v61  ;;  %v3173_v19 = vmul.f32 %v4872_v51, %v6504_v42  ;;  %v3181_v54 = vand.u32 2147483647, %v6504_v42  ;;  %2287 = vadd.xlane.f32.xlu0 %v2230_v57  ;;  %v3183_v29 = vand.u32 2147483648, %v6504_v42 }
 0x311   : > { %v2547_v1 = vsel %vm6523_vm5, %v2546_v37, %v2542_v44  ;;  %4877 = vrcp.f32 %v6531_v47  ;;  %v4874_v28 = vpop.eup %4873  ;;  %v2963_v34 = vmul.f32 1.442695, %v2920_v53  ;;  %vm3178_vm8 = vweird.f32 %v4872_v51  ;;  %v2096_v53 = vpop.f32.mrf.mxu1 }
 0x312   : > { %v3524_v58 = vadd.f32 1e-08, %v2547_v1  ;;  %v3174_v22 = vsub.f32 1.0, %v3173_v19  ;;  %4879 = vlog2.f32 %v3685_v32  ;;  %v6543_v17 = vadd.f32 1.0, %v4874_v28  ;;  %vm3179_vm11 = vmor %vm3177_vm7, %vm3178_vm8 }
 0x313   : > { %v2310_v55 = vsub.f32 0.0, %v2160_v9  ;;  %v4876_v27 = vpop.eup %4875  ;;  %v2558_v59 = vand.u32 2147483647, %v6531_v47  ;;  %v2231_v13 = vmul.f32 %v2095_v12, %v6196_v5  ;;  %v3724_v6 = vmul.f32 0.6931472, %v4868_v24 }
 0x314   : > { %4881 = vlog2.f32 %v3524_v58  ;;  %v3175_v40 = vmul.f32 %v4872_v51, %v3174_v22  ;;  %v3562_v26 = vmul.f32 0.6931472, %v4876_v27  ;;  %v2560_v31 = vand.u32 2147483648, %v6531_v47 }
 0x315   : > { %4883 = vrcp.f32 %v6543_v17  ;;  %vm6549_vm10 = vcmp.eq.f32.partialorder %v3181_v54, 8.507059e+37  ;;  %v3184_v39 = vor.u32 1.1754944e-38, %v3183_v29  ;;  %2289 = vadd.xlane.f32.xlu2 %v2231_v13  ;;  %vm2554_vm12 = vweird.f32 %v6531_v47 }
 0x316   : > { %v3176_v48 = vadd.f32 %v4872_v51, %v3175_v40  ;;  %4885 = vpow2.f32 %v2963_v34  ;;  %v3619_v3 = vsub.f32 0.0, %v3562_v26  ;;  %v2351_v21 = vmul.f32 1.442695, %v2310_v55  ;;  %v1608_v26 = vpop.f32.mrf.mxu3 }
 0x317   : > { %v4878_v35 = vpop.eup %4877  ;;  %v2133_v49 = vmul.f32 %v1604_v60, %v6186_v4  ;;  %vm6559_vm13 = vcmp.eq.f32.partialorder %v2558_v59, 8.507059e+37  ;;  %v1606_v10 = vadd.f32 %v6340_v52, %v1605_v25  ;;  %v2561_v24 = vor.u32 1.1754944e-38, %v2560_v31  ;;  %v2266_v59 = vpop.xlane.xlu2 %2265 }
 0x318   : > { %v3180_v56 = vsel %vm3179_vm11, %v4872_v51, %v3176_v48  ;;  %v2550_v15 = vmul.f32 %v4878_v35, %v6531_v47  ;;  %v6564_v62 = vpop.eup %4879  ;;  %v3779_v42 = vsub.f32 %v3619_v3, %v6502_v43  ;;  %4887 = vpow2.f32 %v2351_v21  ;;  %v2164_v21 = vpop.xlane.xlu1 %2163 }
 0x319   : > { %v3185_v20 = vsel %vm6549_vm10, %v3184_v39, %v3180_v56  ;;  %2189 = vadd.xlane.f32.xlu0 %v2133_v49  ;;  %vm3192_vm14 = vweird.f32 %v6543_v17  ;;  %v2311_v14 = vsub.f32 0.0, %v2162_v45  ;;  %vm2555_vm15 = vweird.f32 %v4878_v35  ;;  %v2264_v49 = vpop.xlane.xlu0 %2263  ;;  %v6605_v56 = vld [vmem:[%s7841_s24 + $0x1] ss:$0 sm:$0xff] }
 0x31a   : > { %v4882_v4 = vpop.eup %4881  ;;  %v3654_v63 = vsub.f32 1.0, %v3185_v20  ;;  %v2551_v46 = vsub.f32 1.0, %v2550_v15  ;;  %v3814_v30 = vmul.f32 %v6228_v41, %v3779_v42  ;;  %v3196_v43 = vand.u32 2147483647, %v6543_v17  ;;  %vm2556_vm0 = vmor %vm2554_vm12, %vm2555_vm15 }
 0x31b   : > { %v4884_v11 = vpop.eup %4883  ;;  %v3564_v61 = vmul.f32 0.6931472, %v4882_v4  ;;  %v2134_v57 = vmul.f32 %v1606_v10, %v6192_v8  ;;  %v2353_v9 = vmul.f32 1.442695, %v2311_v14  ;;  %v3198_v58 = vand.u32 2147483648, %v6543_v17 }
 0x31c   : > { %v4886_v37 = vpop.eup %4885  ;;  %v3686_v51 = vadd.f32 1e-08, %v3654_v63  ;;  %v2552_v32 = vmul.f32 %v4878_v35, %v2551_v46  ;;  %v3188_v60 = vmul.f32 %v4884_v11, %v6543_v17  ;;  %v3852_v44 = vsel %vm7801_vm9, %v3814_v30, 0.0 }
 0x31d   : > { %v3620_v19 = vsub.f32 0.0, %v3564_v61  ;;  %v6575_v12 = vadd.f32 1.0, %v4886_v37  ;;  %v3853_v1 = vadd.f32 %v3852_v44, %v6528_v38  ;;  %2191 = vadd.xlane.f32.xlu2 %v2134_v57  ;;  %vm3193_vm1 = vweird.f32 %v4884_v11 }
 0x31e   : > { %v2553_v54 = vadd.f32 %v4878_v35, %v2552_v32  ;;  %v3189_v28 = vsub.f32 1.0, %v3188_v60  ;;  %v4888_v22 = vpop.eup %4887  ;;  %v2921_v8 = vsub.f32 0.0, %v2262_v33  ;;  %vm6588_vm2 = vcmp.eq.f32.partialorder %v3196_v43, 8.507059e+37  ;;  %vm3194_vm3 = vmor %vm3192_vm14, %vm3193_vm1 }
 0x31f   : > { %v3780_v29 = vsub.f32 %v3620_v19, %v3724_v6  ;;  %4889 = vrcp.f32 %v6575_v12  ;;  %v6583_v27 = vadd.f32 1.0, %v4888_v22  ;;  %v3211_v6 = vand.u32 2147483647, %v6575_v12 }
 0x320   : > { %4891 = vlog2.f32 %v3686_v51  ;;  %v2557_v34 = vsel %vm2556_vm0, %v4878_v35, %v2553_v54  ;;  %v3190_v55 = vmul.f32 %v4884_v11, %v3189_v28  ;;  %v3199_v25 = vor.u32 1.1754944e-38, %v3198_v58 }
 0x321   : > { %v3815_v38 = vmul.f32 %v6228_v41, %v3780_v29  ;;  %v2562_v40 = vsel %vm6559_vm13, %v2561_v24, %v2557_v34  ;;  %4893 = vpow2.f32 %v2353_v9  ;;  %v3213_v48 = vand.u32 2147483648, %v6575_v12  ;;  %v1610_v34 = vpop.f32.mrf.mxu3 }
 0x322   : > { %v3525_v47 = vadd.f32 1e-08, %v2562_v40  ;;  %v3191_v13 = vadd.f32 %v4884_v11, %v3190_v55  ;;  %4895 = vrcp.f32 %v6583_v27  ;;  %v2097_v16 = vadd.f32 %v6308_v2, %v2096_v53 }
 0x323   : > { %v3854_v31 = vsel %vm7801_vm9, %v3815_v38, 0.0  ;;  %v2965_v3 = vmul.f32 1.442695, %v2921_v8  ;;  %v6609_v17 = vadd.f32 %v6605_v56, %v6028_v0  ;;  %v3726_v15 = vmul.f32 0.6931472, %v6564_v62  ;;  %v2099_v62 = vpop.f32.mrf.mxu1 }
 0x324   : > { %v6600_v39 = vadd.f32 %v3854_v31, %v3853_v1  ;;  %4897 = vlog2.f32 %v3525_v47  ;;  %v3195_v35 = vsel %vm3194_vm3, %v4884_v11, %v3191_v13  ;;  %v1609_v10 = vadd.f32 %v6340_v52, %v1608_v26 }
 0x325   : > { %v4890_v45 = vpop.eup %4889  ;;  %v3200_v23 = vsel %vm6588_vm2, %v3199_v25, %v3195_v35  ;;  %vm3207_vm4 = vweird.f32 %v6575_v12  ;;  %vm6617_vm5 = vcmp.eq.f32.partialorder %v3211_v6, 8.507059e+37  ;;  %4899 = vpow2.f32 %v2965_v3 }
 0x326   : > { %v4892_v42 = vpop.eup %4891  ;;  %v3203_v20 = vmul.f32 %v4890_v45, %v6575_v12  ;;  %v3214_v0 = vor.u32 1.1754944e-38, %v3213_v48  ;;  %v2232_v63 = vmul.f32 %v2097_v16, %v6208_v7  ;;  %v2312_v46 = vsub.f32 0.0, %v2164_v21 }
 0x327   : > { %v4894_v4 = vpop.eup %4893  ;;  %v2922_v14 = vsub.f32 0.0, %v2264_v49  ;;  %v3655_v11 = vsub.f32 1.0, %v3200_v23  ;;  %v2573_v61 = vand.u32 2147483647, %v6583_v27  ;;  %vm2569_vm6 = vweird.f32 %v6583_v27 }
 0x328   : > { %v4896_v33 = vpop.eup %4895  ;;  %v3204_v30 = vsub.f32 1.0, %v3203_v20  ;;  %v6623_v43 = vadd.f32 1.0, %v4894_v4  ;;  %v2575_v51 = vand.u32 2147483648, %v6583_v27  ;;  %2291 = vadd.xlane.f32.xlu1 %v2232_v63  ;;  %v2355_v32 = vmul.f32 1.442695, %v2312_v46 }
 0x329   : > { %v2565_v37 = vmul.f32 %v4896_v33, %v6583_v27  ;;  %vm3208_vm7 = vweird.f32 %v4890_v45  ;;  %v2100_v44 = vadd.f32 %v6308_v2, %v2099_v62  ;;  %v2967_v19 = vmul.f32 1.442695, %v2922_v14 }
 0x32a   : > { %v4898_v60 = vpop.eup %4897  ;;  %v3205_v57 = vmul.f32 %v4890_v45, %v3204_v30  ;;  %v6629_v53 = vmul.f32 0.6931472, %v4892_v42  ;;  %4901 = vrcp.f32 %v6623_v43  ;;  %v3687_v28 = vadd.f32 1e-08, %v3655_v11  ;;  %vm3209_vm10 = vmor %vm3207_vm4, %vm3208_vm7 }
 0x32b   : > { %v3566_v9 = vmul.f32 0.6931472, %v4898_v60  ;;  %v2566_v1 = vsub.f32 1.0, %v2565_v37  ;;  %v4900_v54 = vpop.eup %4899  ;;  %vm6632_vm8 = vcmp.eq.f32.partialorder %v2573_v61, 8.507059e+37  ;;  %4903 = vpow2.f32 %v2355_v32  ;;  %v2101_v63 = vpop.f32.mrf.mxu1 }
 0x32c   : > { %v3206_v58 = vadd.f32 %v4890_v45, %v3205_v57  ;;  %vm2570_vm11 = vweird.f32 %v4896_v33  ;;  %v6638_v8 = vadd.f32 1.0, %v4900_v54  ;;  %4905 = vpow2.f32 %v2967_v19 }
 0x32d   : > { %v3621_v29 = vsub.f32 0.0, %v3566_v9  ;;  %v2567_v2 = vmul.f32 %v4896_v33, %v2566_v1  ;;  %v2135_v38 = vmul.f32 %v1609_v10, %v6196_v5  ;;  %v2233_v40 = vmul.f32 %v2100_v44, %v6225_v36  ;;  %vm2571_vm12 = vmor %vm2569_vm6, %vm2570_vm11  ;;  %v2166_v10 = vpop.xlane.xlu0 %2165 }
 0x32e   : > { %v3210_v55 = vsel %vm3209_vm10, %v4890_v45, %v3206_v58  ;;  %4907 = vrcp.f32 %v6638_v8  ;;  %v2576_v26 = vor.u32 1.1754944e-38, %v2575_v51  ;;  %v6648_v31 = vadd.f32 %v6340_v52, %v1610_v34  ;;  %v6675_v51 = vld [vmem:[%s5829_s26] ss:$0 sm:$0xff]  ;;  %s4495_s26 = sshll.u32 %s7995_s30, 3 }
 0x32f   : > { %v3781_v47 = vsub.f32 %v3621_v29, %v3726_v15  ;;  %v3215_v13 = vsel %vm6617_vm5, %v3214_v0, %v3210_v55  ;;  %v2568_v6 = vadd.f32 %v4896_v33, %v2567_v2  ;;  %4909 = vlog2.f32 %v3687_v28  ;;  %2293 = vadd.xlane.f32.xlu0 %v2233_v40  ;;  %v1613_v40 = vpop.f32.mrf.mxu3  ;;  %s3927_s27 = scalar_lea.hbm %s7998_s6, %s4495_s26 }
 0x330   : > { %v3656_v12 = vsub.f32 1.0, %v3215_v13  ;;  %v4902_v5 = vpop.eup %4901  ;;  %vm2584_vm13 = vweird.f32 %v6623_v43  ;;  %2193 = vadd.xlane.f32.xlu1 %v2135_v38  ;;  %v2923_v16 = vsub.f32 0.0, %v2266_v59  ;;  %v2588_v21 = vand.u32 2147483647, %v6623_v43  ;;  %s3931_s17 = sshll.u32 %s3927_s27, 4  ;;  %s3932_s17 = int_to_ptr.hbm [resolvable:$true] %s3931_s17 }
 0x331   : > { %v3816_v25 = vmul.f32 %v6228_v41, %v3781_v47  ;;  %v2572_v48 = vsel %vm2571_vm12, %v4896_v33, %v2568_v6  ;;  %v4904_v35 = vpop.eup %4903  ;;  %v2580_v27 = vmul.f32 %v4902_v5, %v6623_v43  ;;  %v2590_v52 = vand.u32 2147483648, %v6623_v43  ;;  %s5367_s23 = sshra.s32 %s3932_s17, 4  ;;  %s5368_s23 = int_to_ptr.hbm [resolvable:$true] %s5367_s23 }
 0x332   : > { %v2577_v3 = vsel %vm6632_vm8, %v2576_v26, %v2572_v48  ;;  %v3226_v15 = vand.u32 2147483647, %v6638_v8  ;;  %v3228_v23 = vand.u32 2147483648, %v6638_v8  ;;  %v4906_v42 = vpop.eup %4905  ;;  %v3688_v24 = vadd.f32 1e-08, %v3656_v12  ;;  %s5369_s28 = scalar_lea.hbm %s5368_s23, 8  ;;  %p5374_p3 = scmp.lt.s32.totalorder %s5368_s23, %s7998_s6 }
 0x333   : > { %v3856_v49 = vsel %vm7801_vm9, %v3816_v25, 0.0  ;;  %v3526_v45 = vadd.f32 1e-08, %v2577_v3  ;;  %v2581_v4 = vsub.f32 1.0, %v2580_v27  ;;  %v6663_v0 = vadd.f32 1.0, %v4904_v35  ;;  %p5370_p6 = scmp.ne.s32.totalorder %s5368_s23, %s5369_s28  ;;  %p5375_p12 = scmp.lt.s32.totalorder %s5373_s3, %s5369_s28 }
 0x334   : > { %v6661_v20 = vadd.f32 %v3856_v49, %v6600_v39  ;;  %v4908_v62 = vpop.eup %4907  ;;  %vm2585_vm14 = vweird.f32 %v4902_v5  ;;  %v6665_v46 = vadd.f32 1.0, %v4906_v42  ;;  %v2969_v14 = vmul.f32 1.442695, %v2923_v16  ;;  %v2168_v49 = vpop.xlane.xlu2 %2167 }
 0x335   : > { %4911 = vlog2.f32 %v3526_v45  ;;  %v4910_v33 = vpop.eup %4909  ;;  %v2582_v11 = vmul.f32 %v4902_v5, %v2581_v4  ;;  %v3218_v30 = vmul.f32 %v4908_v62, %v6638_v8  ;;  %v2313_v39 = vsub.f32 0.0, %v2166_v10  ;;  %vm2586_vm1 = vmor %vm2584_vm13, %vm2585_vm14  ;;  %p5371_p11 = pnand %p5370_p6, %p5749_p7  ;;  %p5376_p13 = por %p5375_p12, %p5374_p3 }
 0x336   : > { %4913 = vrcp.f32 %v6663_v0  ;;  %vm6669_vm15 = vcmp.eq.f32.partialorder %v2588_v21, 8.507059e+37  ;;  %v2591_v37 = vor.u32 1.1754944e-38, %v2590_v52  ;;  %v2102_v32 = vadd.f32 %v6675_v51, %v2101_v63 }
 0x337   : > { %4915 = vrcp.f32 %v6665_v46  ;;  %v2583_v60 = vadd.f32 %v4902_v5, %v2582_v11  ;;  %v3219_v57 = vsub.f32 1.0, %v3218_v30  ;;  %vm3222_vm0 = vweird.f32 %v6638_v8  ;;  %p5372_p0 = pneg %p5371_p11 }
 0x338   : > { %4917 = vlog2.f32 %v3688_v24  ;;  %v6679_v44 = vmul.f32 0.6931472, %v4910_v33  ;;  %vm6684_vm2 = vcmp.eq.f32.partialorder %v3226_v15, 8.507059e+37  ;;  %v3229_v9 = vor.u32 1.1754944e-38, %v3228_v23 }
 0x339   : > { %4919 = vpow2.f32 %v2969_v14  ;;  %v2587_v1 = vsel %vm2586_vm1, %v4902_v5, %v2583_v60  ;;  %v3220_v54 = vmul.f32 %v4908_v62, %v3219_v57  ;;  %vm3223_vm3 = vweird.f32 %v4908_v62  ;;  %p5377_p1 = pnand %p5376_p13, %p5372_p0 }
 0x33a   : > { %v2357_v28 = vmul.f32 1.442695, %v2313_v39  ;;  %v2592_v22 = vsel %vm6669_vm15, %v2591_v37, %v2587_v1  ;;  %vm2599_vm4 = vweird.f32 %v6663_v0  ;;  %v2603_v29 = vand.u32 2147483647, %v6663_v0  ;;  %vm3224_vm5 = vmor %vm3222_vm0, %vm3223_vm3 }
 0x33b   : > { %v4912_v58 = vpop.eup %4911  ;;  %v2605_v43 = vand.u32 2147483648, %v6663_v0  ;;  %v3527_v55 = vadd.f32 1e-08, %v2592_v22  ;;  %v3221_v38 = vadd.f32 %v4908_v62, %v3220_v54  ;;  %vm3237_vm6 = vweird.f32 %v6665_v46  ;;  %v6739_v22 = vld [vmem:[%s7841_s24 + $0x3] ss:$0 sm:$0xff] }
 0x33c   : > { %v4914_v2 = vpop.eup %4913  ;;  %v3568_v34 = vmul.f32 0.6931472, %v4912_v58  ;;  %4921 = vpow2.f32 %v2357_v28  ;;  %v2234_v13 = vmul.f32 %v2102_v32, %v6609_v17  ;;  %v2136_v6 = vmul.f32 %v6648_v31, %v6208_v7  ;;  %v2268_v7 = vpop.xlane.xlu1 %2267 }
 0x33d   : > { %v4916_v59 = vpop.eup %4915  ;;  %v2595_v47 = vmul.f32 %v4914_v2, %v6663_v0  ;;  %4923 = vlog2.f32 %v3527_v55  ;;  %v3225_v5 = vsel %vm3224_vm5, %v4908_v62, %v3221_v38  ;;  %vm6703_vm7 = vcmp.eq.f32.partialorder %v2603_v29, 8.507059e+37  ;;  %v1615_v0 = vpop.f32.mrf.mxu3 }
 0x33e   : > { %v4918_v12 = vpop.eup %4917  ;;  %v3622_v26 = vsub.f32 0.0, %v3568_v34  ;;  %v3233_v25 = vmul.f32 %v4916_v59, %v6665_v46  ;;  %v3230_v8 = vsel %vm6684_vm2, %v3229_v9, %v3225_v5  ;;  %v3241_v3 = vand.u32 2147483647, %v6665_v46  ;;  %2295 = vadd.xlane.f32.xlu2 %v2234_v13  ;;  %2195 = vadd.xlane.f32.xlu0 %v2136_v6  ;;  %v2270_v13 = vpop.xlane.xlu0 %2269 }
 0x33f   : > { %v4920_v48 = vpop.eup %4919  ;;  %v2596_v16 = vsub.f32 1.0, %v2595_v47  ;;  %v3657_v27 = vsub.f32 1.0, %v3230_v8  ;;  %vm2600_vm8 = vweird.f32 %v4914_v2  ;;  %v2606_v15 = vor.u32 1.1754944e-38, %v2605_v43 }
 0x340   : > { %v3782_v31 = vsub.f32 %v3622_v26, %v6629_v53  ;;  %v3234_v21 = vsub.f32 1.0, %v3233_v25  ;;  %v6709_v52 = vadd.f32 1.0, %v4920_v48  ;;  %v3243_v23 = vand.u32 2147483648, %v6665_v46  ;;  %vm2601_vm12 = vmor %vm2599_vm4, %vm2600_vm8 }
 0x341   : > { %v2597_v45 = vmul.f32 %v4914_v2, %v2596_v16  ;;  %vm3238_vm10 = vweird.f32 %v4916_v59  ;;  %v6714_v4 = vmul.f32 0.6931472, %v4918_v12  ;;  %vm6716_vm11 = vcmp.eq.f32.partialorder %v3241_v3, 8.507059e+37 }
 0x342   : > { %v4922_v10 = vpop.eup %4921  ;;  %v3817_v42 = vmul.f32 %v6228_v41, %v3782_v31  ;;  %v3235_v24 = vmul.f32 %v4916_v59, %v3234_v21  ;;  %4925 = vrcp.f32 %v6709_v52  ;;  %v2314_v62 = vsub.f32 0.0, %v2168_v49  ;;  %vm3239_vm13 = vmor %vm3237_vm6, %vm3238_vm10  ;;  %v6755_v21 = vpop.f32.mrf.mxu1 }
 0x343   : > { %v2598_v53 = vadd.f32 %v4914_v2, %v2597_v45  ;;  %v4924_v14 = vpop.eup %4923  ;;  %v3689_v11 = vadd.f32 1e-08, %v3657_v27  ;;  %v6724_v39 = vadd.f32 1.0, %v4922_v10  ;;  %v3244_v60 = vor.u32 1.1754944e-38, %v3243_v23 }
 0x344   : > { %v3858_v33 = vsel %vm7801_vm9, %v3817_v42, 0.0  ;;  %v3236_v30 = vadd.f32 %v4916_v59, %v3235_v24  ;;  %v3570_v37 = vmul.f32 0.6931472, %v4924_v14  ;;  %v3258_v9 = vand.u32 2147483648, %v6709_v52  ;;  %v2170_v38 = vpop.xlane.xlu1 %2169 }
 0x345   : > { %v3859_v61 = vadd.f32 %v3858_v33, %v6661_v20  ;;  %v2602_v32 = vsel %vm2601_vm12, %v4914_v2, %v2598_v53  ;;  %4927 = vrcp.f32 %v6724_v39  ;;  %v2924_v28 = vsub.f32 0.0, %v2268_v7  ;;  %v2272_v7 = vpop.xlane.xlu2 %2271 }
 0x346   : > { %v2607_v57 = vsel %vm6703_vm7, %v2606_v15, %v2602_v32  ;;  %v3240_v19 = vsel %vm3239_vm13, %v4916_v59, %v3236_v30  ;;  %v3623_v1 = vsub.f32 0.0, %v3570_v37  ;;  %4929 = vlog2.f32 %v3689_v11 }
 0x347   : > { %v3528_v54 = vadd.f32 1e-08, %v2607_v57  ;;  %v3245_v20 = vsel %vm6716_vm11, %v3244_v60, %v3240_v19  ;;  %v1614_v29 = vadd.f32 %v6739_v22, %v1613_v40  ;;  %v2359_v43 = vmul.f32 1.442695, %v2314_v62  ;;  %v2172_v60 = vpop.xlane.xlu0 %2171 }
 0x348   : > { %v4926_v58 = vpop.eup %4925  ;;  %v3658_v46 = vsub.f32 1.0, %v3245_v20  ;;  %v3783_v2 = vsub.f32 %v3623_v1, %v6679_v44  ;;  %v1616_v55 = vadd.f32 %v6739_v22, %v1615_v0  ;;  %vm3252_vm14 = vweird.f32 %v6709_v52 }
 0x349   : > { %4931 = vlog2.f32 %v3528_v54  ;;  %v3248_v34 = vmul.f32 %v4926_v58, %v6709_v52  ;;  %v3256_v59 = vand.u32 2147483647, %v6709_v52  ;;  %v3259_v47 = vor.u32 1.1754944e-38, %v3258_v9 }
 0x34a   : > { %4933 = vpow2.f32 %v2359_v43  ;;  %v3818_v6 = vmul.f32 %v6228_v41, %v3783_v2  ;;  %v3690_v12 = vadd.f32 1e-08, %v3658_v46  ;;  %v2971_v26 = vmul.f32 1.442695, %v2924_v28  ;;  %v2106_v43 = vpop.f32.mrf.mxu1 }
 0x34b   : > { %v3249_v40 = vsub.f32 1.0, %v3248_v34  ;;  %v4928_v5 = vpop.eup %4927  ;;  %v2618_v44 = vand.u32 2147483647, %v6724_v39  ;;  %v2620_v25 = vand.u32 2147483648, %v6724_v39  ;;  %v2137_v48 = vmul.f32 %v1614_v29, %v6225_v36 }
 0x34c   : > { %v2315_v8 = vsub.f32 0.0, %v2170_v38  ;;  %v3860_v16 = vsel %vm7801_vm9, %v3818_v6, 0.0  ;;  %vm3253_vm15 = vweird.f32 %v4926_v58  ;;  %v2610_v3 = vmul.f32 %v4928_v5, %v6724_v39  ;;  %v6753_v31 = vpop.eup %4929 }
 0x34d   : > { %v3250_v35 = vmul.f32 %v4926_v58, %v3249_v40  ;;  %v3861_v27 = vadd.f32 %v3860_v16, %v3859_v61  ;;  %4935 = vpow2.f32 %v2971_v26  ;;  %2197 = vadd.xlane.f32.xlu2 %v2137_v48  ;;  %v2925_v45 = vsub.f32 0.0, %v2270_v13  ;;  %vm3254_vm0 = vmor %vm3252_vm14, %vm3253_vm15 }
 0x34e   : > { %v2361_v49 = vmul.f32 1.442695, %v2315_v8  ;;  %4937 = vlog2.f32 %v3690_v12  ;;  %v2611_v23 = vsub.f32 1.0, %v2610_v3  ;;  %v2138_v10 = vmul.f32 %v1616_v55, %v6609_v17 }
 0x34f   : > { %v4932_v15 = vpop.eup %4931  ;;  %v3251_v36 = vadd.f32 %v4926_v58, %v3250_v35  ;;  %v2973_v53 = vmul.f32 1.442695, %v2925_v45  ;;  %v2926_v63 = vsub.f32 0.0, %v2272_v7  ;;  %vm2615_vm1 = vweird.f32 %v4928_v5 }
 0x350   : > { %v4934_v42 = vpop.eup %4933  ;;  %v3572_v24 = vmul.f32 0.6931472, %v4932_v15  ;;  %4939 = vpow2.f32 %v2361_v49  ;;  %v2612_v14 = vmul.f32 %v4928_v5, %v2611_v23  ;;  %2199 = vadd.xlane.f32.xlu1 %v2138_v10  ;;  %vm3257_vm2 = vcmp.eq.f32.partialorder %v3256_v59, 8.507059e+37  ;;  %v1618_v59 = vpop.f32.mrf.mxu3 }
 0x351   : > { %v3255_v62 = vsel %vm3254_vm0, %v4926_v58, %v3251_v36  ;;  %v6761_v33 = vadd.f32 1.0, %v4934_v42  ;;  %4941 = vpow2.f32 %v2973_v53  ;;  %v2975_v30 = vmul.f32 1.442695, %v2926_v63 }
 0x352   : > { %v3624_v11 = vsub.f32 0.0, %v3572_v24  ;;  %v3260_v17 = vsel %vm3257_vm2, %v3259_v47, %v3255_v62  ;;  %v2613_v61 = vadd.f32 %v4928_v5, %v2612_v14  ;;  %vm2614_vm3 = vweird.f32 %v6724_v39 }
 0x353   : > { %4943 = vrcp.f32 %v6761_v33  ;;  %v4936_v52 = vpop.eup %4935  ;;  %vm2616_vm4 = vmor %vm2614_vm3, %vm2615_vm1  ;;  %v2621_v32 = vor.u32 1.1754944e-38, %v2620_v25  ;;  %vm2619_vm5 = vcmp.eq.f32.partialorder %v2618_v44, 8.507059e+37  ;;  %v3659_v54 = vsub.f32 1.0, %v3260_v17 }
 0x354   : > { %v3784_v37 = vsub.f32 %v3624_v11, %v6714_v4  ;;  %v4938_v57 = vpop.eup %4937  ;;  %v2617_v19 = vsel %vm2616_vm4, %v4928_v5, %v2613_v61  ;;  %v6766_v9 = vadd.f32 1.0, %v4936_v52  ;;  %4945 = vpow2.f32 %v2975_v30 }
 0x355   : > { %v2622_v20 = vsel %vm2619_vm5, %v2621_v32, %v2617_v19  ;;  %v6771_v39 = vadd.f32 %v6605_v56, %v6034_v18  ;;  %v2316_v4 = vsub.f32 0.0, %v2172_v60  ;;  %v2633_v29 = vand.u32 2147483647, %v6761_v33 }
 0x356   : > { %v4940_v0 = vpop.eup %4939  ;;  %v3819_v1 = vmul.f32 %v6228_v41, %v3784_v37  ;;  %v3529_v28 = vadd.f32 1e-08, %v2622_v20  ;;  %4947 = vrcp.f32 %v6766_v9  ;;  %v2635_v38 = vand.u32 2147483648, %v6761_v33  ;;  %v6831_v37 = vpop.xlane.xlu1 %2273 }
 0x357   : > { %v4942_v58 = vpop.eup %4941  ;;  %v6776_v2 = vadd.f32 1.0, %v4940_v0  ;;  %v6785_v47 = vadd.f32 %v6605_v56, %v6049_v50  ;;  %v3691_v13 = vadd.f32 1e-08, %v3659_v54  ;;  %v3734_v40 = vmul.f32 0.6931472, %v6753_v31 }
 0x358   : > { %v3862_v46 = vsel %vm7801_vm9, %v3819_v1, 0.0  ;;  %4949 = vlog2.f32 %v3529_v28  ;;  %v6781_v18 = vadd.f32 1.0, %v4942_v58  ;;  %v2105_v26 = vadd.f32 %v6675_v51, %v6755_v21 }
 0x359   : > { %v4944_v34 = vpop.eup %4943  ;;  %v6778_v55 = vadd.f32 %v3862_v46, %v3861_v27  ;;  %4951 = vrcp.f32 %v6776_v2  ;;  %v6793_v5 = vadd.f32 %v6675_v51, %v2106_v43  ;;  %v6796_v44 = vmul.f32 0.6931472, %v4938_v57  ;;  %v2174_v43 = vpop.xlane.xlu2 %2173 }
 0x35a   : > { %v2625_v6 = vmul.f32 %v4944_v34, %v6761_v33  ;;  %v4946_v12 = vpop.eup %4945  ;;  %4953 = vrcp.f32 %v6781_v18  ;;  %vm2629_vm6 = vweird.f32 %v6761_v33  ;;  %v1619_v56 = vadd.f32 %v6739_v22, %v1618_v59 }
 0x35b   : > { %vm6800_vm7 = vcmp.eq.f32.partialorder %v2633_v29, 8.507059e+37  ;;  %v2636_v48 = vor.u32 1.1754944e-38, %v2635_v38  ;;  %v6804_v8 = vadd.f32 1.0, %v4946_v12  ;;  %v2363_v16 = vmul.f32 1.442695, %v2316_v4 }
 0x35c   : > { %v2626_v50 = vsub.f32 1.0, %v2625_v6  ;;  %v6806_v35 = vpop.eup %4947  ;;  %4955 = vlog2.f32 %v3691_v13  ;;  %vm2630_vm8 = vweird.f32 %v4944_v34  ;;  %vm3267_vm10 = vweird.f32 %v6766_v9 }
 0x35d   : > { %v3263_v7 = vmul.f32 %v6806_v35, %v6766_v9  ;;  %v3271_v31 = vand.u32 2147483647, %v6766_v9  ;;  %v3273_v27 = vand.u32 2147483648, %v6766_v9  ;;  %4957 = vrcp.f32 %v6804_v8  ;;  %vm2631_vm12 = vmor %vm2629_vm6, %vm2630_vm8 }
 0x35e   : > { %v2627_v51 = vmul.f32 %v4944_v34, %v2626_v50  ;;  %v4950_v3 = vpop.eup %4949  ;;  %vm2644_vm11 = vweird.f32 %v6776_v2  ;;  %v2648_v15 = vand.u32 2147483647, %v6776_v2  ;;  %v2650_v42 = vand.u32 2147483648, %v6776_v2 }
 0x35f   : > { %v4952_v21 = vpop.eup %4951  ;;  %v3574_v49 = vmul.f32 0.6931472, %v4950_v3  ;;  %v3264_v23 = vsub.f32 1.0, %v3263_v7  ;;  %4959 = vpow2.f32 %v2363_v16  ;;  %v3286_v62 = vand.u32 2147483647, %v6781_v18 }
 0x360   : > { %v2628_v45 = vadd.f32 %v4944_v34, %v2627_v51  ;;  %v6816_v36 = vpop.eup %4953  ;;  %v2640_v10 = vmul.f32 %v4952_v21, %v6776_v2  ;;  %vm3268_vm13 = vweird.f32 %v6806_v35  ;;  %vm2645_vm14 = vweird.f32 %v4952_v21 }
 0x361   : > { %v3625_v24 = vsub.f32 0.0, %v3574_v49  ;;  %v3278_v63 = vmul.f32 %v6816_v36, %v6781_v18  ;;  %v3265_v11 = vmul.f32 %v6806_v35, %v3264_v23  ;;  %v2235_v19 = vmul.f32 %v2105_v26, %v6771_v39  ;;  %vm6846_vm15 = vmor %vm3267_vm10, %vm3268_vm13  ;;  %v1620_v26 = vpop.f32.mrf.mxu3 }
 0x362   : > { %v2632_v53 = vsel %vm2631_vm12, %v4944_v34, %v2628_v45  ;;  %v2641_v33 = vsub.f32 1.0, %v2640_v10  ;;  %v6829_v30 = vpop.eup %4955  ;;  %v2139_v0 = vmul.f32 %v1619_v56, %v6771_v39  ;;  %vm6850_vm0 = vcmp.eq.f32.partialorder %v2648_v15, 8.507059e+37  ;;  %v2276_v34 = vpop.xlane.xlu0 %2275  ;;  %vm2646_vm1 = vmor %vm2644_vm11, %vm2645_vm14 }
 0x363   : > { %v2637_v14 = vsel %vm6800_vm7, %v2636_v48, %v2632_v53  ;;  %v3785_v17 = vsub.f32 %v3625_v24, %v3734_v40  ;;  %v3279_v52 = vsub.f32 1.0, %v3278_v63  ;;  %v6833_v32 = vpop.eup %4957  ;;  %v3266_v60 = vadd.f32 %v6806_v35, %v3265_v11  ;;  %2297 = vadd.xlane.f32.xlu1 %v2235_v19  ;;  %v2176_v15 = vpop.xlane.xlu1 %2175 }
 0x364   : > { %v3530_v61 = vadd.f32 1e-08, %v2637_v14  ;;  %v2642_v57 = vmul.f32 %v4952_v21, %v2641_v33  ;;  %v3293_v20 = vmul.f32 %v6833_v32, %v6804_v8  ;;  %v2651_v46 = vor.u32 1.1754944e-38, %v2650_v42  ;;  %2201 = vadd.xlane.f32.xlu0 %v2139_v0  ;;  %v2278_v53 = vpop.xlane.xlu2 %2277 }
 0x365   : > { %v3820_v1 = vmul.f32 %v6228_v41, %v3785_v17  ;;  %v3280_v54 = vmul.f32 %v6816_v36, %v3279_v52  ;;  %v4960_v28 = vpop.eup %4959  ;;  %v3288_v29 = vand.u32 2147483648, %v6781_v18  ;;  %v3270_v9 = vsel %vm6846_vm15, %v6806_v35, %v3266_v60 }
 0x366   : > { %4961 = vlog2.f32 %v3530_v61  ;;  %v2643_v58 = vadd.f32 %v4952_v21, %v2642_v57  ;;  %vm3283_vm2 = vweird.f32 %v6816_v36  ;;  %v3294_v59 = vsub.f32 1.0, %v3293_v20 }
 0x367   : > { %v3864_v38 = vsel %vm7801_vm9, %v3820_v1, 0.0  ;;  %v3281_v12 = vadd.f32 %v6816_v36, %v3280_v54  ;;  %v6867_v40 = vadd.f32 1.0, %v4960_v28  ;;  %v3274_v50 = vor.u32 1.1754944e-38, %v3273_v27 }
 0x368   : > { %v6864_v13 = vadd.f32 %v3864_v38, %v6778_v55  ;;  %v2647_v6 = vsel %vm2646_vm1, %v4952_v21, %v2643_v58  ;;  %v3295_v25 = vmul.f32 %v6833_v32, %v3294_v59  ;;  %v2317_v2 = vsub.f32 0.0, %v2174_v43 }
 0x369   : > { %v2652_v56 = vsel %vm6850_vm0, %v2651_v46, %v2647_v6  ;;  %vm3272_vm3 = vcmp.eq.f32.partialorder %v3271_v31, 8.507059e+37  ;;  %vm3282_vm4 = vweird.f32 %v6781_v18  ;;  %v3301_v48 = vand.u32 2147483647, %v6804_v8 }
 0x36a   : > { %4963 = vrcp.f32 %v6867_v40  ;;  %v3275_v16 = vsel %vm3272_vm3, %v3274_v50, %v3270_v9  ;;  %v3531_v35 = vadd.f32 1e-08, %v2652_v56  ;;  %vm6877_vm5 = vmor %vm3282_vm4, %vm3283_vm2  ;;  %vm6881_vm6 = vcmp.eq.f32.partialorder %v3286_v62, 8.507059e+37  ;;  %v2178_v61 = vpop.xlane.xlu0 %2177 }
 0x36b   : > { %v1621_v7 = vadd.f32 %v6739_v22, %v1620_v26  ;;  %v3285_v31 = vsel %vm6877_vm5, %v6816_v36, %v3281_v12  ;;  %v3289_v27 = vor.u32 1.1754944e-38, %v3288_v29  ;;  %v2365_v21 = vmul.f32 1.442695, %v2317_v2 }
 0x36c   : > { %v4962_v55 = vpop.eup %4961  ;;  %v3296_v49 = vadd.f32 %v6833_v32, %v3295_v25  ;;  %vm3297_vm7 = vweird.f32 %v6804_v8  ;;  %vm3298_vm8 = vweird.f32 %v6833_v32  ;;  %v3303_v45 = vand.u32 2147483648, %v6804_v8 }
 0x36d   : > { %v3576_v18 = vmul.f32 0.6931472, %v4962_v55  ;;  %v3660_v10 = vsub.f32 1.0, %v3275_v16  ;;  %vm6893_vm10 = vcmp.eq.f32.partialorder %v3301_v48, 8.507059e+37  ;;  %4965 = vpow2.f32 %v2365_v21  ;;  %vm6906_vm11 = vmor %vm3297_vm7, %vm3298_vm8 }
 0x36e   : > { %4967 = vlog2.f32 %v3531_v35  ;;  %v3290_v36 = vsel %vm6881_vm6, %v3289_v27, %v3285_v31  ;;  %v2927_v42 = vsub.f32 0.0, %v6831_v37  ;;  %v2140_v24 = vmul.f32 %v1621_v7, %v6785_v47  ;;  %v2280_v27 = vpop.xlane.xlu1 %2279 }
 0x36f   : > { %v3626_v23 = vsub.f32 0.0, %v3576_v18  ;;  %v2236_v11 = vmul.f32 %v6793_v5, %v6785_v47  ;;  %v2318_v33 = vsub.f32 0.0, %v2176_v15  ;;  %v2928_v17 = vsub.f32 0.0, %v2276_v34 }
 0x370   : > { %v6901_v63 = vpop.eup %4963  ;;  %v3300_v52 = vsel %vm6906_vm11, %v6833_v32, %v3296_v49  ;;  %v3304_v37 = vor.u32 1.1754944e-38, %v3303_v45  ;;  %v2977_v60 = vmul.f32 1.442695, %v2927_v42  ;;  %2203 = vadd.xlane.f32.xlu2 %v2140_v24  ;;  %v2929_v0 = vsub.f32 0.0, %v2278_v53 }
 0x371   : > { %v3786_v62 = vsub.f32 %v3626_v23, %v6796_v44  ;;  %v2655_v44 = vmul.f32 %v6901_v63, %v6867_v40  ;;  %2299 = vadd.xlane.f32.xlu0 %v2236_v11  ;;  %v2367_v57 = vmul.f32 1.442695, %v2318_v33  ;;  %v2979_v19 = vmul.f32 1.442695, %v2928_v17 }
 0x372   : > { %v3692_v47 = vadd.f32 1e-08, %v3660_v10  ;;  %v3661_v5 = vsub.f32 1.0, %v3290_v36  ;;  %v2319_v54 = vsub.f32 0.0, %v2178_v61  ;;  %v3305_v32 = vsel %vm6893_vm10, %v3304_v37, %v3300_v52 }
 0x373   : > { %v3821_v8 = vmul.f32 %v6228_v41, %v3786_v62  ;;  %v2656_v1 = vsub.f32 1.0, %v2655_v44  ;;  %v4966_v20 = vpop.eup %4965  ;;  %4969 = vpow2.f32 %v2977_v60  ;;  %v2981_v4 = vmul.f32 1.442695, %v2929_v0 }
 0x374   : > { %v4968_v58 = vpop.eup %4967  ;;  %v6925_v29 = vadd.f32 1.0, %v4966_v20  ;;  %4971 = vpow2.f32 %v2367_v57  ;;  %vm2660_vm12 = vweird.f32 %v6901_v63  ;;  %v2369_v34 = vmul.f32 1.442695, %v2319_v54 }
 0x375   : > { %v3866_v28 = vsel %vm7801_vm9, %v3821_v8, 0.0  ;;  %v2657_v46 = vmul.f32 %v6901_v63, %v2656_v1  ;;  %4973 = vpow2.f32 %v2979_v19  ;;  %v3578_v38 = vmul.f32 0.6931472, %v4968_v58 }
 0x376   : > { %v6922_v39 = vadd.f32 %v3866_v28, %v6864_v13  ;;  %4975 = vrcp.f32 %v6925_v29  ;;  %v3662_v9 = vsub.f32 1.0, %v3305_v32  ;;  %v2665_v59 = vand.u32 2147483648, %v6867_v40 }
 0x377   : > { %v2658_v43 = vadd.f32 %v6901_v63, %v2657_v46  ;;  %4977 = vpow2.f32 %v2981_v4  ;;  %v3693_v13 = vadd.f32 1e-08, %v3661_v5  ;;  %vm2659_vm13 = vweird.f32 %v6867_v40 }
 0x378   : > { %4979 = vlog2.f32 %v3692_v47  ;;  %v2663_v6 = vand.u32 2147483647, %v6867_v40  ;;  %vm6933_vm14 = vmor %vm2659_vm13, %vm2660_vm12  ;;  %v3627_v48 = vsub.f32 0.0, %v3578_v38  ;;  %v3694_v55 = vadd.f32 1e-08, %v3662_v9  ;;  %v2180_v40 = vpop.xlane.xlu2 %2179 }
 0x379   : > { %v4970_v12 = vpop.eup %4969  ;;  %v2662_v56 = vsel %vm6933_vm14, %v6901_v63, %v2658_v43  ;;  %4981 = vpow2.f32 %v2369_v34  ;;  %v2666_v16 = vor.u32 1.1754944e-38, %v2665_v59  ;;  %v3738_v7 = vmul.f32 0.6931472, %v6829_v30 }
 0x37a   : > { %v4972_v50 = vpop.eup %4971  ;;  %v6940_v25 = vadd.f32 1.0, %v4970_v12  ;;  %4983 = vlog2.f32 %v3693_v13  ;;  %vm2664_vm15 = vcmp.eq.f32.partialorder %v2663_v6, 8.507059e+37  ;;  %v2678_v49 = vand.u32 2147483647, %v6925_v29 }
 0x37b   : > { %v4974_v2 = vpop.eup %4973  ;;  %v6942_v35 = vadd.f32 1.0, %v4972_v50  ;;  %v2667_v18 = vsel %vm2664_vm15, %v2666_v16, %v2662_v56  ;;  %v2320_v45 = vsub.f32 0.0, %v2180_v40  ;;  %v3787_v15 = vsub.f32 %v3627_v48, %v3738_v7 }
 0x37c   : > { %v4976_v51 = vpop.eup %4975  ;;  %4985 = vrcp.f32 %v6940_v25  ;;  %v6949_v10 = vadd.f32 1.0, %v4974_v2  ;;  %v3532_v36 = vadd.f32 1e-08, %v2667_v18  ;;  %v2680_v30 = vand.u32 2147483648, %v6925_v29 }
 0x37d   : > { %v4978_v3 = vpop.eup %4977  ;;  %v2670_v31 = vmul.f32 %v4976_v51, %v6925_v29  ;;  %4987 = vrcp.f32 %v6942_v35  ;;  %v2930_v24 = vsub.f32 0.0, %v2280_v27  ;;  %vm2675_vm0 = vweird.f32 %v4976_v51 }
 0x37e   : > { %v4980_v21 = vpop.eup %4979  ;;  %4989 = vlog2.f32 %v3694_v55  ;;  %v6952_v42 = vadd.f32 1.0, %v4978_v3  ;;  %vm2674_vm1 = vweird.f32 %v6925_v29  ;;  %vm6960_vm2 = vcmp.eq.f32.partialorder %v2678_v49, 8.507059e+37  ;;  %v2282_v49 = vpop.xlane.xlu0 %2281 }
 0x37f   : > { %v2671_v23 = vsub.f32 1.0, %v2670_v31  ;;  %v4982_v22 = vpop.eup %4981  ;;  %v6954_v53 = vmul.f32 0.6931472, %v4980_v21  ;;  %4991 = vrcp.f32 %v6949_v10  ;;  %v2371_v11 = vmul.f32 1.442695, %v2320_v45  ;;  %vm2676_vm3 = vmor %vm2674_vm1, %vm2675_vm0 }
 0x380   : > { %v6957_v62 = vpop.eup %4983  ;;  %4993 = vrcp.f32 %v6952_v42  ;;  %v6968_v17 = vmul.f32 %v6228_v41, %v3787_v15  ;;  %v3316_v52 = vand.u32 2147483647, %v6940_v25  ;;  %v6971_v37 = vadd.f32 1.0, %v4982_v22 }
 0x381   : > { %v2672_v63 = vmul.f32 %v4976_v51, %v2671_v23  ;;  %4995 = vlog2.f32 %v3532_v36  ;;  %v2681_v60 = vor.u32 1.1754944e-38, %v2680_v30  ;;  %v6975_v57 = vmul.f32 1.442695, %v2930_v24 }
 0x382   : > { %v6965_v33 = vpop.eup %4985  ;;  %vm3312_vm4 = vweird.f32 %v6940_v25  ;;  %v3318_v47 = vand.u32 2147483648, %v6940_v25  ;;  %v2693_v20 = vand.u32 2147483647, %v6942_v35  ;;  %4997 = vpow2.f32 %v2371_v11 }
 0x383   : > { %v2673_v61 = vadd.f32 %v4976_v51, %v2672_v63  ;;  %v4988_v44 = vpop.eup %4987  ;;  %v3308_v8 = vmul.f32 %v6965_v33, %v6940_v25  ;;  %vm6985_vm5 = vcmp.eq.f32.partialorder %v3316_v52, 8.507059e+37  ;;  %v2695_v58 = vand.u32 2147483648, %v6942_v35 }
 0x384   : > { %v6977_v19 = vpop.eup %4989  ;;  %v2685_v5 = vmul.f32 %v4988_v44, %v6942_v35  ;;  %4999 = vrcp.f32 %v6971_v37  ;;  %vm3313_vm6 = vweird.f32 %v6965_v33  ;;  %vm2689_vm7 = vweird.f32 %v6942_v35 }
 0x385   : > { %v2677_v0 = vsel %vm2676_vm3, %v4976_v51, %v2673_v61  ;;  %v3309_v54 = vsub.f32 1.0, %v3308_v8  ;;  %v4992_v28 = vpop.eup %4991  ;;  %vm2690_vm8 = vweird.f32 %v4988_v44  ;;  %v3319_v6 = vor.u32 1.1754944e-38, %v3318_v47  ;;  %vm7006_vm11 = vmor %vm3312_vm4, %vm3313_vm6 }
 0x386   : > { %v2682_v1 = vsel %vm6960_vm2, %v2681_v60, %v2677_v0  ;;  %v2686_v4 = vsub.f32 1.0, %v2685_v5  ;;  %v6991_v46 = vpop.eup %4993  ;;  %v3323_v34 = vmul.f32 %v4992_v28, %v6949_v10  ;;  %vm7000_vm10 = vcmp.eq.f32.partialorder %v2693_v20, 8.507059e+37  ;;  %vm2691_vm12 = vmor %vm2689_vm7, %vm2690_vm8  ;;  %v2284_v60 = vpop.xlane.xlu2 %2283 }
 0x387   : > { %v3533_v29 = vadd.f32 1e-08, %v2682_v1  ;;  %v3310_v43 = vmul.f32 %v6965_v33, %v3309_v54  ;;  %v3338_v9 = vmul.f32 %v6991_v46, %v6952_v42  ;;  %v4996_v59 = vpop.eup %4995  ;;  %v2696_v2 = vor.u32 1.1754944e-38, %v2695_v58 }
 0x388   : > { %v2687_v38 = vmul.f32 %v4988_v44, %v2686_v4  ;;  %v3324_v26 = vsub.f32 1.0, %v3323_v34  ;;  %v3333_v48 = vand.u32 2147483648, %v6949_v10  ;;  %v4998_v16 = vpop.eup %4997  ;;  %vm3328_vm13 = vweird.f32 %v4992_v28 }
 0x389   : > { %v3311_v13 = vadd.f32 %v6965_v33, %v3310_v43  ;;  %v3339_v55 = vsub.f32 1.0, %v3338_v9  ;;  %5001 = vlog2.f32 %v3533_v29  ;;  %v3331_v51 = vand.u32 2147483647, %v6949_v10  ;;  %v2184_v9 = vpop.xlane.xlu0 %2183 }
 0x38a   : > { %v2688_v56 = vadd.f32 %v4988_v44, %v2687_v38  ;;  %v3325_v40 = vmul.f32 %v4992_v28, %v3324_v26  ;;  %v5000_v3 = vpop.eup %4999  ;;  %v3580_v25 = vmul.f32 0.6931472, %v4996_v59  ;;  %vm3327_vm14 = vweird.f32 %v6949_v10 }
 0x38b   : > { %v3315_v7 = vsel %vm7006_vm11, %v6965_v33, %v3311_v13  ;;  %v3340_v35 = vmul.f32 %v6991_v46, %v3339_v55  ;;  %v2700_v21 = vmul.f32 %v5000_v3, %v6971_v37  ;;  %vm3329_vm15 = vmor %vm3327_vm14, %vm3328_vm13  ;;  %v3334_v45 = vor.u32 1.1754944e-38, %v3333_v48 }
 0x38c   : > { %v2692_v18 = vsel %vm2691_vm12, %v4988_v44, %v2688_v56  ;;  %v3326_v27 = vadd.f32 %v4992_v28, %v3325_v40  ;;  %vm3342_vm0 = vweird.f32 %v6952_v42  ;;  %v3348_v15 = vand.u32 2147483648, %v6952_v42  ;;  %v2182_v44 = vpop.xlane.xlu1 %2181 }
 0x38d   : > { %v2697_v31 = vsel %vm7000_vm10, %v2696_v2, %v2692_v18  ;;  %v7024_v23 = vadd.f32 1.0, %v4998_v16  ;;  %v3320_v10 = vsel %vm6985_vm5, %v3319_v6, %v3315_v7  ;;  %vm3332_vm1 = vcmp.eq.f32.partialorder %v3331_v51, 8.507059e+37 }
 0x38e   : > { %v3330_v22 = vsel %vm3329_vm15, %v4992_v28, %v3326_v27  ;;  %v2701_v36 = vsub.f32 1.0, %v2700_v21  ;;  %v3628_v30 = vsub.f32 0.0, %v3580_v25  ;;  %v3534_v24 = vadd.f32 1e-08, %v2697_v31 }
 0x38f   : > { %v3335_v63 = vsel %vm3332_vm1, %v3334_v45, %v3330_v22  ;;  %v3346_v14 = vand.u32 2147483647, %v6952_v42  ;;  %v5002_v11 = vpop.eup %5001  ;;  %v3341_v33 = vadd.f32 %v6991_v46, %v3340_v35  ;;  %vm3343_vm2 = vweird.f32 %v6991_v46 }
 0x390   : > { %v2708_v61 = vand.u32 2147483647, %v6971_v37  ;;  %v2710_v52 = vand.u32 2147483648, %v6971_v37  ;;  %v3663_v8 = vsub.f32 1.0, %v3320_v10  ;;  %v2702_v0 = vmul.f32 %v5000_v3, %v2701_v36  ;;  %vm7040_vm5 = vmor %vm3342_vm0, %vm3343_vm2 }
 0x391   : > { %vm2705_vm3 = vweird.f32 %v5000_v3  ;;  %5003 = vrcp.f32 %v7024_v23  ;;  %v3664_v47 = vsub.f32 1.0, %v3335_v63  ;;  %v3349_v5 = vor.u32 1.1754944e-38, %v3348_v15 }
 0x392   : > { %vm2704_vm4 = vweird.f32 %v6971_v37  ;;  %5005 = vpow2.f32 %v6975_v57  ;;  %v3582_v1 = vmul.f32 0.6931472, %v5002_v11  ;;  %v2703_v20 = vadd.f32 %v5000_v3, %v2702_v0 }
 0x393   : > { %5007 = vlog2.f32 %v3534_v24  ;;  %v2321_v28 = vsub.f32 0.0, %v2182_v44  ;;  %v3345_v32 = vsel %vm7040_vm5, %v6991_v46, %v3341_v33  ;;  %vm2706_vm6 = vmor %vm2704_vm4, %vm2705_vm3  ;;  %vm2709_vm7 = vcmp.eq.f32.partialorder %v2708_v61, 8.507059e+37 }
 0x394   : > { %v2711_v37 = vor.u32 1.1754944e-38, %v2710_v52  ;;  %v2931_v57 = vsub.f32 0.0, %v2282_v49  ;;  %v3695_v4 = vadd.f32 1e-08, %v3663_v8  ;;  %v2707_v58 = vsel %vm2706_vm6, %v5000_v3, %v2703_v20  ;;  %v2186_v3 = vpop.xlane.xlu2 %2185  ;;  %v2286_v8 = vpop.xlane.xlu1 %2285 }
 0x395   : > { %v2373_v29 = vmul.f32 1.442695, %v2321_v28  ;;  %v2932_v43 = vsub.f32 0.0, %v2284_v60  ;;  %v3696_v34 = vadd.f32 1e-08, %v3664_v47  ;;  %vm3347_vm8 = vcmp.eq.f32.partialorder %v3346_v14, 8.507059e+37 }
 0x396   : > { %v2712_v42 = vsel %vm2709_vm7, %v2711_v37, %v2707_v58  ;;  %v2985_v38 = vmul.f32 1.442695, %v2931_v57  ;;  %v3788_v13 = vsub.f32 %v3628_v30, %v6954_v53  ;;  %v3629_v6 = vsub.f32 0.0, %v3582_v1 }
 0x397   : > { %v7047_v59 = vpop.eup %5003  ;;  %v3350_v12 = vsel %vm3347_vm8, %v3349_v5, %v3345_v32  ;;  %5009 = vpow2.f32 %v2373_v29  ;;  %v3742_v26 = vmul.f32 0.6931472, %v6957_v62  ;;  %v3535_v50 = vadd.f32 1e-08, %v2712_v42 }
 0x398   : > { %v5006_v46 = vpop.eup %5005  ;;  %v2715_v56 = vmul.f32 %v7047_v59, %v7024_v23  ;;  %5011 = vpow2.f32 %v2985_v38  ;;  %v2987_v55 = vmul.f32 1.442695, %v2932_v43  ;;  %v2322_v16 = vsub.f32 0.0, %v2184_v9 }
 0x399   : > { %v5008_v2 = vpop.eup %5007  ;;  %5013 = vlog2.f32 %v3695_v4  ;;  %v7053_v48 = vadd.f32 1.0, %v5006_v46  ;;  %v3868_v53 = vsel %vm7801_vm9, %v6968_v17, 0.0  ;;  %v3665_v40 = vsub.f32 1.0, %v3350_v12 }
 0x39a   : > { %5015 = vlog2.f32 %v3696_v34  ;;  %v2716_v51 = vsub.f32 1.0, %v2715_v56  ;;  %v3823_v62 = vmul.f32 %v6228_v41, %v3788_v13  ;;  %v3789_v25 = vsub.f32 %v3629_v6, %v3742_v26 }
 0x39b   : > { %vm2719_vm10 = vweird.f32 %v7024_v23  ;;  %5017 = vrcp.f32 %v7053_v48  ;;  %v3584_v7 = vmul.f32 0.6931472, %v5008_v2  ;;  %vm2720_vm11 = vweird.f32 %v7047_v59 }
 0x39c   : > { %5019 = vlog2.f32 %v3535_v50  ;;  %v2717_v18 = vmul.f32 %v7047_v59, %v2716_v51  ;;  %v2725_v17 = vand.u32 2147483648, %v7024_v23  ;;  %v2375_v27 = vmul.f32 1.442695, %v2322_v16  ;;  %vm7071_vm12 = vmor %vm2719_vm10, %vm2720_vm11 }
 0x39d   : > { %v5010_v31 = vpop.eup %5009  ;;  %5021 = vpow2.f32 %v2987_v55  ;;  %v2323_v35 = vsub.f32 0.0, %v2186_v3  ;;  %v3697_v49 = vadd.f32 1e-08, %v3665_v40  ;;  %v2723_v15 = vand.u32 2147483647, %v7024_v23 }
 0x39e   : > { %v5012_v21 = vpop.eup %5011  ;;  %v2718_v45 = vadd.f32 %v7047_v59, %v2717_v18  ;;  %v7065_v10 = vadd.f32 1.0, %v5010_v31  ;;  %v3870_v36 = vsel %vm7801_vm9, %v3823_v62, 0.0  ;;  %v3824_v30 = vmul.f32 %v6228_v41, %v3789_v25 }
 0x39f   : > { %v5014_v22 = vpop.eup %5013  ;;  %v7075_v63 = vadd.f32 1.0, %v5012_v21  ;;  %5023 = vpow2.f32 %v2375_v27  ;;  %v3869_v11 = vadd.f32 %v3868_v53, %v6922_v39  ;;  %v3630_v33 = vsub.f32 0.0, %v3584_v7  ;;  %v2188_v7 = vpop.xlane.xlu1 %2187 }
 0x3a0   : > { %v5016_v14 = vpop.eup %5015  ;;  %v2722_v61 = vsel %vm7071_vm12, %v7047_v59, %v2718_v45  ;;  %5025 = vrcp.f32 %v7065_v10  ;;  %v3744_v23 = vmul.f32 0.6931472, %v6977_v19  ;;  %v2726_v44 = vor.u32 1.1754944e-38, %v2725_v17  ;;  %v2288_v27 = vpop.xlane.xlu0 %2287 }
 0x3a1   : > { %v7082_v52 = vpop.eup %5017  ;;  %5027 = vrcp.f32 %v7075_v63  ;;  %v2377_v60 = vmul.f32 1.442695, %v2323_v35  ;;  %v7086_v47 = vadd.f32 %v3870_v36, %v3869_v11  ;;  %vm2724_vm13 = vcmp.eq.f32.partialorder %v2723_v15, 8.507059e+37 }
 0x3a2   : > { %v5020_v0 = vpop.eup %5019  ;;  %5029 = vlog2.f32 %v3697_v49  ;;  %v3353_v39 = vmul.f32 %v7082_v52, %v7053_v48  ;;  %v7091_v1 = vsel %vm7801_vm9, %v3824_v30, 0.0  ;;  %v3746_v54 = vmul.f32 0.6931472, %v5014_v22 }
 0x3a3   : > { %v5022_v5 = vpop.eup %5021  ;;  %v2727_v20 = vsel %vm2724_vm13, %v2726_v44, %v2722_v61  ;;  %v3361_v19 = vand.u32 2147483647, %v7053_v48  ;;  %v7094_v28 = vsub.f32 %v3630_v33, %v3744_v23  ;;  %v3363_v37 = vand.u32 2147483648, %v7053_v48 }
 0x3a4   : > { %v3354_v32 = vsub.f32 1.0, %v3353_v39  ;;  %v2933_v57 = vsub.f32 0.0, %v2286_v8  ;;  %v7097_v58 = vmul.f32 0.6931472, %v5016_v14  ;;  %vm3357_vm14 = vweird.f32 %v7053_v48 }
 0x3a5   : > { %v5024_v4 = vpop.eup %5023  ;;  %v7100_v29 = vadd.f32 1.0, %v5022_v5  ;;  %5031 = vpow2.f32 %v2377_v60  ;;  %v3586_v34 = vmul.f32 0.6931472, %v5020_v0  ;;  %v3536_v42 = vadd.f32 1e-08, %v2727_v20  ;;  %v2290_v0 = vpop.xlane.xlu2 %2289 }
 0x3a6   : > { %v5026_v43 = vpop.eup %5025  ;;  %v3355_v38 = vmul.f32 %v7082_v52, %v3354_v32  ;;  %v7103_v9 = vadd.f32 1.0, %v5024_v4  ;;  %vm7105_vm15 = vcmp.eq.f32.partialorder %v3361_v19, 8.507059e+37  ;;  %v2738_v12 = vand.u32 2147483647, %v7065_v10 }
 0x3a7   : > { %v5028_v59 = vpop.eup %5027  ;;  %v2730_v6 = vmul.f32 %v5026_v43, %v7065_v10  ;;  %5033 = vrcp.f32 %v7100_v29  ;;  %v3364_v26 = vor.u32 1.1754944e-38, %v3363_v37  ;;  %v2740_v50 = vand.u32 2147483648, %v7065_v10 }
 0x3a8   : > { %v7112_v46 = vpop.eup %5029  ;;  %v3368_v56 = vmul.f32 %v5028_v59, %v7075_v63  ;;  %v2989_v2 = vmul.f32 1.442695, %v2933_v57  ;;  %v3356_v55 = vadd.f32 %v7082_v52, %v3355_v38  ;;  %vm3358_vm0 = vweird.f32 %v7082_v52 }
 0x3a9   : > { %v2731_v16 = vsub.f32 1.0, %v2730_v6  ;;  %5035 = vrcp.f32 %v7103_v9  ;;  %v3631_v53 = vsub.f32 0.0, %v3586_v34  ;;  %vm2734_vm1 = vweird.f32 %v7065_v10  ;;  %vm7127_vm4 = vmor %vm3357_vm14, %vm3358_vm0 }
 0x3aa   : > { %5037 = vlog2.f32 %v3536_v42  ;;  %v3369_v40 = vsub.f32 1.0, %v3368_v56  ;;  %vm2735_vm2 = vweird.f32 %v5026_v43  ;;  %vm7120_vm3 = vcmp.eq.f32.partialorder %v2738_v12, 8.507059e+37 }
 0x3ab   : > { %v5032_v51 = vpop.eup %5031  ;;  %v2732_v3 = vmul.f32 %v5026_v43, %v2731_v16  ;;  %v3378_v25 = vand.u32 2147483648, %v7075_v63  ;;  %v2741_v31 = vor.u32 1.1754944e-38, %v2740_v50  ;;  %vm3372_vm5 = vweird.f32 %v7075_v63  ;;  %vm2736_vm7 = vmor %vm2734_vm1, %vm2735_vm2 }
 0x3ac   : > { %v3370_v17 = vmul.f32 %v5028_v59, %v3369_v40  ;;  %vm3373_vm6 = vweird.f32 %v5028_v59  ;;  %v3360_v21 = vsel %vm7127_vm4, %v7082_v52, %v3356_v55  ;;  %v3376_v45 = vand.u32 2147483647, %v7075_v63 }
 0x3ad   : > { %v5034_v35 = vpop.eup %5033  ;;  %v2733_v49 = vadd.f32 %v5026_v43, %v2732_v3  ;;  %v7136_v15 = vadd.f32 1.0, %v5032_v51  ;;  %v3791_v48 = vsub.f32 %v3631_v53, %v3746_v54  ;;  %v2324_v30 = vsub.f32 0.0, %v2188_v7  ;;  %vm7146_vm8 = vmor %vm3372_vm5, %vm3373_vm6 }
 0x3ae   : > { %v3371_v22 = vadd.f32 %v5028_v59, %v3370_v17  ;;  %v3383_v36 = vmul.f32 %v5034_v35, %v7100_v29  ;;  %v3379_v33 = vor.u32 1.1754944e-38, %v3378_v25  ;;  %v3391_v61 = vand.u32 2147483647, %v7100_v29 }
 0x3af   : > { %v7142_v24 = vpop.eup %5035  ;;  %v2737_v14 = vsel %vm2736_vm7, %v5026_v43, %v2733_v49  ;;  %5039 = vrcp.f32 %v7136_v15  ;;  %v3365_v52 = vsel %vm7105_vm15, %v3364_v26, %v3360_v21  ;;  %vm3377_vm10 = vcmp.eq.f32.partialorder %v3376_v45, 8.507059e+37  ;;  %v2190_v26 = vpop.xlane.xlu0 %2189 }
 0x3b0   : > { %v5038_v10 = vpop.eup %5037  ;;  %v2742_v23 = vsel %vm7120_vm3, %v2741_v31, %v2737_v14  ;;  %v3375_v44 = vsel %vm7146_vm8, %v5028_v59, %v3371_v22  ;;  %v3384_v63 = vsub.f32 1.0, %v3383_v36  ;;  %vm3387_vm11 = vweird.f32 %v7100_v29 }
 0x3b1   : > { %v3393_v60 = vand.u32 2147483648, %v7100_v29  ;;  %v2745_v8 = vmul.f32 %v7142_v24, %v7103_v9  ;;  %v3537_v39 = vadd.f32 1e-08, %v2742_v23  ;;  %v3380_v5 = vsel %vm3377_vm10, %v3379_v33, %v3375_v44 }
 0x3b2   : > { %v3385_v54 = vmul.f32 %v5034_v35, %v3384_v63  ;;  %vm3388_vm12 = vweird.f32 %v5034_v35  ;;  %v7162_v20 = vmul.f32 0.6931472, %v5038_v10  ;;  %v3666_v19 = vsub.f32 1.0, %v3365_v52 }
 0x3b3   : > { %v2746_v32 = vsub.f32 1.0, %v2745_v8  ;;  %v2753_v37 = vand.u32 2147483647, %v7103_v9  ;;  %vm3392_vm13 = vcmp.eq.f32.partialorder %v3391_v61, 8.507059e+37  ;;  %5041 = vpow2.f32 %v2989_v2  ;;  %vm3389_vm14 = vmor %vm3387_vm11, %vm3388_vm12 }
 0x3b4   : > { %v3386_v57 = vadd.f32 %v5034_v35, %v3385_v54  ;;  %v2379_v4 = vmul.f32 1.442695, %v2324_v30  ;;  %v3667_v34 = vsub.f32 1.0, %v3380_v5  ;;  %v3394_v42 = vor.u32 1.1754944e-38, %v3393_v60 }
 0x3b5   : > { %v7165_v43 = vpop.eup %5039  ;;  %v2747_v38 = vmul.f32 %v7142_v24, %v2746_v32  ;;  %v2934_v59 = vsub.f32 0.0, %v2288_v27  ;;  %5043 = vlog2.f32 %v3537_v39  ;;  %v2755_v6 = vand.u32 2147483648, %v7103_v9 }
 0x3b6   : > { %v3390_v13 = vsel %vm3389_vm14, %v5034_v35, %v3386_v57  ;;  %v2760_v12 = vmul.f32 %v7165_v43, %v7136_v15  ;;  %v3698_v50 = vadd.f32 1e-08, %v3666_v19  ;;  %vm2750_vm15 = vweird.f32 %v7142_v24  ;;  %v2192_v35 = vpop.xlane.xlu2 %2191 }
 0x3b7   : > { %v3395_v56 = vsel %vm3392_vm13, %v3394_v42, %v3390_v13  ;;  %5045 = vpow2.f32 %v2379_v4  ;;  %v2748_v29 = vadd.f32 %v7142_v24, %v2747_v38  ;;  %v2991_v55 = vmul.f32 1.442695, %v2934_v59 }
 0x3b8   : > { %v2761_v2 = vsub.f32 1.0, %v2760_v12  ;;  %v2935_v16 = vsub.f32 0.0, %v2290_v0  ;;  %v3825_v53 = vmul.f32 %v6228_v41, %v7094_v28  ;;  %v3826_v40 = vmul.f32 %v6228_v41, %v3791_v48 }
 0x3b9   : > { %v3699_v51 = vadd.f32 1e-08, %v3667_v34  ;;  %v2325_v3 = vsub.f32 0.0, %v2190_v26  ;;  %v5042_v62 = vpop.eup %5041  ;;  %v3632_v25 = vsub.f32 0.0, %v7162_v20  ;;  %vm2749_vm0 = vweird.f32 %v7103_v9 }
 0x3ba   : > { %vm7180_vm1 = vcmp.eq.f32.partialorder %v2753_v37, 8.507059e+37  ;;  %v2762_v18 = vmul.f32 %v7165_v43, %v2761_v2  ;;  %v3668_v31 = vsub.f32 1.0, %v3395_v56  ;;  %vm7187_vm2 = vmor %vm2749_vm0, %vm2750_vm15  ;;  %v7191_v17 = vadd.f32 1.0, %v5042_v62 }
 0x3bb   : > { %5047 = vpow2.f32 %v2991_v55  ;;  %v2993_v27 = vmul.f32 1.442695, %v2935_v16  ;;  %v5044_v21 = vpop.eup %5043  ;;  %v2752_v9 = vsel %vm7187_vm2, %v7142_v24, %v2748_v29  ;;  %v2756_v49 = vor.u32 1.1754944e-38, %v2755_v6 }
 0x3bc   : > { %5049 = vlog2.f32 %v3698_v50  ;;  %v2381_v45 = vmul.f32 1.442695, %v2325_v3  ;;  %v2763_v22 = vadd.f32 %v7165_v43, %v2762_v18  ;;  %vm2764_vm3 = vweird.f32 %v7136_v15 }
 0x3bd   : > { %v5046_v48 = vpop.eup %5045  ;;  %5051 = vlog2.f32 %v3699_v51  ;;  %vm2765_vm4 = vweird.f32 %v7165_v43  ;;  %v2768_v36 = vand.u32 2147483647, %v7136_v15  ;;  %v2770_v30 = vand.u32 2147483648, %v7136_v15 }
 0x3be   : > { %5053 = vrcp.f32 %v7191_v17  ;;  %v2326_v14 = vsub.f32 0.0, %v2192_v35  ;;  %v3700_v11 = vadd.f32 1e-08, %v3668_v31  ;;  %v2757_v24 = vsel %vm7180_vm1, %v2756_v49, %v2752_v9  ;;  %vm7210_vm5 = vmor %vm2764_vm3, %vm2765_vm4 }
 0x3bf   : > { %v7204_v33 = vadd.f32 1.0, %v5046_v48  ;;  %5055 = vpow2.f32 %v2993_v27  ;;  %v3873_v61 = vadd.f32 %v7091_v1, %v7086_v47  ;;  %v3874_v10 = vsel %vm7801_vm9, %v3825_v53, 0.0  ;;  %v2292_v47 = vpop.xlane.xlu1 %2291 }
 0x3c0   : > { %v3792_v52 = vsub.f32 %v3632_v25, %v7097_v58  ;;  %5057 = vpow2.f32 %v2381_v45  ;;  %v3750_v44 = vmul.f32 0.6931472, %v7112_v46  ;;  %v3590_v63 = vmul.f32 0.6931472, %v5044_v21 }
 0x3c1   : > { %v5048_v15 = vpop.eup %5047  ;;  %v2767_v60 = vsel %vm7210_vm5, %v7165_v43, %v2763_v22  ;;  %5059 = vrcp.f32 %v7204_v33  ;;  %v3538_v8 = vadd.f32 1e-08, %v2757_v24  ;;  %v2771_v0 = vor.u32 1.1754944e-38, %v2770_v30 }
 0x3c2   : > { %v5050_v1 = vpop.eup %5049  ;;  %v7219_v58 = vadd.f32 1.0, %v5048_v15  ;;  %v2383_v39 = vmul.f32 1.442695, %v2326_v14  ;;  %v7221_v54 = vadd.f32 %v3874_v10, %v3873_v61  ;;  %v7224_v20 = vsel %vm7801_vm9, %v3826_v40, 0.0 }
 0x3c3   : > { %v5052_v5 = vpop.eup %5051  ;;  %5061 = vlog2.f32 %v3700_v11  ;;  %vm2769_vm6 = vcmp.eq.f32.partialorder %v2768_v36, 8.507059e+37  ;;  %v7227_v19 = vmul.f32 %v6228_v41, %v3792_v52  ;;  %v2936_v37 = vsub.f32 0.0, %v2292_v47 }
 0x3c4   : > { %v5054_v46 = vpop.eup %5053  ;;  %v2772_v32 = vsel %vm2769_vm6, %v2771_v0, %v2767_v60  ;;  %5063 = vrcp.f32 %v7219_v58  ;;  %v7230_v4 = vmul.f32 0.6931472, %v5050_v1  ;;  %v3633_v43 = vsub.f32 0.0, %v3590_v63  ;;  %v2294_v60 = vpop.xlane.xlu0 %2293 }
 0x3c5   : > { %v5056_v57 = vpop.eup %5055  ;;  %v3398_v34 = vmul.f32 %v5054_v46, %v7191_v17  ;;  %5065 = vpow2.f32 %v2383_v39  ;;  %v7233_v38 = vmul.f32 0.6931472, %v5052_v5  ;;  %v3406_v59 = vand.u32 2147483647, %v7191_v17 }
 0x3c6   : > { %v5058_v42 = vpop.eup %5057  ;;  %5067 = vlog2.f32 %v3538_v8  ;;  %v7236_v13 = vadd.f32 1.0, %v5056_v57  ;;  %v3539_v12 = vadd.f32 1e-08, %v2772_v32  ;;  %vm3402_vm7 = vweird.f32 %v7191_v17 }
 0x3c7   : > { %v7238_v6 = vpop.eup %5059  ;;  %v3399_v26 = vsub.f32 1.0, %v3398_v34  ;;  %v7241_v50 = vadd.f32 1.0, %v5058_v42  ;;  %v3408_v56 = vand.u32 2147483648, %v7191_v17  ;;  %v2995_v2 = vmul.f32 1.442695, %v2936_v37  ;;  %v2194_v27 = vpop.xlane.xlu1 %2193 }
 0x3c8   : > { %v2775_v29 = vmul.f32 %v7238_v6, %v7204_v33  ;;  %5069 = vrcp.f32 %v7236_v13  ;;  %v7249_v16 = vsub.f32 %v3633_v43, %v3750_v44  ;;  %vm3403_vm8 = vweird.f32 %v5054_v46  ;;  %v2296_v37 = vpop.xlane.xlu2 %2295 }
 0x3c9   : > { %v7247_v55 = vpop.eup %5061  ;;  %v3400_v53 = vmul.f32 %v5054_v46, %v3399_v26  ;;  %v2785_v40 = vand.u32 2147483648, %v7204_v33  ;;  %vm7254_vm10 = vcmp.eq.f32.partialorder %v3406_v59, 8.507059e+37  ;;  %v3421_v25 = vand.u32 2147483647, %v7219_v58  ;;  %vm7267_vm11 = vmor %vm3402_vm7, %vm3403_vm8 }
 0x3ca   : > { %v7252_v51 = vpop.eup %5063  ;;  %v2776_v62 = vsub.f32 1.0, %v2775_v29  ;;  %5071 = vrcp.f32 %v7241_v50  ;;  %v3423_v28 = vand.u32 2147483648, %v7219_v58  ;;  %v3409_v9 = vor.u32 1.1754944e-38, %v3408_v56 }
 0x3cb   : > { %v5066_v7 = vpop.eup %5065  ;;  %5073 = vlog2.f32 %v3539_v12  ;;  %v3401_v18 = vadd.f32 %v5054_v46, %v3400_v53  ;;  %v3413_v31 = vmul.f32 %v7252_v51, %v7219_v58  ;;  %vm2779_vm12 = vweird.f32 %v7204_v33 }
 0x3cc   : > { %v7263_v35 = vpop.eup %5067  ;;  %v2783_v49 = vand.u32 2147483647, %v7204_v33  ;;  %5075 = vpow2.f32 %v2995_v2  ;;  %v2777_v48 = vmul.f32 %v7238_v6, %v2776_v62  ;;  %v2786_v22 = vor.u32 1.1754944e-38, %v2785_v40  ;;  %v2196_v17 = vpop.xlane.xlu0 %2195 }
 0x3cd   : > { %v3405_v45 = vsel %vm7267_vm11, %v5054_v46, %v3401_v18  ;;  %v3414_v36 = vsub.f32 1.0, %v3413_v31  ;;  %vm3417_vm13 = vweird.f32 %v7219_v58  ;;  %vm7277_vm14 = vcmp.eq.f32.partialorder %v3421_v25, 8.507059e+37 }
 0x3ce   : > { %v5070_v30 = vpop.eup %5069  ;;  %v7281_v14 = vadd.f32 1.0, %v5066_v7  ;;  %v2327_v11 = vsub.f32 0.0, %v2194_v27  ;;  %vm3418_vm15 = vweird.f32 %v7252_v51  ;;  %v3424_v61 = vor.u32 1.1754944e-38, %v3423_v28 }
 0x3cf   : > { %v3415_v24 = vmul.f32 %v7252_v51, %v3414_v36  ;;  %v3428_v10 = vmul.f32 %v5070_v30, %v7236_v13  ;;  %v3410_v23 = vsel %vm7254_vm10, %v3409_v9, %v3405_v45  ;;  %vm7290_vm0 = vcmp.eq.f32.partialorder %v2783_v49, 8.507059e+37  ;;  %vm7306_vm2 = vmor %vm3417_vm13, %vm3418_vm15  ;;  %v7339_v62 = vpop.xlane.xlu1 %2199 }
 0x3d0   : > { %v7286_v52 = vpop.eup %5071  ;;  %v3436_v44 = vand.u32 2147483647, %v7236_v13  ;;  %v3438_v63 = vand.u32 2147483648, %v7236_v13  ;;  %5077 = vrcp.f32 %v7281_v14  ;;  %v2778_v1 = vadd.f32 %v7238_v6, %v2777_v48 }
 0x3d1   : > { %v7297_v47 = vpop.eup %5073  ;;  %vm2780_vm1 = vweird.f32 %v7238_v6  ;;  %v3416_v8 = vadd.f32 %v7252_v51, %v3415_v24  ;;  %v3429_v0 = vsub.f32 1.0, %v3428_v10  ;;  %vm3432_vm3 = vweird.f32 %v7236_v13  ;;  %v2198_v10 = vpop.xlane.xlu2 %2197 }
 0x3d2   : > { %v5076_v39 = vpop.eup %5075  ;;  %v2790_v46 = vmul.f32 %v7286_v52, %v7241_v50  ;;  %vm2794_vm4 = vweird.f32 %v7241_v50  ;;  %v2385_v32 = vmul.f32 1.442695, %v2327_v11  ;;  %v3669_v57 = vsub.f32 1.0, %v3410_v23  ;;  %vm7319_vm6 = vmor %vm2779_vm12, %vm2780_vm1 }
 0x3d3   : > { %v3420_v43 = vsel %vm7306_vm2, %v7252_v51, %v3416_v8  ;;  %v3430_v34 = vmul.f32 %v5070_v30, %v3429_v0  ;;  %vm3433_vm5 = vweird.f32 %v5070_v30  ;;  %vm7323_vm7 = vcmp.eq.f32.partialorder %v3436_v44, 8.507059e+37 }
 0x3d4   : > { %v3439_v59 = vor.u32 1.1754944e-38, %v3438_v63  ;;  %v2791_v12 = vsub.f32 1.0, %v2790_v46  ;;  %v2798_v26 = vand.u32 2147483647, %v7241_v50  ;;  %v2782_v56 = vsel %vm7319_vm6, %v7238_v6, %v2778_v1  ;;  %vm3434_vm8 = vmor %vm3432_vm3, %vm3433_vm5 }
 0x3d5   : > { %v3431_v29 = vadd.f32 %v5070_v30, %v3430_v34  ;;  %v2800_v2 = vand.u32 2147483648, %v7241_v50  ;;  %v7332_v33 = vadd.f32 1.0, %v5076_v39  ;;  %v3425_v40 = vsel %vm7277_vm14, %v3424_v61, %v3420_v43 }
 0x3d6   : > { %v5078_v53 = vpop.eup %5077  ;;  %v2792_v51 = vmul.f32 %v7286_v52, %v2791_v12  ;;  %5079 = vpow2.f32 %v2385_v32  ;;  %v2937_v3 = vsub.f32 0.0, %v2294_v60  ;;  %v3701_v25 = vadd.f32 1e-08, %v3669_v57 }
 0x3d7   : > { %v3435_v6 = vsel %vm3434_vm8, %v5070_v30, %v3431_v29  ;;  %vm2795_vm10 = vweird.f32 %v7286_v52  ;;  %v2805_v7 = vmul.f32 %v5078_v53, %v7281_v14  ;;  %vm7346_vm11 = vcmp.eq.f32.partialorder %v2798_v26, 8.507059e+37  ;;  %v2202_v26 = vpop.xlane.xlu0 %2201 }
 0x3d8   : > { %v3440_v18 = vsel %vm7323_vm7, %v3439_v59, %v3435_v6  ;;  %v2793_v31 = vadd.f32 %v7286_v52, %v2792_v51  ;;  %5081 = vrcp.f32 %v7332_v33  ;;  %v2787_v28 = vsel %vm7290_vm0, %v2786_v22, %v2782_v56  ;;  %vm7356_vm12 = vmor %vm2794_vm4, %vm2795_vm10 }
 0x3d9   : > { %v3670_v27 = vsub.f32 1.0, %v3425_v40  ;;  %v2806_v21 = vsub.f32 1.0, %v2805_v7  ;;  %v2815_v9 = vand.u32 2147483648, %v7281_v14  ;;  %v3671_v49 = vsub.f32 1.0, %v3440_v18 }
 0x3da   : > { %v2801_v48 = vor.u32 1.1754944e-38, %v2800_v2  ;;  %v2997_v36 = vmul.f32 1.442695, %v2937_v3  ;;  %v2938_v30 = vsub.f32 0.0, %v2296_v37  ;;  %5083 = vlog2.f32 %v3701_v25  ;;  %v2298_v37 = vpop.xlane.xlu1 %2297 }
 0x3db   : > { %v2797_v22 = vsel %vm7356_vm12, %v7286_v52, %v2793_v31  ;;  %v2807_v11 = vmul.f32 %v5078_v53, %v2806_v21  ;;  %vm2810_vm13 = vweird.f32 %v5078_v53  ;;  %v3540_v61 = vadd.f32 1e-08, %v2787_v28 }
 0x3dc   : > { %v5080_v24 = vpop.eup %5079  ;;  %vm2809_vm14 = vweird.f32 %v7281_v14  ;;  %v2813_v50 = vand.u32 2147483647, %v7281_v14  ;;  %5085 = vpow2.f32 %v2997_v36  ;;  %v3702_v23 = vadd.f32 1e-08, %v3670_v27 }
 0x3dd   : > { %v2808_v15 = vadd.f32 %v5078_v53, %v2807_v11  ;;  %v2816_v44 = vor.u32 1.1754944e-38, %v2815_v9  ;;  %v7365_v63 = vadd.f32 1.0, %v5080_v24  ;;  %v3703_v1 = vadd.f32 1e-08, %v3671_v49  ;;  %vm2811_vm15 = vmor %vm2809_vm14, %vm2810_vm13 }
 0x3de   : > { %v7367_v60 = vpop.eup %5081  ;;  %v2802_v52 = vsel %vm7346_vm11, %v2801_v48, %v2797_v22  ;;  %v2999_v8 = vmul.f32 1.442695, %v2938_v30  ;;  %v2328_v0 = vsub.f32 0.0, %v2196_v17  ;;  %v2329_v5 = vsub.f32 0.0, %v2198_v10 }
 0x3df   : > { %v2812_v39 = vsel %vm2811_vm15, %v5078_v53, %v2808_v15  ;;  %v3443_v14 = vmul.f32 %v7367_v60, %v7332_v33  ;;  %5087 = vrcp.f32 %v7365_v63  ;;  %v7376_v46 = vmul.f32 %v6228_v41, %v7249_v16 }
 0x3e0   : > { %v7379_v32 = vmul.f32 0.6931472, %v7263_v35  ;;  %5089 = vlog2.f32 %v3540_v61  ;;  %vm2814_vm0 = vcmp.eq.f32.partialorder %v2813_v50, 8.507059e+37  ;;  %v7381_v57 = vpop.eup %5083  ;;  %v7384_v43 = vmul.f32 0.6931472, %v7297_v47 }
 0x3e1   : > { %v2817_v34 = vsel %vm2814_vm0, %v2816_v44, %v2812_v39  ;;  %5091 = vpow2.f32 %v2999_v8  ;;  %v2387_v58 = vmul.f32 1.442695, %v2328_v0  ;;  %v3541_v59 = vadd.f32 1e-08, %v2802_v52 }
 0x3e2   : > { %v5086_v42 = vpop.eup %5085  ;;  %5093 = vlog2.f32 %v3702_v23  ;;  %v3444_v12 = vsub.f32 1.0, %v3443_v14  ;;  %v2330_v16 = vsub.f32 0.0, %v7339_v62  ;;  %v2389_v56 = vmul.f32 1.442695, %v2329_v5 }
 0x3e3   : > { %5095 = vlog2.f32 %v3703_v1  ;;  %v7387_v35 = vadd.f32 1.0, %v5086_v42  ;;  %v2939_v29 = vsub.f32 0.0, %v2298_v37  ;;  %v7390_v2 = vmul.f32 0.6931472, %v7247_v55  ;;  %v2204_v25 = vpop.xlane.xlu2 %2203 }
 0x3e4   : > { %v3634_v47 = vsub.f32 0.0, %v7379_v32  ;;  %v3542_v53 = vadd.f32 1e-08, %v2817_v34  ;;  %5097 = vpow2.f32 %v2387_v58  ;;  %v2391_v3 = vmul.f32 1.442695, %v2330_v16  ;;  %v2300_v52 = vpop.xlane.xlu0 %2299 }
 0x3e5   : > { %v5088_v40 = vpop.eup %5087  ;;  %5099 = vrcp.f32 %v7387_v35  ;;  %v2331_v62 = vsub.f32 0.0, %v2202_v26  ;;  %v3445_v7 = vmul.f32 %v7367_v60, %v3444_v12  ;;  %v3451_v18 = vand.u32 2147483647, %v7332_v33 }
 0x3e6   : > { %v5090_v6 = vpop.eup %5089  ;;  %5101 = vlog2.f32 %v3541_v59  ;;  %v2820_v55 = vmul.f32 %v5088_v40, %v7365_v63  ;;  %vm3448_vm1 = vweird.f32 %v7367_v60  ;;  %v3453_v13 = vand.u32 2147483648, %v7332_v33 }
 0x3e7   : > { %v5092_v31 = vpop.eup %5091  ;;  %5103 = vpow2.f32 %v2389_v56  ;;  %v3001_v28 = vmul.f32 1.442695, %v2939_v29  ;;  %v2828_v9 = vand.u32 2147483647, %v7365_v63  ;;  %v2332_v49 = vsub.f32 0.0, %v2204_v25 }
 0x3e8   : > { %v7400_v27 = vpop.eup %5093  ;;  %5105 = vlog2.f32 %v3542_v53  ;;  %v2821_v21 = vsub.f32 1.0, %v2820_v55  ;;  %v2830_v48 = vand.u32 2147483648, %v7365_v63  ;;  %v7406_v36 = vadd.f32 1.0, %v5092_v31 }
 0x3e9   : > { %v7403_v45 = vpop.eup %5095  ;;  %5107 = vpow2.f32 %v2391_v3  ;;  %v2393_v30 = vmul.f32 1.442695, %v2331_v62  ;;  %v3446_v22 = vadd.f32 %v7367_v60, %v3445_v7  ;;  %vm2825_vm2 = vweird.f32 %v5088_v40 }
 0x3ea   : > { %v5098_v17 = vpop.eup %5097  ;;  %v2822_v11 = vmul.f32 %v5088_v40, %v2821_v21  ;;  %5109 = vpow2.f32 %v3001_v28  ;;  %v7411_v61 = vmul.f32 0.6931472, %v5090_v6  ;;  %vm3447_vm3 = vweird.f32 %v7332_v33 }
 0x3eb   : > { %v7409_v24 = vpop.eup %5099  ;;  %vm2824_vm4 = vweird.f32 %v7365_v63  ;;  %5111 = vrcp.f32 %v7406_v36  ;;  %vm7418_vm5 = vmor %vm3447_vm3, %vm3448_vm1  ;;  %v7424_v44 = vadd.f32 1.0, %v5098_v17  ;;  %v2395_v1 = vmul.f32 1.442695, %v2332_v49 }
 0x3ec   : > { %v5102_v50 = vpop.eup %5101  ;;  %v2823_v23 = vadd.f32 %v5088_v40, %v2822_v11  ;;  %v3458_v15 = vmul.f32 %v7409_v24, %v7387_v35  ;;  %vm7426_vm6 = vcmp.eq.f32.partialorder %v3451_v18, 8.507059e+37  ;;  %v3454_v8 = vor.u32 1.1754944e-38, %v3453_v13  ;;  %vm2826_vm7 = vmor %vm2824_vm4, %vm2825_vm2 }
 0x3ed   : > { %v5104_v33 = vpop.eup %5103  ;;  %v2831_v0 = vor.u32 1.1754944e-38, %v2830_v48  ;;  %5113 = vpow2.f32 %v2393_v30  ;;  %v3450_v14 = vsel %vm7418_vm5, %v7367_v60, %v3446_v22  ;;  %vm2829_vm8 = vcmp.eq.f32.partialorder %v2828_v9, 8.507059e+37 }
 0x3ee   : > { %v7431_v39 = vpop.eup %5105  ;;  %v2827_v5 = vsel %vm2826_vm7, %v5088_v40, %v2823_v23  ;;  %5115 = vrcp.f32 %v7424_v44  ;;  %v3459_v58 = vsub.f32 1.0, %v3458_v15  ;;  %v7437_v42 = vadd.f32 1.0, %v5104_v33 }
 0x3ef   : > { %v5108_v37 = vpop.eup %5107  ;;  %v2832_v34 = vsel %vm2829_vm8, %v2831_v0, %v2827_v5  ;;  %v2940_v59 = vsub.f32 0.0, %v2300_v52  ;;  %v3468_v26 = vand.u32 2147483648, %v7387_v35  ;;  %5117 = vpow2.f32 %v2395_v1 }
 0x3f0   : > { %v5110_v12 = vpop.eup %5109  ;;  %v7441_v56 = vadd.f32 1.0, %v5108_v37  ;;  %v7445_v60 = vmul.f32 0.6931472, %v5102_v50  ;;  %v7449_v53 = vsel %vm7426_vm6, %v3454_v8, %v3450_v14  ;;  %v3483_v40 = vand.u32 2147483648, %v7406_v36 }
 0x3f1   : > { %v7443_v29 = vpop.eup %5111  ;;  %5119 = vrcp.f32 %v7437_v42  ;;  %v3543_v3 = vadd.f32 1e-08, %v2832_v34  ;;  %vm3462_vm10 = vweird.f32 %v7387_v35  ;;  %v2845_v25 = vand.u32 2147483648, %v7424_v44 }
 0x3f2   : > { %v3473_v62 = vmul.f32 %v7443_v29, %v7406_v36  ;;  %v3460_v7 = vmul.f32 %v7409_v24, %v3459_v58  ;;  %v3466_v18 = vand.u32 2147483647, %v7387_v35  ;;  %5121 = vrcp.f32 %v7441_v56 }
 0x3f3   : > { %v5114_v6 = vpop.eup %5113  ;;  %v3003_v55 = vmul.f32 1.442695, %v2940_v59  ;;  %v3672_v13 = vsub.f32 1.0, %v7449_v53  ;;  %vm3463_vm11 = vweird.f32 %v7409_v24  ;;  %v7464_v28 = vor.u32 1.1754944e-38, %v3468_v26 }
 0x3f4   : > { %v7460_v31 = vpop.eup %5115  ;;  %v3481_v21 = vand.u32 2147483647, %v7406_v36  ;;  %v3474_v9 = vsub.f32 1.0, %v3473_v62  ;;  %v7467_v49 = vor.u32 1.1754944e-38, %v3483_v40  ;;  %v2843_v30 = vand.u32 2147483647, %v7424_v44  ;;  %vm7504_vm14 = vmor %vm3462_vm10, %vm3463_vm11 }
 0x3f5   : > { %v2835_v48 = vmul.f32 %v7460_v31, %v7424_v44  ;;  %v5118_v17 = vpop.eup %5117  ;;  %5123 = vlog2.f32 %v3543_v3  ;;  %vm2839_vm12 = vweird.f32 %v7424_v44  ;;  %v7473_v22 = vor.u32 1.1754944e-38, %v2845_v25 }
 0x3f6   : > { %v7475_v11 = vadd.f32 1.0, %v5110_v12  ;;  %v7480_v10 = vadd.f32 %v7409_v24, %v3460_v7  ;;  %v7482_v15 = vadd.f32 1.0, %v5114_v6  ;;  %5125 = vpow2.f32 %v3003_v55 }
 0x3f7   : > { %v7477_v50 = vpop.eup %5119  ;;  %v2836_v23 = vsub.f32 1.0, %v2835_v48  ;;  %v2858_v52 = vand.u32 2147483647, %v7437_v42  ;;  %v7488_v33 = vadd.f32 1.0, %v5118_v17  ;;  %v3475_v8 = vmul.f32 %v7443_v29, %v3474_v9 }
 0x3f8   : > { %v2850_v1 = vmul.f32 %v7477_v50, %v7437_v42  ;;  %5127 = vrcp.f32 %v7475_v11  ;;  %v7490_v63 = vpop.eup %5121  ;;  %vm7494_vm13 = vcmp.eq.f32.partialorder %v2843_v30, 8.507059e+37  ;;  %v2860_v5 = vand.u32 2147483648, %v7437_v42 }
 0x3f9   : > { %v2837_v0 = vmul.f32 %v7460_v31, %v2836_v23  ;;  %v2875_v37 = vand.u32 2147483648, %v7441_v56  ;;  %vm2854_vm15 = vweird.f32 %v7437_v42  ;;  %v2865_v59 = vmul.f32 %v7490_v63, %v7441_v56 }
 0x3fa   : > { %v2851_v58 = vsub.f32 1.0, %v2850_v1  ;;  %5129 = vrcp.f32 %v7482_v15  ;;  %v3465_v12 = vsel %vm7504_vm14, %v7409_v24, %v7480_v10  ;;  %vm3478_vm0 = vweird.f32 %v7443_v29 }
 0x3fb   : > { %v2838_v26 = vadd.f32 %v7460_v31, %v2837_v0  ;;  %vm2840_vm1 = vweird.f32 %v7460_v31  ;;  %vm2869_vm2 = vweird.f32 %v7441_v56  ;;  %v2873_v40 = vand.u32 2147483647, %v7441_v56  ;;  %v7521_v3 = vpop.eup %5123 }
 0x3fc   : > { %v2852_v62 = vmul.f32 %v7477_v50, %v2851_v58  ;;  %v2866_v25 = vsub.f32 1.0, %v2865_v59  ;;  %v3498_v6 = vand.u32 2147483648, %v7475_v11  ;;  %5131 = vrcp.f32 %v7488_v33  ;;  %v5126_v7 = vpop.eup %5125  ;;  %vm7540_vm5 = vmor %vm2839_vm12, %vm2840_vm1 }
 0x3fd   : > { %v7527_v55 = vadd.f32 %v7443_v29, %v3475_v8  ;;  %vm3477_vm3 = vweird.f32 %v7406_v36  ;;  %vm7530_vm4 = vcmp.eq.f32.partialorder %v2858_v52, 8.507059e+37  ;;  %v2861_v48 = vor.u32 1.1754944e-38, %v2860_v5 }
 0x3fe   : > { %v2876_v30 = vor.u32 1.1754944e-38, %v2875_v37  ;;  %v7534_v17 = vpop.eup %5127  ;;  %vm2855_vm6 = vweird.f32 %v7477_v50  ;;  %v2867_v1 = vmul.f32 %v7490_v63, %v2866_v25  ;;  %vm3492_vm7 = vweird.f32 %v7475_v11 }
 0x3ff   : > { %v3496_v52 = vand.u32 2147483647, %v7475_v11  ;;  %v2842_v8 = vsel %vm7540_vm5, %v7460_v31, %v2838_v26  ;;  %v2853_v0 = vadd.f32 %v7477_v50, %v2852_v62  ;;  %vm2870_vm8 = vweird.f32 %v7490_v63  ;;  %vm7585_vm5 = vmor %vm2854_vm15, %vm2855_vm6 }
 0x400   : > { %vm7553_vm10 = vcmp.eq.f32.partialorder %v2873_v40, 8.507059e+37  ;;  %v3488_v5 = vmul.f32 %v7534_v17, %v7475_v11  ;;  %v5130_v37 = vpop.eup %5129  ;;  %vm7561_vm11 = vcmp.eq.f32.partialorder %v3466_v18, 8.507059e+37  ;;  %v3499_v59 = vor.u32 1.1754944e-38, %v3498_v6 }
 0x401   : > { %vm2884_vm12 = vweird.f32 %v7482_v15  ;;  %v2888_v31 = vand.u32 2147483647, %v7482_v15  ;;  %v7567_v26 = vadd.f32 1.0, %v5126_v7  ;;  %vm7571_vm1 = vcmp.eq.f32.partialorder %v3481_v21, 8.507059e+37 }
 0x402   : > { %v2868_v62 = vadd.f32 %v7490_v63, %v2867_v1  ;;  %v3489_v35 = vsub.f32 1.0, %v3488_v5  ;;  %v2880_v18 = vmul.f32 %v5130_v37, %v7482_v15  ;;  %v2890_v25 = vand.u32 2147483648, %v7482_v15  ;;  %v5132_v6 = vpop.eup %5131 }
 0x403   : > { %v2847_v23 = vsel %vm7494_vm13, %v7473_v22, %v2842_v8  ;;  %v2905_v7 = vand.u32 2147483648, %v7488_v33  ;;  %5133 = vrcp.f32 %v7567_v26  ;;  %v2857_v1 = vsel %vm7585_vm5, %v7477_v50, %v2853_v0  ;;  %vm7601_vm13 = vmor %vm2869_vm2, %vm2870_vm8 }
 0x404   : > { %v3490_v22 = vmul.f32 %v7534_v17, %v3489_v35  ;;  %v2881_v14 = vsub.f32 1.0, %v2880_v18  ;;  %v2895_v8 = vmul.f32 %v5132_v6, %v7488_v33  ;;  %vm3493_vm15 = vweird.f32 %v7534_v17  ;;  %vm7619_vm2 = vmor %vm3477_vm3, %vm3478_vm0 }
 0x405   : > { %vm2885_vm6 = vweird.f32 %v5130_v37  ;;  %vm7606_vm9 = vcmp.eq.f32.partialorder %v2888_v31, 8.507059e+37  ;;  %v2903_v50 = vand.u32 2147483647, %v7488_v33  ;;  %v2872_v18 = vsel %vm7601_vm13, %v7490_v63, %v2868_v62  ;;  %vm7627_vm8 = vmor %vm3492_vm7, %vm3493_vm15 }
 0x406   : > { %v2882_v0 = vmul.f32 %v5130_v37, %v2881_v14  ;;  %v2896_v35 = vsub.f32 1.0, %v2895_v8  ;;  %v3491_v56 = vadd.f32 %v7534_v17, %v3490_v22  ;;  %v3544_v31 = vadd.f32 1e-08, %v2847_v23  ;;  %vm2886_vm0 = vmor %vm2884_vm12, %vm2885_vm6 }
 0x407   : > { %v2891_v16 = vor.u32 1.1754944e-38, %v2890_v25  ;;  %v2906_v51 = vor.u32 1.1754944e-38, %v2905_v7  ;;  %v2862_v14 = vsel %vm7530_vm4, %v2861_v48, %v2857_v1  ;;  %vm2900_vm5 = vweird.f32 %v5132_v6 }
 0x408   : > { %v2897_v62 = vmul.f32 %v5132_v6, %v2896_v35  ;;  %v2883_v22 = vadd.f32 %v5130_v37, %v2882_v0  ;;  %v3480_v36 = vsel %vm7619_vm2, %v7443_v29, %v7527_v55  ;;  %v3513_v9 = vand.u32 2147483648, %v7567_v26 }
 0x409   : > { %v5134_v23 = vpop.eup %5133  ;;  %v2877_v11 = vsel %vm7553_vm10, %v2876_v30, %v2872_v18  ;;  %vm2904_vm3 = vcmp.eq.f32.partialorder %v2903_v50, 8.507059e+37  ;;  %v3495_v48 = vsel %vm7627_vm8, %v7534_v17, %v3491_v56  ;;  %v3470_v29 = vsel %vm7561_vm11, %v7464_v28, %v3465_v12 }
 0x40a   : > { %v3503_v25 = vmul.f32 %v5134_v23, %v7567_v26  ;;  %v2887_v7 = vsel %vm2886_vm0, %v5130_v37, %v2883_v22  ;;  %v2898_v1 = vadd.f32 %v5132_v6, %v2897_v62  ;;  %vm7981_vm4 = vweird.f32 %v7488_v33 }
 0x40b   : > { %v2892_v15 = vsel %vm7606_vm9, %v2891_v16, %v2887_v7  ;;  %vm2901_vm7 = vmor %vm7981_vm4, %vm2900_vm5  ;;  %v3485_v55 = vsel %vm7571_vm1, %v7467_v49, %v3480_v36  ;;  %vm3497_vm10 = vcmp.eq.f32.partialorder %v3496_v52, 8.507059e+37  ;;  %v3545_v30 = vadd.f32 1e-08, %v2862_v14 }
 0x40c   : > { %v3504_v34 = vsub.f32 1.0, %v3503_v25  ;;  %v2902_v17 = vsel %vm2901_vm7, %v5132_v6, %v2898_v1  ;;  %v3500_v44 = vsel %vm3497_vm10, %v3499_v59, %v3495_v48  ;;  %v3546_v24 = vadd.f32 1e-08, %v2877_v11 }
 0x40d   : > { %v2907_v10 = vsel %vm2904_vm3, %v2906_v51, %v2902_v17  ;;  %v3511_v37 = vand.u32 2147483647, %v7567_v26  ;;  %5135 = vlog2.f32 %v3544_v31  ;;  %v3673_v28 = vsub.f32 1.0, %v3470_v29 }
 0x40e   : > { %v3505_v12 = vmul.f32 %v5134_v23, %v3504_v34  ;;  %vm3508_vm9 = vweird.f32 %v5134_v23  ;;  %v3547_v16 = vadd.f32 1e-08, %v2892_v15  ;;  %v3674_v33 = vsub.f32 1.0, %v3485_v55 }
 0x40f   : > { %vm3507_vm14 = vweird.f32 %v7567_v26  ;;  %5137 = vlog2.f32 %v3545_v30  ;;  %v3675_v58 = vsub.f32 1.0, %v3500_v44  ;;  %v3704_v49 = vadd.f32 1e-08, %v3672_v13 }
 0x410   : > { %v3514_v52 = vor.u32 1.1754944e-38, %v3513_v9  ;;  %v3506_v40 = vadd.f32 %v5134_v23, %v3505_v12  ;;  %v3548_v59 = vadd.f32 1e-08, %v2907_v10  ;;  %5139 = vlog2.f32 %v3546_v24  ;;  %vm3509_vm11 = vmor %vm3507_vm14, %vm3508_vm9 }
 0x411   : > { %v3794_v51 = vsub.f32 %v3634_v47, %v7230_v4  ;;  %v3600_v6 = vmul.f32 0.6931472, %v7431_v39  ;;  %v3602_v8 = vmul.f32 0.6931472, %v7521_v3  ;;  %v3705_v42 = vadd.f32 1e-08, %v3673_v28 }
 0x412   : > { %v3510_v26 = vsel %vm3509_vm11, %v5134_v23, %v3506_v40  ;;  %vm3512_vm12 = vcmp.eq.f32.partialorder %v3511_v37, 8.507059e+37  ;;  %5141 = vlog2.f32 %v3547_v16  ;;  %v3706_v5 = vadd.f32 1e-08, %v3674_v33 }
 0x413   : > { %v5136_v53 = vpop.eup %5135  ;;  %v3637_v13 = vsub.f32 0.0, %v7445_v60  ;;  %v3515_v50 = vsel %vm3512_vm12, %v3514_v52, %v3510_v26  ;;  %v3707_v0 = vadd.f32 1e-08, %v3675_v58  ;;  %5143 = vlog2.f32 %v3704_v49 }
 0x414   : > { %v7982_v32 = vsub.f32 0.0, %v7384_v43  ;;  %v3758_v47 = vmul.f32 0.6931472, %v7381_v57  ;;  %5145 = vlog2.f32 %v3548_v59  ;;  %v3676_v39 = vsub.f32 1.0, %v3515_v50 }
 0x415   : > { %v5138_v3 = vpop.eup %5137  ;;  %v3638_v35 = vsub.f32 0.0, %v3600_v6  ;;  %v3639_v18 = vsub.f32 0.0, %v3602_v8  ;;  %5147 = vlog2.f32 %v3705_v42  ;;  %v7983_v56 = vsub.f32 0.0, %v7411_v61 }
 0x416   : > { %v3795_v4 = vsub.f32 %v7982_v32, %v7233_v38  ;;  %v5140_v60 = vpop.eup %5139  ;;  %v3604_v31 = vmul.f32 0.6931472, %v5136_v53  ;;  %v3708_v14 = vadd.f32 1e-08, %v3676_v39  ;;  %5149 = vlog2.f32 %v3706_v5 }
 0x417   : > { %v3796_v21 = vsub.f32 %v7983_v56, %v7390_v2  ;;  %v3829_v63 = vmul.f32 %v6228_v41, %v3794_v51  ;;  %v3760_v38 = vmul.f32 0.6931472, %v7400_v27  ;;  %5151 = vlog2.f32 %v3707_v0 }
 0x418   : > { %v3797_v57 = vsub.f32 %v3637_v13, %v3758_v47  ;;  %v3877_v43 = vadd.f32 %v7224_v20, %v7221_v54  ;;  %v5142_v62 = vpop.eup %5141  ;;  %v3606_v22 = vmul.f32 0.6931472, %v5138_v3  ;;  %v3830_v36 = vmul.f32 %v6228_v41, %v3795_v4 }
 0x419   : > { %vm7984_vm1 = vcmask 7168   ;;  %v5144_v23 = vpop.eup %5143  ;;  %v3608_v9 = vmul.f32 0.6931472, %v5140_v60  ;;  %v3762_v11 = vmul.f32 0.6931472, %v7403_v45  ;;  %5153 = vlog2.f32 %v3708_v14 }
 0x41a   : > { %v3878_v2 = vsel %vm7984_vm1, %v7227_v19, 0.0  ;;  %vm7985_vm13 = vmmov %vm7984_vm1  ;;  %v5146_v48 = vpop.eup %5145  ;;  %v3640_v25 = vsub.f32 0.0, %v3604_v31  ;;  %v3798_v7 = vsub.f32 %v3638_v35, %v3760_v38  ;;  %v3831_v54 = vmul.f32 %v6228_v41, %v3796_v21 }
 0x41b   : > { %v3880_v61 = vsel %vm7985_vm13, %v7376_v46, 0.0  ;;  %v3879_v27 = vadd.f32 %v3878_v2, %v3877_v43  ;;  %vm7986_vm15 = vmmov %vm7984_vm1  ;;  %v5148_v1 = vpop.eup %5147  ;;  %v3610_v29 = vmul.f32 0.6931472, %v5142_v62  ;;  %v3799_v15 = vsub.f32 %v3639_v18, %v3762_v11 }
 0x41c   : > { %v3882_v20 = vsel %vm7986_vm15, %v3829_v63, 0.0  ;;  %v5150_v55 = vpop.eup %5149  ;;  %v3641_v30 = vsub.f32 0.0, %v3606_v22  ;;  %v3764_v46 = vmul.f32 0.6931472, %v5144_v23  ;;  %v3832_v34 = vmul.f32 %v6228_v41, %v3797_v57  ;;  %vm7987_vm6 = vmmov %vm7984_vm1 }
 0x41d   : > { %v3881_v19 = vadd.f32 %v3880_v61, %v3879_v27  ;;  %v3884_v45 = vsel %vm7987_vm6, %v3830_v36, 0.0  ;;  %v5152_v17 = vpop.eup %5151  ;;  %v3612_v44 = vmul.f32 0.6931472, %v5146_v48  ;;  %v3642_v24 = vsub.f32 0.0, %v3608_v9  ;;  %vm7988_vm2 = vmmov %vm7984_vm1  ;;  %v3806_v27 = vld [vmem:[%s5838_s14] sm:$0xff] }
 0x41e   : > { %v3766_v37 = vmul.f32 0.6931472, %v5148_v1  ;;  %v3800_v28 = vsub.f32 %v3640_v25, %v3764_v46  ;;  %v3833_v12 = vmul.f32 %v6228_v41, %v3798_v7  ;;  %v3886_v16 = vsel %vm7988_vm2, %v3831_v54, 0.0  ;;  %vm7989_vm8 = vmmov %vm7984_vm1 }
 0x41f   : > { %v3883_v10 = vadd.f32 %v3882_v20, %v3881_v19  ;;  %v5154_v33 = vpop.eup %5153  ;;  %v3643_v58 = vsub.f32 0.0, %v3610_v29  ;;  %v3834_v49 = vmul.f32 %v6228_v41, %v3799_v15  ;;  %v3768_v40 = vmul.f32 0.6931472, %v5150_v55  ;;  %vm7990_vm5 = vmmov %vm7984_vm1 }
 0x420   : > { %v3770_v59 = vmul.f32 0.6931472, %v5152_v17  ;;  %v3801_v51 = vsub.f32 %v3641_v30, %v3766_v37  ;;  %v3888_v6 = vsel %vm7989_vm8, %v3832_v34, 0.0  ;;  %v3644_v8 = vsub.f32 0.0, %v3612_v44  ;;  %vm7991_vm0 = vmmov %vm7984_vm1 }
 0x421   : > { %v3885_v52 = vadd.f32 %v3884_v45, %v3883_v10  ;;  %v3772_v26 = vmul.f32 0.6931472, %v5154_v33  ;;  %v3802_v5 = vsub.f32 %v3642_v24, %v3768_v40  ;;  %v3835_v53 = vmul.f32 %v6228_v41, %v3800_v28  ;;  %vm7992_vm3 = vmmov %vm7991_vm0 }
 0x422   : > { %v3890_v13 = vsel %vm7990_vm5, %v3833_v12, 0.0  ;;  %v3803_v0 = vsub.f32 %v3643_v58, %v3770_v59  ;;  %v3836_v32 = vmul.f32 %v6228_v41, %v3801_v51  ;;  %v3892_v4 = vsel %vm7991_vm0, %v3834_v49, 0.0  ;;  %vm7993_vm4 = vmmov %vm7991_vm0 }
 0x423   : > { %v3887_v42 = vadd.f32 %v3886_v16, %v3885_v52  ;;  %v3804_v39 = vsub.f32 %v3644_v8, %v3772_v26  ;;  %v3837_v3 = vmul.f32 %v6228_v41, %v3802_v5  ;;  %v3894_v35 = vsel %vm7992_vm3, %v3835_v53, 0.0  ;;  %vm7994_vm7 = vmmov %vm7991_vm0 }
 0x424   : > { %v3838_v56 = vmul.f32 %v6228_v41, %v3803_v0  ;;  %v3896_v21 = vsel %vm7993_vm4, %v3836_v32, 0.0  ;;  %vm7996_vm10 = vmmov %vm7991_vm0 }
 0x425   : > { %v3889_v50 = vadd.f32 %v3888_v6, %v3887_v42  ;;  %v3839_v31 = vmul.f32 %v6228_v41, %v3804_v39  ;;  %v3898_v14 = vsel %vm7994_vm7, %v3837_v3, 0.0  ;;  %vm7997_vm9 = vmmov %vm7991_vm0 }
 0x426   : > { %v3900_v38 = vsel %vm7996_vm10, %v3838_v56, 0.0 }
 0x427   : > { %v3891_v47 = vadd.f32 %v3890_v13, %v3889_v50  ;;  %v3902_v43 = vsel %vm7997_vm9, %v3839_v31, 0.0 }
 0x429   : > { %v3893_v18 = vadd.f32 %v3892_v4, %v3891_v47 }
 0x42b   : > { %v3895_v60 = vadd.f32 %v3894_v35, %v3893_v18 }
 0x42d   : > { %v3897_v63 = vadd.f32 %v3896_v21, %v3895_v60 }
 0x42f   : > { %v3899_v57 = vadd.f32 %v3898_v14, %v3897_v63 }
 0x431   : > { %v3901_v62 = vadd.f32 %v3900_v38, %v3899_v57 }
 0x433   : > { %v3903_v22 = vadd.f32 %v3902_v43, %v3901_v62 }
 0x435   : > { %3904 = vadd.xlane.f32.xlu1 %v3903_v22 }
 0x4a8   : > { %v3905_v36 = vpop.xlane.xlu1 %3904 }
 0x4a9   : > { %v3906_v2 = vrot.slane %v3905_v36, 4 }
 0x4ab   : > { %v3907_v61 = vadd.f32 %v3906_v2, %v3905_v36 }
 0x4ad   : > { %v3908_v23 = vrot.slane %v3907_v61, 2 }
 0x4af   : > { %v3909_v41 = vadd.f32 %v3908_v23, %v3907_v61 }
 0x4b1   : > { %v3910_v9 = vrot.slane %v3909_v41, 1 }
 0x4b3   : > { %v3911_v11 = vadd.f32 %v3910_v9, %v3909_v41 }
 0x4b5   : > { %4603 = vpush %v3911_v11 }
 0x4e6   : > { %s4604_s18 = spop %4603 }
 0x4e7   : > { %v3913_v48 = vstv %s4604_s18 }
 0x4e8   : > { %v3914_v25 = vadd.f32 %v3913_v48, %v3806_v27 }
 0x4ea   : > { %3915 = vst [vmem:[%s5838_s14] sm:$0xff] %v3914_v25 }
 0x4eb   : > { %5380 = shalt.err (!%p5377_p1)
}
 0x4ec   : > { %4619 = dma.vmem_to_hbm [thread:$0]  (%p5749_p7), %s3930_s22, 128, %s3932_s17, %s3917_s25  }
 0x4ed PF: > { %s7999_s8 = sld [smem:[#allocation22_spill]]  ;;  %p4648_p4 = scmp.ge.s32.totalorder %s5517_s21, 2 }
 0x4ef   : > { %p4642_p5 = pnand %p4648_p4, %p5755_p9 }
 0x4f1   : > { %p4643_p8 = pneg %p4642_p5 }
 0x4f3   : > { %s3943_s4 = sand.u32 1, %s7999_s8  }
 0x4f4   : > { %s3944_s7 = scalar_lea.sflag [#allocation6], %s3943_s4 }
 0x4f5   : > { %5460 = dma.done.wait (%p4643_p8), %s3944_s7, 128  }
 0x4f6   : > { %5462 = vsyncadd (%p4643_p8), %s3944_s7, 4294967168  ;;  %s36_s21 = sadd.s32 1, %s5517_s21   ;;  %s8002_s0 = sld [smem:[#allocation23_spill]] }
 0x4f7   : > { %p7731_p10 = scmp.ge.s32.totalorder %s36_s21, 10   ;;  %s8003_s11 = sld [smem:[#allocation31_spill]] }
 0x4f8   : > { %s8004_s13 = sld [smem:[#allocation24_spill]]  ;;  %s8012_s9 = smov %s5469_s10 }
 0x4f9   : > { %s8005_s20 = sld [smem:[#allocation34_spill]]  ;;  %s8017_s14 = smov %s5493_s15 }
 0x4fa   : > { %s8006_s30 = sld [smem:[#allocation25_spill]]  ;;  %s8019_s17 = smov %s5509_s19 }
 0x4fb   : > { %s8007_s16 = sld [smem:[#allocation32_spill]] }
 0x4fc   : > { %s8008_s18 = sld [smem:[#allocation28_spill]]  ;;  %s8013_s10 = smov %s8002_s0 }
 0x4fd   : > { %s8009_s26 = sld [smem:[#allocation29_spill]]  ;;  %s8014_s0 = smov %s5481_s12 }
 0x4fe   : > { %s8010_s5 = sld [smem:[#allocation30_spill]]  ;;  %s8015_s12 = smov %s8004_s13 }
 0x4ff   : > { %s8016_s13 = smov %s8005_s20 }
 0x500   : > { %s8018_s15 = smov %s8006_s30  ;;  %35 = sbr.rel (!%p7731_p10) target bundleno = 26 (0x1a), region = 153 }
 0x503   : > { %s8020_s19 = smov %s8009_s26 }
 0x504   : > { %s8021_s20 = smov %s8010_s5 }
 0x505   :  { %3950 = vsyncpa [#allocation5], 1 }
 0x506   :  { %3952 = vsyncpa [#allocation5 + $0x1], 1 }
 0x507   :  { %3953 = vsyncpa [#allocation8], 1 }
 0x508   :  { %3955 = vsyncpa [#allocation8 + $0x1], 1 }
 0x509   :  { %3956 = vsyncpa [#allocation11], 1 }
 0x50a   :  { %3957 = vsyncpa [#allocation6], 1 }
 0x50b   :  { %3959 = vsyncpa [#allocation6 + $0x1], 1 }

</bundles_post_ra>
